<compile_context>
chip_gen: v5e
topology: v5e:2x2
jax: 0.10.0
libtpu: 0.0.40
codegen_flags: <defaults>
</compile_context>

<pallas_src>
import jax
import jax.numpy as jnp
from jax.experimental import pallas as pl
from jax.experimental.pallas import tpu as pltpu

ASPP_HIDDEN = 512      # hard-coded in ASPPConv
BN_EPS = 1e-5
VMEM_LIMIT = 48 * 1024 * 1024   # below v7x's 64 MiB physical VMEM; fine on v5e/v6e


def _round_up(x, m):
    return (x + m - 1) // m * m


# ----------------------------------------------------------------------------
# Kernel 1: fused 1x1 convs (b0 + three branch stems) + bias + ReLU
#   one (TM, Cin) @ (Cin, Cp + 3*512) matmul per grid step; two lane-dense
#   bf16 outputs: feat0 (TM, Cp) and the stacked hidden activations (TM, 1536).
# ----------------------------------------------------------------------------
def fused_pointwise(x2d, w, b, c_split, *, tm):
    """x2d: (M, Cin) bf16, w: (Cin, Ctot) bf16, b: (1, Ctot) f32. M % tm == 0."""
    M, Cin = x2d.shape
    Ctot = w.shape[1]

    def kernel(x_ref, w_ref, b_ref, o0_ref, oh_ref):
        y = jnp.dot(x_ref[...], w_ref[...], preferred_element_type=jnp.float32)
        y = jnp.maximum(y + b_ref[...], 0.0)
        o0_ref[...] = y[:, :c_split].astype(o0_ref.dtype)
        oh_ref[...] = y[:, c_split:].astype(oh_ref.dtype)

    return pl.pallas_call(
        kernel,
        out_shape=(jax.ShapeDtypeStruct((M, c_split), jnp.bfloat16),
                   jax.ShapeDtypeStruct((M, Ctot - c_split), jnp.bfloat16)),
        grid=(M // tm,),
        in_specs=[
            pl.BlockSpec((tm, Cin), lambda i: (i, 0)),
            pl.BlockSpec((Cin, Ctot), lambda i: (0, 0)),
            pl.BlockSpec((1, Ctot), lambda i: (0, 0)),
        ],
        out_specs=(pl.BlockSpec((tm, c_split), lambda i: (i, 0)),
                   pl.BlockSpec((tm, Ctot - c_split), lambda i: (i, 0))),
        compiler_params=pltpu.CompilerParams(
            dimension_semantics=("parallel",),
            vmem_limit_bytes=VMEM_LIMIT),
    )(x2d, w, b)


# ----------------------------------------------------------------------------
# Kernel 2: 3x3 dilated conv (9 shifted matmuls) + bias + ReLU, spatially tiled.
#   Input: one 512-channel slice of the shared padded hidden tensor (selected
#   via the channel block index), padded by max_rate on each side.
#   Grid: (batch, H // th); VMEM f32 scratch accumulator per row tile.
# ----------------------------------------------------------------------------
def dilated_conv_bn_relu(hid_pad, w, b, *, rate, max_rate, branch,
                         out_h, out_w, th):
    """hid_pad: (N, Hp, Wp, 3*512) bf16; w: (3,3,512,Cp) bf16; b: (1,Cp) f32."""
    N, Hp, Wp, _ = hid_pad.shape
    Ch = w.shape[2]
    Cp = w.shape[3]
    n_rt = out_h // th

    def kernel(x_ref, w_ref, b_ref, o_ref, acc_ref):
        j = pl.program_id(1)
        row0 = pl.multiple_of(j * th, th)
        acc_ref[...] = jnp.zeros_like(acc_ref)
        for ky in range(3):
            r0 = row0 + (max_rate + (ky - 1) * rate)
            rows = x_ref[0, pl.ds(r0, th), :, :]            # (th, Wp, Ch)
            for kx in range(3):
                c0 = max_rate + (kx - 1) * rate
                patch = rows[:, c0:c0 + out_w, :].reshape(th * out_w, Ch)
                acc_ref[...] += jnp.dot(patch, w_ref[ky, kx],
                                        preferred_element_type=jnp.float32)
        y = jnp.maximum(acc_ref[...] + b_ref[...], 0.0)
        o_ref[...] = y.reshape(1, th, out_w, Cp).astype(o_ref.dtype)

    # NOTE: the input block holds the whole padded image (re-used across the
    # row-tile axis, so it is DMA'd once per image). For very large feature
    # maps on v7x (64 MiB VMEM) a manual halo-window DMA variant would be
    # needed; at these shapes it is far below the limit.
    return pl.pallas_call(
        kernel,
        out_shape=jax.ShapeDtypeStruct((N, out_h, out_w, Cp), jnp.bfloat16),
        grid=(N, n_rt),
        in_specs=[
            pl.BlockSpec((1, Hp, Wp, Ch), lambda n, j: (n, 0, 0, branch)),
            pl.BlockSpec((3, 3, Ch, Cp), lambda n, j: (0, 0, 0, 0)),
            pl.BlockSpec((1, Cp), lambda n, j: (0, 0)),
        ],
        out_specs=pl.BlockSpec((1, th, out_w, Cp), lambda n, j: (n, j, 0, 0)),
        scratch_shapes=[pltpu.VMEM((th * out_w, Cp), jnp.float32)],
        compiler_params=pltpu.CompilerParams(
            dimension_semantics=("parallel", "parallel"),
            vmem_limit_bytes=VMEM_LIMIT),
    )(hid_pad, w, b)


# ----------------------------------------------------------------------------
# Kernel 3: projection. Consumes the 4 spatial branch features directly
# (no HBM concat): concat happens on vregs inside the kernel, one K=4*Cp
# matmul, plus the per-image pooled-branch bias, + bias + ReLU.
# ----------------------------------------------------------------------------
def project_bn_relu(f0, f1, f2, f3, pool_bias, w, b, *, tmr):
    """f*: (N, HW, Cp) bf16; pool_bias: (N,1,Cp) f32; w: (4*Cp,Cp) bf16; b: (1,Cp) f32."""
    N, HW, Cp = f0.shape

    def kernel(f0_ref, f1_ref, f2_ref, f3_ref, pb_ref, w_ref, b_ref, o_ref):
        f = jnp.concatenate(
            [f0_ref[0], f1_ref[0], f2_ref[0], f3_ref[0]], axis=-1)  # (tmr, 4*Cp)
        y = jnp.dot(f, w_ref[...], preferred_element_type=jnp.float32)
        y = y + b_ref[...] + pb_ref[0]
        o_ref[...] = jnp.maximum(y, 0.0)[None, :, :].astype(o_ref.dtype)

    fspec = pl.BlockSpec((1, tmr, Cp), lambda n, j: (n, j, 0))
    return pl.pallas_call(
        kernel,
        out_shape=jax.ShapeDtypeStruct((N, HW, Cp), jnp.float32),
        grid=(N, HW // tmr),
        in_specs=[fspec, fspec, fspec, fspec,
                  pl.BlockSpec((1, 1, Cp), lambda n, j: (n, 0, 0)),
                  pl.BlockSpec((4 * Cp, Cp), lambda n, j: (0, 0)),
                  pl.BlockSpec((1, Cp), lambda n, j: (0, 0))],
        out_specs=pl.BlockSpec((1, tmr, Cp), lambda n, j: (n, j, 0)),
        compiler_params=pltpu.CompilerParams(
            dimension_semantics=("parallel", "parallel"),
            vmem_limit_bytes=VMEM_LIMIT),
    )(f0, f1, f2, f3, pool_bias, w, b)


# ----------------------------------------------------------------------------
# Deterministic synthetic parameters (shapes match ASPP_Module.__init__)
# ----------------------------------------------------------------------------
def _bn_params(key, C):
    k1, k2, k3, k4 = jax.random.split(key, 4)
    gamma = 1.0 + 0.1 * jax.random.normal(k1, (C,), jnp.float32)
    beta = 0.1 * jax.random.normal(k2, (C,), jnp.float32)
    mean = 0.1 * jax.random.normal(k3, (C,), jnp.float32)
    var = jnp.abs(jax.random.normal(k4, (C,), jnp.float32)) + 0.5
    scale = gamma / jnp.sqrt(var + BN_EPS)   # inference-mode BN fold
    bias = beta - mean * scale
    return scale, bias


def _conv_w(key, cin, cout, k=1):
    if k == 1:
        return 0.05 * jax.random.normal(key, (cin, cout), jnp.float32)
    return 0.05 * jax.random.normal(key, (k, k, cin, cout), jnp.float32)


def init_params(key, in_channels, inter_channels):
    out_ch = inter_channels
    keys = jax.random.split(key, 16)
    params = {}
    s, b = _bn_params(keys[1], out_ch)
    params["b0"] = {"w": _conv_w(keys[0], in_channels, out_ch), "s": s, "b": b}
    for i in range(3):
        kw1, kb1, kw2, kb2 = jax.random.split(keys[2 + i], 4)
        s1, b1 = _bn_params(kb1, ASPP_HIDDEN)
        s2, b2 = _bn_params(kb2, out_ch)
        params[f"b{i + 1}"] = {
            "w1": _conv_w(kw1, in_channels, ASPP_HIDDEN), "s1": s1, "bi1": b1,
            "w2": _conv_w(kw2, ASPP_HIDDEN, out_ch, k=3), "s2": s2, "bi2": b2,
        }
    s, b = _bn_params(keys[6], out_ch)
    params["b4"] = {"w": _conv_w(keys[5], in_channels, out_ch), "s": s, "b": b}
    s, b = _bn_params(keys[8], out_ch)
    params["project"] = {"w": _conv_w(keys[7], 5 * out_ch, out_ch), "s": s, "b": b}
    return params


def fold_params(params, out_ch):
    """Fold BN scales into weights, pad out_ch -> Cp (multiple of 128, zero
    weights/bias so results are exact), fuse the 1x1 stems, split W_proj."""
    Cp = _round_up(out_ch, 128)
    pad_c = lambda a: jnp.pad(a, ((0, 0),) * (a.ndim - 1) + ((0, Cp - out_ch),))

    # stage 1: [b0 | b1.w1 | b2.w1 | b3.w1] -> one (Cin, Cp + 3*512) weight
    w_cols = [pad_c(params["b0"]["w"] * params["b0"]["s"][None, :])]
    b_cols = [pad_c(params["b0"]["b"][None, :])]
    for i in range(3):
        p = params[f"b{i + 1}"]
        w_cols.append(p["w1"] * p["s1"][None, :])
        b_cols.append(p["bi1"][None, :])
    w1 = jnp.concatenate(w_cols, axis=1).astype(jnp.bfloat16)
    b1 = jnp.concatenate(b_cols, axis=1).astype(jnp.float32)

    # dilated 3x3 convs, per branch
    wd, bd = [], []
    for i in range(3):
        p = params[f"b{i + 1}"]
        wd.append(pad_c(p["w2"] * p["s2"][None, None, None, :]).astype(jnp.bfloat16))
        bd.append(pad_c(p["bi2"][None, :]).astype(jnp.float32))

    # pooling branch (tiny, stays in plain JAX)
    w4 = params["b4"]["w"] * params["b4"]["s"][None, :]
    b4 = params["b4"]["b"]

    # projection: fold scale, split row-wise into the 5 concat blocks
    wp = params["project"]["w"] * params["project"]["s"][None, :]
    blocks = [wp[k * out_ch:(k + 1) * out_ch] for k in range(5)]
    pad_rc = lambda a: jnp.pad(a, ((0, Cp - out_ch), (0, Cp - out_ch)))
    wp_spatial = jnp.concatenate([pad_rc(blocks[k]) for k in range(4)],
                                 axis=0).astype(jnp.bfloat16)     # (4*Cp, Cp)
    wp_pool = jnp.pad(blocks[4], ((0, 0), (0, Cp - out_ch)))      # (out_ch, Cp)
    bp = pad_c(params["project"]["b"][None, :]).astype(jnp.float32)

    return dict(cp=Cp, out_ch=out_ch, w1=w1, b1=b1, wd=wd, bd=bd,
                w4=w4, b4=b4, wp_spatial=wp_spatial, wp_pool=wp_pool, bp=bp)


# ----------------------------------------------------------------------------
# Forward pass
# ----------------------------------------------------------------------------
def aspp_forward(x_nchw, folded, atrous_rates):
    x = jnp.transpose(x_nchw, (0, 2, 3, 1)).astype(jnp.float32)   # NCHW -> NHWC
    N, H, W, Cin = x.shape
    Cp, out_ch = folded["cp"], folded["out_ch"]
    HW = H * W
    M = N * HW

    # ---- stage 1: fused 1x1 convs (b0 + 3 branch stems), bf16 MXU ----
    tm = 512
    m_pad = _round_up(M, tm)
    xb = x.astype(jnp.bfloat16).reshape(M, Cin)
    if m_pad != M:
        xb = jnp.pad(xb, ((0, m_pad - M), (0, 0)))
    feat0_2d, hidden_2d = fused_pointwise(xb, folded["w1"], folded["b1"], Cp, tm=tm)
    feat0 = feat0_2d[:M].reshape(N, HW, Cp)
    hidden = hidden_2d[:M].reshape(N, H, W, 3 * ASPP_HIDDEN)

    # ---- stage 2: dilated 3x3 convs; shared max-rate padding, channel slice
    #      per branch selected in the BlockSpec (no per-branch HBM slices) ----
    R = max(atrous_rates)
    hid_pad = jnp.pad(hidden, ((0, 0), (R, R), (R, R), (0, 0)))
    th = 8 if H % 8 == 0 else H
    feats = []
    for i, rate in enumerate(atrous_rates):
        fi = dilated_conv_bn_relu(hid_pad, folded["wd"][i], folded["bd"][i],
                                  rate=rate, max_rate=R, branch=i,
                                  out_h=H, out_w=W, th=th)
        feats.append(fi.reshape(N, HW, Cp))

    # ---- pooling branch folded into the projection as a per-image bias.
    #      (AdaptiveAvgPool2d(1) -> 1x1 conv -> BN -> ReLU -> upsample is a
    #       constant broadcast; the tiny (N,Cin)/(N,out_ch) math stays in JAX) ----
    pooled = jnp.mean(x, axis=(1, 2))                              # (N, Cin)
    feat4 = jnp.maximum(pooled @ folded["w4"] + folded["b4"], 0.0) # (N, out_ch)
    pool_bias = (feat4 @ folded["wp_pool"]).reshape(N, 1, Cp).astype(jnp.float32)

    # ---- projection (replaces torch.cat + 1x1 conv + BN + ReLU) ----
    tmr = next((t for t in (512, 256, 128) if HW % t == 0), HW)
    out = project_bn_relu(feat0, feats[0], feats[1], feats[2], pool_bias,
                          folded["wp_spatial"], folded["bp"], tmr=tmr)
    out = out[:, :, :out_ch].reshape(N, H, W, out_ch)
    return jnp.transpose(out, (0, 3, 1, 2))                        # back to NCHW


if __name__ == "__main__":
    in_channels = 8
    inter_channels = 16
    atrous_rates = (1, 2, 3)
    N, H, W = 2, 16, 16

    key = jax.random.PRNGKey(0)
    kx, kp = jax.random.split(key)
    x = jax.random.normal(kx, (N, in_channels, H, W), jnp.float32)
    raw = init_params(kp, in_channels, inter_channels)
    folded = fold_params(raw, inter_channels)

    out = aspp_forward(x, folded, atrous_rates)
    out = jax.block_until_ready(out)
    assert out.shape == (N, inter_channels, H, W), out.shape
    assert bool(jnp.all(jnp.isfinite(out)))
    print("KERNEL_OK")
</pallas_src>

<mosaic_0001>
module attributes {stable_mosaic.version = 11 : i64} {
  func.func @kernel(%arg0: i32, %arg1: memref<512x8xbf16, #tpu.memory_space<vmem>>, %arg2: memref<8x1664xbf16, #tpu.memory_space<vmem>>, %arg3: memref<1x1664xf32, #tpu.memory_space<vmem>>, %arg4: memref<512x128xbf16, #tpu.memory_space<vmem>>, %arg5: memref<512x1536xbf16, #tpu.memory_space<vmem>>) attributes {dimension_semantics = [#tpu.dimension_semantics<parallel>], iteration_bounds = array<i64: 1>, scalar_prefetch = 0 : i64, scratch_operands = 0 : i64, tpu.core_type = #tpu.core_type<tc>, window_params = [{transform_indices = @transform_0, window_bounds = array<i64: 512, 8>}, {pipeline_mode = #tpu.pipeline_mode<synchronous>, transform_indices = @transform_1, window_bounds = array<i64: 8, 1664>}, {pipeline_mode = #tpu.pipeline_mode<synchronous>, transform_indices = @transform_2, window_bounds = array<i64: 1, 1664>}, {transform_indices = @transform_3, window_bounds = array<i64: 512, 128>}, {transform_indices = @transform_4, window_bounds = array<i64: 512, 1536>}]} {
    %c0 = arith.constant 0 : index
    %c0_0 = arith.constant 0 : index
    %0 = vector.load %arg1[%c0, %c0_0] : memref<512x8xbf16, #tpu.memory_space<vmem>>, vector<512x8xbf16>
    %c0_1 = arith.constant 0 : index
    %c0_2 = arith.constant 0 : index
    %1 = vector.load %arg2[%c0_1, %c0_2] : memref<8x1664xbf16, #tpu.memory_space<vmem>>, vector<8x1664xbf16>
    %cst = arith.constant dense<0.000000e+00> : vector<512x1664xf32>
    %2 = tpu.matmul %0, %1, %cst {dimension_numbers = #tpu.dot_dimension_numbers<[1], [0], [0], [1], [0, 0, 1, 1], [], []>} : vector<512x8xbf16>, vector<8x1664xbf16>, vector<512x1664xf32> -> vector<512x1664xf32>
    %c0_3 = arith.constant 0 : index
    %c0_4 = arith.constant 0 : index
    %3 = vector.load %arg3[%c0_3, %c0_4] : memref<1x1664xf32, #tpu.memory_space<vmem>>, vector<1x1664xf32>
    %4 = vector.broadcast %3 : vector<1x1664xf32> to vector<512x1664xf32>
    %5 = arith.addf %2, %4 : vector<512x1664xf32>
    %cst_5 = arith.constant 0.000000e+00 : f32
    %6 = vector.broadcast %cst_5 : f32 to vector<512x1664xf32>
    %7 = arith.maximumf %5, %6 : vector<512x1664xf32>
    %8 = vector.extract_strided_slice %7 {offsets = [0, 0], sizes = [512, 128], strides = [1, 1]} : vector<512x1664xf32> to vector<512x128xf32>
    %9 = arith.truncf %8 : vector<512x128xf32> to vector<512x128xbf16>
    %c0_6 = arith.constant 0 : index
    %c0_7 = arith.constant 0 : index
    %10 = vector.load %arg4[%c0_6, %c0_7] : memref<512x128xbf16, #tpu.memory_space<vmem>>, vector<512x128xbf16>
    tpu.vector_store %arg4[%c0_6, %c0_7], %9 {strides = array<i32>} : memref<512x128xbf16, #tpu.memory_space<vmem>>, vector<512x128xbf16>,
    %11 = vector.extract_strided_slice %7 {offsets = [0, 128], sizes = [512, 1536], strides = [1, 1]} : vector<512x1664xf32> to vector<512x1536xf32>
    %12 = arith.truncf %11 : vector<512x1536xf32> to vector<512x1536xbf16>
    %c0_8 = arith.constant 0 : index
    %c0_9 = arith.constant 0 : index
    %13 = vector.load %arg5[%c0_8, %c0_9] : memref<512x1536xbf16, #tpu.memory_space<vmem>>, vector<512x1536xbf16>
    tpu.vector_store %arg5[%c0_8, %c0_9], %12 {strides = array<i32>} : memref<512x1536xbf16, #tpu.memory_space<vmem>>, vector<512x1536xbf16>,
    return
  }
  func.func @transform_0(%arg0: i32) -> (i32, i32) {
    %c0_i32 = arith.constant 0 : i32
    %c0_i32_0 = arith.constant 0 : i32
    return %arg0, %c0_i32 : i32, i32
  }
  func.func @transform_1(%arg0: i32) -> (i32, i32) {
    %c0_i32 = arith.constant 0 : i32
    %c0_i32_0 = arith.constant 0 : i32
    %c0_i32_1 = arith.constant 0 : i32
    return %c0_i32, %c0_i32_0 : i32, i32
  }
  func.func @transform_2(%arg0: i32) -> (i32, i32) {
    %c0_i32 = arith.constant 0 : i32
    %c0_i32_0 = arith.constant 0 : i32
    %c0_i32_1 = arith.constant 0 : i32
    return %c0_i32, %c0_i32_0 : i32, i32
  }
  func.func @transform_3(%arg0: i32) -> (i32, i32) {
    %c0_i32 = arith.constant 0 : i32
    %c0_i32_0 = arith.constant 0 : i32
    return %arg0, %c0_i32 : i32, i32
  }
  func.func @transform_4(%arg0: i32) -> (i32, i32) {
    %c0_i32 = arith.constant 0 : i32
    %c0_i32_0 = arith.constant 0 : i32
    return %arg0, %c0_i32 : i32, i32
  }
}

</mosaic_0001>

<bundles_post_ra>
// kernel: tpu_custom_call.1
= control target key start
LH: loop header
LB: loop body
LE: loop exit
PB: predicated region body
PF: predicated region fallthrough
CT: control target
= control target key end

     0   :  { %10 = vsyncpa [#allocation3], 0  ;;  %s7188_s0 = inlined_call_operand.vmem [shape: bf16[512,8], index: 0, kind: input, shape index: {}]   ;;  %s7189_s1 = inlined_call_operand.hbm [shape: bf16[8,1664], index: 1, kind: input, shape index: {}]   ;;  %s7190_s2 = inlined_call_operand.hbm [shape: f32[1,1664], index: 2, kind: input, shape index: {}]   ;;  %s7191_s3 = inlined_call_operand.hbm [shape: bf16[512,128], index: 3, kind: output, shape index: {0}]   ;;  %s7192_s4 = inlined_call_operand.hbm [shape: bf16[512,1536], index: 4, kind: output, shape index: {1}]  }
   0x1   :  { %11 = vsyncpa [#allocation6], 0 }
   0x2   :  { %12 = vsyncpa [#allocation4], 0 }
   0x3   :  { %13 = vsyncpa [#allocation9], 0  ;;  %s21_s17 = sshll.u32 %s7189_s1, 4  ;;  %s5409_s18 = smov [#allocation2]   ;;  %s22_s17 = int_to_ptr.hbm [resolvable:$true] %s21_s17 }
   0x4   :  { %s23_s19 = sshll.u32 %s5409_s18, 4  ;;  %s32_s22 = sshll.u32 %s7190_s2, 4  ;;  %s24_s19 = int_to_ptr.vmem [resolvable:$true] %s23_s19  ;;  %s33_s22 = int_to_ptr.hbm [resolvable:$true] %s32_s22 }
   0x5   :  { %26 = dma.hbm_to_vmem [thread:$0]  %s22_s17, 832, %s24_s19, [#allocation3]  }
   0x6   :  { %s5410_s23 = smov [#allocation5]  }
   0x7   :  { %s34_s24 = sshll.u32 %s5410_s23, 4  ;;  %s35_s24 = int_to_ptr.vmem [resolvable:$true] %s34_s24 }
   0x8   :  { %37 = dma.hbm_to_vmem [thread:$0]  %s33_s22, 208, %s35_s24, [#allocation6]  }
   0x9   :  { %5401 = dma.done.wait [#allocation3], 832  }
   0xa   :  { %5402 = vsyncadd [#allocation3], 4294966464 }
   0xb   :  { %5403 = dma.done.wait [#allocation6], 208  }
   0xc   :  { %5404 = vsyncadd [#allocation6], 4294967088  ;;  %v111_v0 = vld [vmem:[#allocation2] sm:$0xff]  ;;  %v112_v2 = vld [vmem:[#allocation2 + $0x8] sm:$0xff]  ;;  %vm438_vm0 = vcmask 1043456   ;;  %vm341_vm1 = vcmask 64512  }
   0xd   :  { %v315_v1 = vunpack.c.l.b16 %v111_v0  ;;  %v316_v3 = vunpack.c.h.b16 %v111_v0  ;;  %v317_v4 = vunpack.c.l.b16 %v112_v2  ;;  %v318_v5 = vunpack.c.h.b16 %v112_v2  ;;  %v5448_v6 = vld [vmem:[#allocation2 + $0x10] sm:$0xff]  ;;  %v5455_v13 = vld [vmem:[%s7188_s0] sm:$0xff]  ;;  %v5481_v22 = vld [vmem:[%s7188_s0 + $0x8] sm:$0xff]  ;;  %s4409_s6 = sshll.u32 %s7191_s3, 4  ;;  %s5412_s7 = smov 64   ;;  %s4410_s6 = int_to_ptr.hbm [resolvable:$true] %s4409_s6 }
   0xe   :  { %v319_v8 = vunpack.c.l.b16 %v5448_v6  ;;  %v5460_v14 = vld [vmem:[%s7188_s0 + $0x40] sm:$0xff]  ;;  %v5486_v23 = vld [vmem:[%s7188_s0 + $0x48] sm:$0xff]  ;;  %v5503_v26 = vld [vmem:[%s7188_s0 + $0x10] sm:$0xff]  ;;  %v320_v53 = vunpack.c.h.b16 %v5448_v6  ;;  %s5413_s8 = smov 4   ;;  %s5414_s3 = smov [#allocation8]  }
   0xf   :  { %v328_v7 = vpack.c.b16 %v315_v1, %v315_v1  ;;  %v330_v9 = vpack.c.b16 %v317_v4, %v317_v4  ;;  %v331_v10 = vpack.c.b16 %v318_v5, %v318_v5  ;;  %v329_v11 = vpack.c.b16 %v316_v3, %v316_v3  ;;  %v5001_v16 = vld [vmem:[%s7188_s0 + $0x80] sm:$0xff]  ;;  %v5002_v24 = vld [vmem:[%s7188_s0 + $0x88] sm:$0xff]  ;;  %v5508_v27 = vld [vmem:[%s7188_s0 + $0x50] sm:$0xff]  ;;  %s4420_s9 = sshll.u32 %s5414_s3, 4  ;;  %s4422_s12 = sshll.u32 %s7192_s4, 4  ;;  %s4421_s9 = int_to_ptr.vmem [resolvable:$true] %s4420_s9  ;;  %s4423_s12 = int_to_ptr.hbm [resolvable:$true] %s4422_s12 }
  0x10   :  { %v332_v15 = vpack.c.b16 %v319_v8, %v319_v8  ;;  %v5009_v17 = vld [vmem:[%s7188_s0 + $0xc0] sm:$0xff]  ;;  %v5010_v25 = vld [vmem:[%s7188_s0 + $0xc8] sm:$0xff]  ;;  %v5003_v28 = vld [vmem:[%s7188_s0 + $0x90] sm:$0xff]  ;;  %v333_v58 = vpack.c.b16 %v320_v53, %v320_v53  ;;  %s5415_s13 = smov 768   ;;  %s5416_s14 = smov 48  }
  0x11   :  { %v440_v12 = vsel %vm438_vm0, %v328_v7, 0  ;;  %v446_v18 = vsel %vm438_vm0, %v330_v9, 0  ;;  %v449_v19 = vsel %vm438_vm0, %v331_v10, 0  ;;  %v443_v20 = vsel %vm438_vm0, %v329_v11, 0  ;;  %v5011_v29 = vld [vmem:[%s7188_s0 + $0xd0] sm:$0xff]  ;;  %v5525_v30 = vld [vmem:[%s7188_s0 + $0x18] sm:$0xff] }
  0x12   :  { %485 = vmatpush.bf16.msra.mxu0 %v440_v12  ;;  %5208 = vmatpush.bf16.msra.mxu1 %v440_v12  ;;  %v452_v21 = vsel %vm438_vm0, %v332_v15, 0  ;;  %v5530_v31 = vld [vmem:[%s7188_s0 + $0x58] sm:$0xff]  ;;  %v5547_v34 = vld [vmem:[%s7188_s0 + $0x20] sm:$0xff]  ;;  %v5569_v38 = vld [vmem:[%s7188_s0 + $0x28] sm:$0xff]  ;;  %v455_v61 = vsel %vm438_vm0, %v333_v58, 0 }
  0x13   :  { %5209 = vmatpush.bf16.msra.mxu2 %v440_v12  ;;  %5210 = vmatpush.bf16.msra.mxu3 %v440_v12  ;;  %v5004_v32 = vld [vmem:[%s7188_s0 + $0x98] sm:$0xff]  ;;  %v5552_v35 = vld [vmem:[%s7188_s0 + $0x60] sm:$0xff]  ;;  %v4998_v39 = vld [vmem:[%s7188_s0 + $0x68] sm:$0xff] }
  0x14   :  { %v5012_v33 = vld [vmem:[%s7188_s0 + $0xd8] sm:$0xff]  ;;  %v5005_v36 = vld [vmem:[%s7188_s0 + $0xa0] sm:$0xff]  ;;  %v5006_v40 = vld [vmem:[%s7188_s0 + $0xa8] sm:$0xff] }
  0x15   :  { %4569 = vmatmul.msk.bf16.vlgmr.msra.gmra.mxu0 %vm341_vm1, %v5455_v13  ;;  %4577 = vmatmul.msk.bf16.vlgmr.msra.gmra.mxu1 %vm341_vm1, %v5460_v14  ;;  %v5013_v37 = vld [vmem:[%s7188_s0 + $0xe0] sm:$0xff]  ;;  %v5014_v41 = vld [vmem:[%s7188_s0 + $0xe8] sm:$0xff]  ;;  %v5588_v42 = vld [vmem:[%s7188_s0 + $0x30] sm:$0xff] }
  0x16   :  { %4585 = vmatmul.msk.bf16.vlgmr.msra.gmra.mxu2 %vm341_vm1, %v5001_v16  ;;  %4593 = vmatmul.msk.bf16.vlgmr.msra.gmra.mxu3 %vm341_vm1, %v5009_v17  ;;  %v4999_v43 = vld [vmem:[%s7188_s0 + $0x70] sm:$0xff]  ;;  %v114_v46 = vld [vmem:[#allocation2 + $0x18] sm:$0xff]  ;;  %v115_v59 = vld [vmem:[#allocation2 + $0x20] sm:$0xff] }
  0x17   :  { %823 = vmatpush.bf16.msrb.mxu2 %v446_v18  ;;  %992 = vmatpush.bf16.msrb.mxu3 %v449_v19  ;;  %v5007_v44 = vld [vmem:[%s7188_s0 + $0xb0] sm:$0xff]  ;;  %v321_v47 = vunpack.c.l.b16 %v114_v46  ;;  %v322_v48 = vunpack.c.h.b16 %v114_v46  ;;  %v5610_v54 = vld [vmem:[%s7188_s0 + $0x38] sm:$0xff]  ;;  %v323_v60 = vunpack.c.l.b16 %v115_v59 }
  0x18   :  { %654 = vmatpush.bf16.msrb.mxu1 %v443_v20  ;;  %1161 = vmatpush.bf16.msrb.mxu0 %v452_v21  ;;  %v5015_v45 = vld [vmem:[%s7188_s0 + $0xf0] sm:$0xff]  ;;  %v5000_v55 = vld [vmem:[%s7188_s0 + $0x78] sm:$0xff] }
  0x19   :  { %v334_v49 = vpack.c.b16 %v321_v47, %v321_v47  ;;  %v335_v50 = vpack.c.b16 %v322_v48, %v322_v48  ;;  %v5008_v56 = vld [vmem:[%s7188_s0 + $0xb8] sm:$0xff]  ;;  %v336_v62 = vpack.c.b16 %v323_v60, %v323_v60 }
  0x1a   :  { %v5016_v57 = vld [vmem:[%s7188_s0 + $0xf8] sm:$0xff] }
  0x1b   :  { %v458_v51 = vsel %vm438_vm0, %v334_v49, 0  ;;  %v461_v52 = vsel %vm438_vm0, %v335_v50, 0  ;;  %v464_v63 = vsel %vm438_vm0, %v336_v62, 0  ;;  %v5628_v0 = vld [vmem:[#allocation5] sm:$0xff] }
  0x1c   :  { %1499 = vmatpush.bf16.msra.mxu2 %v458_v51  ;;  %1668 = vmatpush.bf16.msra.mxu3 %v461_v52  ;;  %v5631_v3 = vperm.slane %v5628_v0, 0 }
  0x1d   :  { %1330 = vmatpush.bf16.msra.mxu1 %v455_v61  ;;  %1837 = vmatpush.bf16.msra.mxu0 %v464_v63 }
  0x25   :  { %4570 = vmatmul.msk.bf16.gmra.mxu0 %vm341_vm1, %v5481_v22  ;;  %4578 = vmatmul.msk.bf16.gmra.mxu1 %vm341_vm1, %v5486_v23 }
  0x26   :  { %4586 = vmatmul.msk.bf16.gmra.mxu2 %vm341_vm1, %v5002_v24  ;;  %4594 = vmatmul.msk.bf16.gmra.mxu3 %vm341_vm1, %v5010_v25 }
  0x35   :  { %4571 = vmatmul.msk.bf16.gmra.mxu0 %vm341_vm1, %v5503_v26  ;;  %4579 = vmatmul.msk.bf16.gmra.mxu1 %vm341_vm1, %v5508_v27 }
  0x36   :  { %4587 = vmatmul.msk.bf16.gmra.mxu2 %vm341_vm1, %v5003_v28  ;;  %4595 = vmatmul.msk.bf16.gmra.mxu3 %vm341_vm1, %v5011_v29 }
  0x45   :  { %4572 = vmatmul.msk.bf16.gmra.mxu0 %vm341_vm1, %v5525_v30  ;;  %4580 = vmatmul.msk.bf16.gmra.mxu1 %vm341_vm1, %v5530_v31 }
  0x46   :  { %4588 = vmatmul.msk.bf16.gmra.mxu2 %vm341_vm1, %v5004_v32  ;;  %4596 = vmatmul.msk.bf16.gmra.mxu3 %vm341_vm1, %v5012_v33 }
  0x55   :  { %4573 = vmatmul.msk.bf16.gmra.mxu0 %vm341_vm1, %v5547_v34  ;;  %4581 = vmatmul.msk.bf16.gmra.mxu1 %vm341_vm1, %v5552_v35 }
  0x56   :  { %4589 = vmatmul.msk.bf16.gmra.mxu2 %vm341_vm1, %v5005_v36  ;;  %4597 = vmatmul.msk.bf16.gmra.mxu3 %vm341_vm1, %v5013_v37 }
  0x65   :  { %4574 = vmatmul.msk.bf16.gmra.mxu0 %vm341_vm1, %v5569_v38  ;;  %4582 = vmatmul.msk.bf16.gmra.mxu1 %vm341_vm1, %v4998_v39 }
  0x66   :  { %4590 = vmatmul.msk.bf16.gmra.mxu2 %vm341_vm1, %v5006_v40  ;;  %4598 = vmatmul.msk.bf16.gmra.mxu3 %vm341_vm1, %v5014_v41 }
  0x75   :  { %4575 = vmatmul.msk.bf16.gmra.mxu0 %vm341_vm1, %v5588_v42  ;;  %4583 = vmatmul.msk.bf16.gmra.mxu1 %vm341_vm1, %v4999_v43 }
  0x76   :  { %4591 = vmatmul.msk.bf16.gmra.mxu2 %vm341_vm1, %v5007_v44  ;;  %4599 = vmatmul.msk.bf16.gmra.mxu3 %vm341_vm1, %v5015_v45 }
  0x85   :  { %4576 = vmatmul.msk.bf16.gmra.mxu0 %vm341_vm1, %v5610_v54  ;;  %4584 = vmatmul.msk.bf16.gmra.mxu1 %vm341_vm1, %v5000_v55 }
  0x86   :  { %4592 = vmatmul.msk.bf16.gmra.mxu2 %vm341_vm1, %v5008_v56  ;;  %4600 = vmatmul.msk.bf16.gmra.mxu3 %vm341_vm1, %v5016_v57 }
  0x92   :  { %v487_v1 = vpop.f32.mrf.mxu0  ;;  %v527_v2 = vpop.f32.mrf.mxu1 }
  0x93   :  { %v488_v4 = vadd.f32 %v487_v1, %v5631_v3  ;;  %v528_v5 = vadd.f32 %v527_v2, %v5631_v3 }
  0x95   :  { %4601 = vmatmul.msk.bf16.vlgmr.msrb.gmra.mxu1 %vm341_vm1, %v5455_v13  ;;  %4697 = vmatmul.msk.bf16.vlgmr.msrb.gmra.mxu0 %vm341_vm1, %v5455_v13  ;;  %v2675_v12 = vmax.f32 %v488_v4, 0.0  ;;  %v2883_v15 = vmax.f32 %v528_v5, 0.0 }
  0x96   :  { %4633 = vmatmul.msk.bf16.vlgmr.msrb.gmra.mxu2 %vm341_vm1, %v5455_v13  ;;  %4665 = vmatmul.msk.bf16.vlgmr.msrb.gmra.mxu3 %vm341_vm1, %v5455_v13 }
  0x99   :  { %v567_v6 = vpop.f32.mrf.mxu2  ;;  %v607_v7 = vpop.f32.mrf.mxu3 }
  0x9a   :  { %v489_v8 = vpop.f32.mrf.mxu0  ;;  %v529_v9 = vpop.f32.mrf.mxu1  ;;  %v568_v13 = vadd.f32 %v567_v6, %v5631_v3  ;;  %v608_v20 = vadd.f32 %v607_v7, %v5631_v3 }
  0x9b   :  { %v490_v10 = vadd.f32 %v489_v8, %v5631_v3  ;;  %v530_v11 = vadd.f32 %v529_v9, %v5631_v3 }
  0x9c   :  { %v3091_v33 = vmax.f32 %v568_v13, 0.0  ;;  %v3299_v36 = vmax.f32 %v608_v20, 0.0 }
  0x9d   :  { %v2688_v16 = vmax.f32 %v490_v10, 0.0  ;;  %v2896_v17 = vmax.f32 %v530_v11, 0.0 }
  0x9f   :  { %v5020_v18 = vpack.c.bf16 %v2688_v16, %v2675_v12  ;;  %v5060_v19 = vpack.c.bf16 %v2896_v17, %v2883_v15 }
  0xa1   :  { %5021 = vst [vmem:[#allocation7] sm:$0xff] %v5020_v18   ;;  %v569_v21 = vpop.f32.mrf.mxu2  ;;  %v609_v24 = vpop.f32.mrf.mxu3 }
  0xa2   :  { %5184 = vst [vmem:[#allocation7 + $0x40] sm:$0xff] %v5060_v19   ;;  %v570_v25 = vadd.f32 %v569_v21, %v5631_v3  ;;  %v610_v28 = vadd.f32 %v609_v24, %v5631_v3  ;;  %v492_v29 = vpop.f32.mrf.mxu0  ;;  %v532_v32 = vpop.f32.mrf.mxu1 }
  0xa3   :  { %v493_v43 = vadd.f32 %v492_v29, %v5631_v3  ;;  %v533_v44 = vadd.f32 %v532_v32, %v5631_v3 }
  0xa4   :  { %v3104_v37 = vmax.f32 %v570_v25, 0.0  ;;  %v3312_v39 = vmax.f32 %v610_v28, 0.0 }
  0xa5   :  { %4602 = vmatmul.msk.bf16.gmra.mxu1 %vm341_vm1, %v5481_v22  ;;  %4698 = vmatmul.msk.bf16.gmra.mxu0 %vm341_vm1, %v5481_v22  ;;  %v2701_v51 = vmax.f32 %v493_v43, 0.0  ;;  %v2909_v52 = vmax.f32 %v533_v44, 0.0 }
  0xa6   :  { %v5100_v40 = vpack.c.bf16 %v3104_v37, %v3091_v33  ;;  %v5140_v41 = vpack.c.bf16 %v3312_v39, %v3299_v36  ;;  %4634 = vmatmul.msk.bf16.gmra.mxu2 %vm341_vm1, %v5481_v22  ;;  %4666 = vmatmul.msk.bf16.gmra.mxu3 %vm341_vm1, %v5481_v22 }
  0xa8   :  { %5192 = vst [vmem:[#allocation7 + $0x80] sm:$0xff] %v5100_v40  }
  0xa9   :  { %5200 = vst [vmem:[#allocation7 + $0xc0] sm:$0xff] %v5140_v41   ;;  %v572_v45 = vpop.f32.mrf.mxu2  ;;  %v612_v46 = vpop.f32.mrf.mxu3 }
  0xaa   :  { %v494_v47 = vpop.f32.mrf.mxu0  ;;  %v534_v48 = vpop.f32.mrf.mxu1  ;;  %v573_v57 = vadd.f32 %v572_v45, %v5631_v3  ;;  %v613_v58 = vadd.f32 %v612_v46, %v5631_v3 }
  0xab   :  { %v495_v49 = vadd.f32 %v494_v47, %v5631_v3  ;;  %v535_v50 = vadd.f32 %v534_v48, %v5631_v3 }
  0xac   :  { %v3117_v2 = vmax.f32 %v573_v57, 0.0  ;;  %v3325_v4 = vmax.f32 %v613_v58, 0.0 }
  0xad   :  { %v2714_v53 = vmax.f32 %v495_v49, 0.0  ;;  %v2922_v55 = vmax.f32 %v535_v50, 0.0 }
  0xaf   :  { %v5025_v56 = vpack.c.bf16 %v2714_v53, %v2701_v51  ;;  %v5065_v22 = vpack.c.bf16 %v2922_v55, %v2909_v52 }
  0xb1   :  { %5177 = vst [vmem:[#allocation7 + $0x8] sm:$0xff] %v5025_v56   ;;  %v574_v59 = vpop.f32.mrf.mxu2  ;;  %v614_v60 = vpop.f32.mrf.mxu3 }
  0xb2   :  { %5185 = vst [vmem:[#allocation7 + $0x48] sm:$0xff] %v5065_v22   ;;  %v575_v61 = vadd.f32 %v574_v59, %v5631_v3  ;;  %v615_v62 = vadd.f32 %v614_v60, %v5631_v3  ;;  %v497_v63 = vpop.f32.mrf.mxu0  ;;  %v537_v1 = vpop.f32.mrf.mxu1 }
  0xb3   :  { %v498_v9 = vadd.f32 %v497_v63, %v5631_v3  ;;  %v538_v10 = vadd.f32 %v537_v1, %v5631_v3 }
  0xb4   :  { %v3130_v5 = vmax.f32 %v575_v61, 0.0  ;;  %v3338_v6 = vmax.f32 %v615_v62, 0.0 }
  0xb5   :  { %4603 = vmatmul.msk.bf16.gmra.mxu1 %vm341_vm1, %v5503_v26  ;;  %4699 = vmatmul.msk.bf16.gmra.mxu0 %vm341_vm1, %v5503_v26  ;;  %v2727_v19 = vmax.f32 %v498_v9, 0.0  ;;  %v2935_v13 = vmax.f32 %v538_v10, 0.0 }
  0xb6   :  { %v5105_v7 = vpack.c.bf16 %v3130_v5, %v3117_v2  ;;  %v5145_v8 = vpack.c.bf16 %v3338_v6, %v3325_v4  ;;  %4635 = vmatmul.msk.bf16.gmra.mxu2 %vm341_vm1, %v5503_v26  ;;  %4667 = vmatmul.msk.bf16.gmra.mxu3 %vm341_vm1, %v5503_v26 }
  0xb8   :  { %5193 = vst [vmem:[#allocation7 + $0x88] sm:$0xff] %v5105_v7  }
  0xb9   :  { %5201 = vst [vmem:[#allocation7 + $0xc8] sm:$0xff] %v5145_v8   ;;  %v577_v11 = vpop.f32.mrf.mxu2  ;;  %v617_v12 = vpop.f32.mrf.mxu3 }
  0xba   :  { %v499_v15 = vpop.f32.mrf.mxu0  ;;  %v539_v16 = vpop.f32.mrf.mxu1  ;;  %v578_v25 = vadd.f32 %v577_v11, %v5631_v3  ;;  %v618_v28 = vadd.f32 %v617_v12, %v5631_v3 }
  0xbb   :  { %v500_v17 = vadd.f32 %v499_v15, %v5631_v3  ;;  %v540_v18 = vadd.f32 %v539_v16, %v5631_v3 }
  0xbc   :  { %v3143_v40 = vmax.f32 %v578_v25, 0.0  ;;  %v3351_v41 = vmax.f32 %v618_v28, 0.0 }
  0xbd   :  { %v2740_v20 = vmax.f32 %v500_v17, 0.0  ;;  %v2948_v21 = vmax.f32 %v540_v18, 0.0 }
  0xbf   :  { %v5030_v24 = vpack.c.bf16 %v2740_v20, %v2727_v19  ;;  %v5070_v26 = vpack.c.bf16 %v2948_v21, %v2935_v13 }
  0xc1   :  { %5178 = vst [vmem:[#allocation7 + $0x10] sm:$0xff] %v5030_v24   ;;  %v579_v29 = vpop.f32.mrf.mxu2  ;;  %v619_v32 = vpop.f32.mrf.mxu3 }
  0xc2   :  { %5186 = vst [vmem:[#allocation7 + $0x50] sm:$0xff] %v5070_v26   ;;  %v580_v33 = vadd.f32 %v579_v29, %v5631_v3  ;;  %v620_v36 = vadd.f32 %v619_v32, %v5631_v3  ;;  %v502_v37 = vpop.f32.mrf.mxu0  ;;  %v542_v39 = vpop.f32.mrf.mxu1 }
  0xc3   :  { %v503_v47 = vadd.f32 %v502_v37, %v5631_v3  ;;  %v543_v48 = vadd.f32 %v542_v39, %v5631_v3 }
  0xc4   :  { %v3156_v43 = vmax.f32 %v580_v33, 0.0  ;;  %v3364_v44 = vmax.f32 %v620_v36, 0.0 }
  0xc5   :  { %4604 = vmatmul.msk.bf16.gmra.mxu1 %vm341_vm1, %v5525_v30  ;;  %4700 = vmatmul.msk.bf16.gmra.mxu0 %vm341_vm1, %v5525_v30  ;;  %v2753_v56 = vmax.f32 %v503_v47, 0.0  ;;  %v2961_v22 = vmax.f32 %v543_v48, 0.0 }
  0xc6   :  { %v5110_v45 = vpack.c.bf16 %v3156_v43, %v3143_v40  ;;  %v5150_v46 = vpack.c.bf16 %v3364_v44, %v3351_v41  ;;  %4636 = vmatmul.msk.bf16.gmra.mxu2 %vm341_vm1, %v5525_v30  ;;  %4668 = vmatmul.msk.bf16.gmra.mxu3 %vm341_vm1, %v5525_v30 }
  0xc8   :  { %5194 = vst [vmem:[#allocation7 + $0x90] sm:$0xff] %v5110_v45  }
  0xc9   :  { %5202 = vst [vmem:[#allocation7 + $0xd0] sm:$0xff] %v5150_v46   ;;  %v582_v49 = vpop.f32.mrf.mxu2  ;;  %v622_v50 = vpop.f32.mrf.mxu3 }
  0xca   :  { %v504_v51 = vpop.f32.mrf.mxu0  ;;  %v544_v52 = vpop.f32.mrf.mxu1  ;;  %v583_v60 = vadd.f32 %v582_v49, %v5631_v3  ;;  %v623_v61 = vadd.f32 %v622_v50, %v5631_v3 }
  0xcb   :  { %v505_v53 = vadd.f32 %v504_v51, %v5631_v3  ;;  %v545_v55 = vadd.f32 %v544_v52, %v5631_v3 }
  0xcc   :  { %v3169_v6 = vmax.f32 %v583_v60, 0.0  ;;  %v3377_v7 = vmax.f32 %v623_v61, 0.0 }
  0xcd   :  { %v2766_v57 = vmax.f32 %v505_v53, 0.0  ;;  %v2974_v58 = vmax.f32 %v545_v55, 0.0 }
  0xcf   :  { %v5035_v59 = vpack.c.bf16 %v2766_v57, %v2753_v56  ;;  %v5075_v30 = vpack.c.bf16 %v2974_v58, %v2961_v22 }
  0xd1   :  { %5179 = vst [vmem:[#allocation7 + $0x18] sm:$0xff] %v5035_v59   ;;  %v584_v62 = vpop.f32.mrf.mxu2  ;;  %v624_v63 = vpop.f32.mrf.mxu3 }
  0xd2   :  { %5187 = vst [vmem:[#allocation7 + $0x58] sm:$0xff] %v5075_v30   ;;  %v585_v1 = vadd.f32 %v584_v62, %v5631_v3  ;;  %v625_v2 = vadd.f32 %v624_v63, %v5631_v3  ;;  %v507_v4 = vpop.f32.mrf.mxu0  ;;  %v547_v5 = vpop.f32.mrf.mxu1 }
  0xd3   :  { %v508_v12 = vadd.f32 %v507_v4, %v5631_v3  ;;  %v548_v15 = vadd.f32 %v547_v5, %v5631_v3 }
  0xd4   :  { %v3182_v8 = vmax.f32 %v585_v1, 0.0  ;;  %v3390_v9 = vmax.f32 %v625_v2, 0.0 }
  0xd5   :  { %4605 = vmatmul.msk.bf16.gmra.mxu1 %vm341_vm1, %v5547_v34  ;;  %4701 = vmatmul.msk.bf16.gmra.mxu0 %vm341_vm1, %v5547_v34  ;;  %v2779_v21 = vmax.f32 %v508_v12, 0.0  ;;  %v2987_v24 = vmax.f32 %v548_v15, 0.0 }
  0xd6   :  { %v5115_v10 = vpack.c.bf16 %v3182_v8, %v3169_v6  ;;  %v5155_v11 = vpack.c.bf16 %v3390_v9, %v3377_v7  ;;  %4637 = vmatmul.msk.bf16.gmra.mxu2 %vm341_vm1, %v5547_v34  ;;  %4669 = vmatmul.msk.bf16.gmra.mxu3 %vm341_vm1, %v5547_v34 }
  0xd8   :  { %5195 = vst [vmem:[#allocation7 + $0x98] sm:$0xff] %v5115_v10  }
  0xd9   :  { %5203 = vst [vmem:[#allocation7 + $0xd8] sm:$0xff] %v5155_v11   ;;  %v587_v16 = vpop.f32.mrf.mxu2  ;;  %v627_v17 = vpop.f32.mrf.mxu3 }
  0xda   :  { %v509_v18 = vpop.f32.mrf.mxu0  ;;  %v549_v19 = vpop.f32.mrf.mxu1  ;;  %v588_v29 = vadd.f32 %v587_v16, %v5631_v3  ;;  %v628_v32 = vadd.f32 %v627_v17, %v5631_v3 }
  0xdb   :  { %v510_v13 = vadd.f32 %v509_v18, %v5631_v3  ;;  %v550_v20 = vadd.f32 %v549_v19, %v5631_v3 }
  0xdc   :  { %v3195_v43 = vmax.f32 %v588_v29, 0.0  ;;  %v3403_v44 = vmax.f32 %v628_v32, 0.0 }
  0xdd   :  { %v2792_v26 = vmax.f32 %v510_v13, 0.0  ;;  %v3000_v25 = vmax.f32 %v550_v20, 0.0 }
  0xdf   :  { %v5040_v28 = vpack.c.bf16 %v2792_v26, %v2779_v21  ;;  %v5080_v34 = vpack.c.bf16 %v3000_v25, %v2987_v24 }
  0xe1   :  { %5180 = vst [vmem:[#allocation7 + $0x20] sm:$0xff] %v5040_v28   ;;  %v589_v33 = vpop.f32.mrf.mxu2  ;;  %v629_v36 = vpop.f32.mrf.mxu3 }
  0xe2   :  { %5188 = vst [vmem:[#allocation7 + $0x60] sm:$0xff] %v5080_v34   ;;  %v590_v37 = vadd.f32 %v589_v33, %v5631_v3  ;;  %v630_v39 = vadd.f32 %v629_v36, %v5631_v3  ;;  %v512_v40 = vpop.f32.mrf.mxu0  ;;  %v552_v41 = vpop.f32.mrf.mxu1 }
  0xe3   :  { %v513_v49 = vadd.f32 %v512_v40, %v5631_v3  ;;  %v553_v50 = vadd.f32 %v552_v41, %v5631_v3 }
  0xe4   :  { %v3208_v45 = vmax.f32 %v590_v37, 0.0  ;;  %v3416_v46 = vmax.f32 %v630_v39, 0.0 }
  0xe5   :  { %4606 = vmatmul.msk.bf16.gmra.mxu1 %vm341_vm1, %v5569_v38  ;;  %4702 = vmatmul.msk.bf16.gmra.mxu0 %vm341_vm1, %v5569_v38  ;;  %v2805_v57 = vmax.f32 %v513_v49, 0.0  ;;  %v3013_v58 = vmax.f32 %v553_v50, 0.0 }
  0xe6   :  { %v5120_v47 = vpack.c.bf16 %v3208_v45, %v3195_v43  ;;  %v5160_v48 = vpack.c.bf16 %v3416_v46, %v3403_v44  ;;  %4638 = vmatmul.msk.bf16.gmra.mxu2 %vm341_vm1, %v5569_v38  ;;  %4670 = vmatmul.msk.bf16.gmra.mxu3 %vm341_vm1, %v5569_v38 }
  0xe8   :  { %5196 = vst [vmem:[#allocation7 + $0xa0] sm:$0xff] %v5120_v47  }
  0xe9   :  { %5204 = vst [vmem:[#allocation7 + $0xe0] sm:$0xff] %v5160_v48   ;;  %v592_v51 = vpop.f32.mrf.mxu2  ;;  %v632_v52 = vpop.f32.mrf.mxu3 }
  0xea   :  { %v514_v53 = vpop.f32.mrf.mxu0  ;;  %v554_v55 = vpop.f32.mrf.mxu1  ;;  %v593_v61 = vadd.f32 %v592_v51, %v5631_v3  ;;  %v633_v62 = vadd.f32 %v632_v52, %v5631_v3 }
  0xeb   :  { %v515_v56 = vadd.f32 %v514_v53, %v5631_v3  ;;  %v555_v22 = vadd.f32 %v554_v55, %v5631_v3 }
  0xec   :  { %v3221_v7 = vmax.f32 %v593_v61, 0.0  ;;  %v3429_v8 = vmax.f32 %v633_v62, 0.0 }
  0xed   :  { %v2818_v59 = vmax.f32 %v515_v56, 0.0  ;;  %v3026_v30 = vmax.f32 %v555_v22, 0.0 }
  0xef   :  { %v5045_v60 = vpack.c.bf16 %v2818_v59, %v2805_v57  ;;  %v5085_v38 = vpack.c.bf16 %v3026_v30, %v3013_v58 }
  0xf1   :  { %5181 = vst [vmem:[#allocation7 + $0x28] sm:$0xff] %v5045_v60   ;;  %v594_v63 = vpop.f32.mrf.mxu2  ;;  %v634_v1 = vpop.f32.mrf.mxu3 }
  0xf2   :  { %5189 = vst [vmem:[#allocation7 + $0x68] sm:$0xff] %v5085_v38   ;;  %v595_v2 = vadd.f32 %v594_v63, %v5631_v3  ;;  %v635_v4 = vadd.f32 %v634_v1, %v5631_v3  ;;  %v517_v5 = vpop.f32.mrf.mxu0  ;;  %v557_v6 = vpop.f32.mrf.mxu1  ;;  %v5760_v1 = vperm.slane %v5628_v0, 1 }
  0xf3   :  { %v518_v15 = vadd.f32 %v517_v5, %v5631_v3  ;;  %v558_v16 = vadd.f32 %v557_v6, %v5631_v3  ;;  %v5765_v6 = vperm.slane %v5628_v0, 4 }
  0xf4   :  { %v3234_v9 = vmax.f32 %v595_v2, 0.0  ;;  %v3442_v10 = vmax.f32 %v635_v4, 0.0 }
  0xf5   :  { %4607 = vmatmul.msk.bf16.gmra.mxu1 %vm341_vm1, %v5588_v42  ;;  %4703 = vmatmul.msk.bf16.gmra.mxu0 %vm341_vm1, %v5588_v42  ;;  %v2831_v24 = vmax.f32 %v518_v15, 0.0  ;;  %v3039_v26 = vmax.f32 %v558_v16, 0.0  ;;  %v5773_v15 = vperm.slane %v5628_v0, 2 }
  0xf6   :  { %v5125_v11 = vpack.c.bf16 %v3234_v9, %v3221_v7  ;;  %v5165_v12 = vpack.c.bf16 %v3442_v10, %v3429_v8  ;;  %4639 = vmatmul.msk.bf16.gmra.mxu2 %vm341_vm1, %v5588_v42  ;;  %4671 = vmatmul.msk.bf16.gmra.mxu3 %vm341_vm1, %v5588_v42 }
  0xf8   :  { %5197 = vst [vmem:[#allocation7 + $0xa8] sm:$0xff] %v5125_v11  }
  0xf9   :  { %5205 = vst [vmem:[#allocation7 + $0xe8] sm:$0xff] %v5165_v12   ;;  %v597_v17 = vpop.f32.mrf.mxu2  ;;  %v637_v18 = vpop.f32.mrf.mxu3 }
  0xfa   :  { %v519_v19 = vpop.f32.mrf.mxu0  ;;  %v559_v13 = vpop.f32.mrf.mxu1  ;;  %v598_v29 = vadd.f32 %v597_v17, %v5631_v3  ;;  %v638_v32 = vadd.f32 %v637_v18, %v5631_v3  ;;  %v5781_v18 = vperm.slane %v5628_v0, 3 }
  0xfb   :  { %v520_v20 = vadd.f32 %v519_v19, %v5631_v3  ;;  %v560_v21 = vadd.f32 %v559_v13, %v5631_v3 }
  0xfc   :  { %v3247_v43 = vmax.f32 %v598_v29, 0.0  ;;  %v3455_v44 = vmax.f32 %v638_v32, 0.0 }
  0xfd   :  { %v2844_v25 = vmax.f32 %v520_v20, 0.0  ;;  %v3052_v28 = vmax.f32 %v560_v21, 0.0 }
  0xff   :  { %v5050_v34 = vpack.c.bf16 %v2844_v25, %v2831_v24  ;;  %v5090_v42 = vpack.c.bf16 %v3052_v28, %v3039_v26 }
 0x101   :  { %5182 = vst [vmem:[#allocation7 + $0x30] sm:$0xff] %v5050_v34   ;;  %v599_v33 = vpop.f32.mrf.mxu2  ;;  %v639_v36 = vpop.f32.mrf.mxu3 }
 0x102   :  { %5190 = vst [vmem:[#allocation7 + $0x70] sm:$0xff] %v5090_v42   ;;  %v600_v37 = vadd.f32 %v599_v33, %v5631_v3  ;;  %v640_v39 = vadd.f32 %v639_v36, %v5631_v3  ;;  %v522_v40 = vpop.f32.mrf.mxu0  ;;  %v562_v41 = vpop.f32.mrf.mxu1 }
 0x103   :  { %v523_v49 = vadd.f32 %v522_v40, %v5631_v3  ;;  %v563_v50 = vadd.f32 %v562_v41, %v5631_v3 }
 0x104   :  { %v3260_v45 = vmax.f32 %v600_v37, 0.0  ;;  %v3468_v46 = vmax.f32 %v640_v39, 0.0 }
 0x105   :  { %4608 = vmatmul.msk.bf16.gmra.mxu1 %vm341_vm1, %v5610_v54  ;;  %4704 = vmatmul.msk.bf16.gmra.mxu0 %vm341_vm1, %v5610_v54  ;;  %v2857_v57 = vmax.f32 %v523_v49, 0.0  ;;  %v3065_v58 = vmax.f32 %v563_v50, 0.0 }
 0x106   :  { %v5130_v47 = vpack.c.bf16 %v3260_v45, %v3247_v43  ;;  %v5170_v48 = vpack.c.bf16 %v3468_v46, %v3455_v44  ;;  %4640 = vmatmul.msk.bf16.gmra.mxu2 %vm341_vm1, %v5610_v54  ;;  %4672 = vmatmul.msk.bf16.gmra.mxu3 %vm341_vm1, %v5610_v54 }
 0x108   :  { %5198 = vst [vmem:[#allocation7 + $0xb0] sm:$0xff] %v5130_v47  }
 0x109   :  { %5206 = vst [vmem:[#allocation7 + $0xf0] sm:$0xff] %v5170_v48   ;;  %v602_v51 = vpop.f32.mrf.mxu2  ;;  %v642_v52 = vpop.f32.mrf.mxu3 }
 0x10a   :  { %v524_v53 = vpop.f32.mrf.mxu0  ;;  %v564_v55 = vpop.f32.mrf.mxu1  ;;  %v603_v38 = vadd.f32 %v602_v51, %v5631_v3  ;;  %v643_v61 = vadd.f32 %v642_v52, %v5631_v3 }
 0x10b   :  { %v525_v56 = vadd.f32 %v524_v53, %v5631_v3  ;;  %v565_v22 = vadd.f32 %v564_v55, %v5631_v3 }
 0x10c   :  { %v3273_v8 = vmax.f32 %v603_v38, 0.0  ;;  %v3481_v9 = vmax.f32 %v643_v61, 0.0 }
 0x10d   :  { %v2870_v59 = vmax.f32 %v525_v56, 0.0  ;;  %v3078_v30 = vmax.f32 %v565_v22, 0.0 }
 0x10f   :  { %v5055_v60 = vpack.c.bf16 %v2870_v59, %v2857_v57  ;;  %v5095_v54 = vpack.c.bf16 %v3078_v30, %v3065_v58 }
 0x111   :  { %5183 = vst [vmem:[#allocation7 + $0x38] sm:$0xff] %v5055_v60   ;;  %v604_v62 = vpop.f32.mrf.mxu2  ;;  %v644_v63 = vpop.f32.mrf.mxu3 }
 0x112   :  { %5191 = vst [vmem:[#allocation7 + $0x78] sm:$0xff] %v5095_v54   ;;  %v605_v2 = vadd.f32 %v604_v62, %v5631_v3  ;;  %v645_v4 = vadd.f32 %v644_v63, %v5631_v3  ;;  %v656_v5 = vpop.f32.mrf.mxu1  ;;  %v1163_v7 = vpop.f32.mrf.mxu0 }
 0x113   :  { %v657_v12 = vadd.f32 %v656_v5, %v5760_v1  ;;  %v1164_v17 = vadd.f32 %v1163_v7, %v5765_v6 }
 0x114   :  { %v3286_v10 = vmax.f32 %v605_v2, 0.0  ;;  %v3494_v11 = vmax.f32 %v645_v4, 0.0 }
 0x115   :  { %4609 = vmatmul.msk.bf16.gmra.mxu1 %vm341_vm1, %v5460_v14  ;;  %4705 = vmatmul.msk.bf16.gmra.mxu0 %vm341_vm1, %v5460_v14  ;;  %v2676_v20 = vmax.f32 %v657_v12, 0.0  ;;  %v2679_v21 = vmax.f32 %v1164_v17, 0.0 }
 0x116   :  { %v5135_v3 = vpack.c.bf16 %v3286_v10, %v3273_v8  ;;  %v5175_v16 = vpack.c.bf16 %v3494_v11, %v3481_v9  ;;  %4641 = vmatmul.msk.bf16.gmra.mxu2 %vm341_vm1, %v5460_v14  ;;  %4673 = vmatmul.msk.bf16.gmra.mxu3 %vm341_vm1, %v5460_v14 }
 0x118   :  { %5199 = vst [vmem:[#allocation7 + $0xb8] sm:$0xff] %v5135_v3  }
 0x119   :  { %5207 = vst [vmem:[#allocation7 + $0xf8] sm:$0xff] %v5175_v16   ;;  %v825_v19 = vpop.f32.mrf.mxu2  ;;  %v994_v13 = vpop.f32.mrf.mxu3 }
 0x11a   :  { %v826_v24 = vadd.f32 %v825_v19, %v5773_v15  ;;  %v995_v26 = vadd.f32 %v994_v13, %v5781_v18  ;;  %v658_v25 = vpop.f32.mrf.mxu1  ;;  %v1165_v28 = vpop.f32.mrf.mxu0 }
 0x11b   :  { %v659_v14 = vadd.f32 %v658_v25, %v5760_v1  ;;  %v1166_v0 = vadd.f32 %v1165_v28, %v5765_v6 }
 0x11c   :  { %v2677_v34 = vmax.f32 %v826_v24, 0.0  ;;  %v2678_v42 = vmax.f32 %v995_v26, 0.0 }
 0x11d   :  { %v2689_v43 = vmax.f32 %v659_v14, 0.0  ;;  %v2692_v44 = vmax.f32 %v1166_v0, 0.0 }
 0x11e   :  { %v3635_v29 = vpack.c.bf16 %v2677_v34, %v2676_v20  ;;  %v3636_v32 = vpack.c.bf16 %v2679_v21, %v2678_v42 }
 0x120   :  { %4019 = vst [vmem:[#allocation8] sm:$0xff] %v3635_v29 }
 0x121   :  { %4020 = vst [vmem:[#allocation8 + $0x8] sm:$0xff] %v3636_v32  ;;  %v827_v33 = vpop.f32.mrf.mxu2  ;;  %v996_v36 = vpop.f32.mrf.mxu3 }
 0x122   :  { %v828_v37 = vadd.f32 %v827_v33, %v5773_v15  ;;  %v997_v39 = vadd.f32 %v996_v36, %v5781_v18  ;;  %v661_v40 = vpop.f32.mrf.mxu1  ;;  %v1168_v41 = vpop.f32.mrf.mxu0 }
 0x123   :  { %v662_v47 = vadd.f32 %v661_v40, %v5760_v1  ;;  %v1169_v50 = vadd.f32 %v1168_v41, %v5765_v6 }
 0x124   :  { %v2690_v45 = vmax.f32 %v828_v37, 0.0  ;;  %v2691_v46 = vmax.f32 %v997_v39, 0.0 }
 0x125   :  { %4610 = vmatmul.msk.bf16.gmra.mxu1 %vm341_vm1, %v5486_v23  ;;  %4706 = vmatmul.msk.bf16.gmra.mxu0 %vm341_vm1, %v5486_v23  ;;  %v2702_v53 = vmax.f32 %v662_v47, 0.0  ;;  %v2705_v55 = vmax.f32 %v1169_v50, 0.0 }
 0x126   :  { %v3641_v48 = vpack.c.bf16 %v2690_v45, %v2689_v43  ;;  %v3642_v49 = vpack.c.bf16 %v2692_v44, %v2691_v46  ;;  %4642 = vmatmul.msk.bf16.gmra.mxu2 %vm341_vm1, %v5486_v23  ;;  %4674 = vmatmul.msk.bf16.gmra.mxu3 %vm341_vm1, %v5486_v23 }
 0x128   :  { %4025 = vst [vmem:[#allocation8 + $0x30] sm:$0xff] %v3641_v48 }
 0x129   :  { %4026 = vst [vmem:[#allocation8 + $0x38] sm:$0xff] %v3642_v49  ;;  %v830_v51 = vpop.f32.mrf.mxu2  ;;  %v999_v52 = vpop.f32.mrf.mxu3 }
 0x12a   :  { %v831_v56 = vadd.f32 %v830_v51, %v5773_v15  ;;  %v1000_v22 = vadd.f32 %v999_v52, %v5781_v18  ;;  %v663_v57 = vpop.f32.mrf.mxu1  ;;  %v1170_v58 = vpop.f32.mrf.mxu0 }
 0x12b   :  { %v664_v38 = vadd.f32 %v663_v57, %v5760_v1  ;;  %v1171_v23 = vadd.f32 %v1170_v58, %v5765_v6 }
 0x12c   :  { %v2703_v59 = vmax.f32 %v831_v56, 0.0  ;;  %v2704_v30 = vmax.f32 %v1000_v22, 0.0 }
 0x12d   :  { %v2715_v7 = vmax.f32 %v664_v38, 0.0  ;;  %v2718_v8 = vmax.f32 %v1171_v23, 0.0 }
 0x12e   :  { %v3647_v60 = vpack.c.bf16 %v2703_v59, %v2702_v53  ;;  %v3648_v54 = vpack.c.bf16 %v2705_v55, %v2704_v30 }
 0x130   :  { %4031 = vst [vmem:[#allocation8 + $0x60] sm:$0xff] %v3647_v60 }
 0x131   :  { %4032 = vst [vmem:[#allocation8 + $0x68] sm:$0xff] %v3648_v54  ;;  %v832_v61 = vpop.f32.mrf.mxu2  ;;  %v1001_v62 = vpop.f32.mrf.mxu3 }
 0x132   :  { %v833_v63 = vadd.f32 %v832_v61, %v5773_v15  ;;  %v1002_v2 = vadd.f32 %v1001_v62, %v5781_v18  ;;  %v666_v4 = vpop.f32.mrf.mxu1  ;;  %v1173_v5 = vpop.f32.mrf.mxu0 }
 0x133   :  { %v667_v11 = vadd.f32 %v666_v4, %v5760_v1  ;;  %v1174_v16 = vadd.f32 %v1173_v5, %v5765_v6 }
 0x134   :  { %v2716_v9 = vmax.f32 %v833_v63, 0.0  ;;  %v2717_v10 = vmax.f32 %v1002_v2, 0.0 }
 0x135   :  { %4611 = vmatmul.msk.bf16.gmra.mxu1 %vm341_vm1, %v5508_v27  ;;  %4707 = vmatmul.msk.bf16.gmra.mxu0 %vm341_vm1, %v5508_v27  ;;  %v2728_v13 = vmax.f32 %v667_v11, 0.0  ;;  %v2731_v20 = vmax.f32 %v1174_v16, 0.0 }
 0x136   :  { %v3653_v12 = vpack.c.bf16 %v2716_v9, %v2715_v7  ;;  %v3654_v3 = vpack.c.bf16 %v2718_v8, %v2717_v10  ;;  %4643 = vmatmul.msk.bf16.gmra.mxu2 %vm341_vm1, %v5508_v27  ;;  %4675 = vmatmul.msk.bf16.gmra.mxu3 %vm341_vm1, %v5508_v27 }
 0x138   :  { %4037 = vst [vmem:[#allocation8 + $0x90] sm:$0xff] %v3653_v12 }
 0x139   :  { %4038 = vst [vmem:[#allocation8 + $0x98] sm:$0xff] %v3654_v3  ;;  %v835_v17 = vpop.f32.mrf.mxu2  ;;  %v1004_v19 = vpop.f32.mrf.mxu3 }
 0x13a   :  { %v836_v21 = vadd.f32 %v835_v17, %v5773_v15  ;;  %v1005_v24 = vadd.f32 %v1004_v19, %v5781_v18  ;;  %v668_v26 = vpop.f32.mrf.mxu1  ;;  %v1175_v25 = vpop.f32.mrf.mxu0 }
 0x13b   :  { %v669_v32 = vadd.f32 %v668_v26, %v5760_v1  ;;  %v1176_v27 = vadd.f32 %v1175_v25, %v5765_v6 }
 0x13c   :  { %v2729_v28 = vmax.f32 %v836_v21, 0.0  ;;  %v2730_v34 = vmax.f32 %v1005_v24, 0.0 }
 0x13d   :  { %v2741_v40 = vmax.f32 %v669_v32, 0.0  ;;  %v2744_v41 = vmax.f32 %v1176_v27, 0.0 }
 0x13e   :  { %v3659_v42 = vpack.c.bf16 %v2729_v28, %v2728_v13  ;;  %v3660_v29 = vpack.c.bf16 %v2731_v20, %v2730_v34 }
 0x140   :  { %4043 = vst [vmem:[#allocation8 + $0xc0] sm:$0xff] %v3659_v42 }
 0x141   :  { %4044 = vst [vmem:[#allocation8 + $0xc8] sm:$0xff] %v3660_v29  ;;  %v837_v14 = vpop.f32.mrf.mxu2  ;;  %v1006_v0 = vpop.f32.mrf.mxu3 }
 0x142   :  { %v838_v33 = vadd.f32 %v837_v14, %v5773_v15  ;;  %v1007_v36 = vadd.f32 %v1006_v0, %v5781_v18  ;;  %v671_v37 = vpop.f32.mrf.mxu1  ;;  %v1178_v39 = vpop.f32.mrf.mxu0 }
 0x143   :  { %v672_v45 = vadd.f32 %v671_v37, %v5760_v1  ;;  %v1179_v48 = vadd.f32 %v1178_v39, %v5765_v6 }
 0x144   :  { %v2742_v43 = vmax.f32 %v838_v33, 0.0  ;;  %v2743_v44 = vmax.f32 %v1007_v36, 0.0 }
 0x145   :  { %4612 = vmatmul.msk.bf16.gmra.mxu1 %vm341_vm1, %v5530_v31  ;;  %4708 = vmatmul.msk.bf16.gmra.mxu0 %vm341_vm1, %v5530_v31  ;;  %v2754_v51 = vmax.f32 %v672_v45, 0.0  ;;  %v2757_v52 = vmax.f32 %v1179_v48, 0.0 }
 0x146   :  { %v3665_v46 = vpack.c.bf16 %v2742_v43, %v2741_v40  ;;  %v3666_v47 = vpack.c.bf16 %v2744_v41, %v2743_v44  ;;  %4644 = vmatmul.msk.bf16.gmra.mxu2 %vm341_vm1, %v5530_v31  ;;  %4676 = vmatmul.msk.bf16.gmra.mxu3 %vm341_vm1, %v5530_v31  ;;  %v5219_v41 = vld [vmem:[%s7188_s0 + $0x68] sm:$0xff] }
 0x148   :  { %4049 = vst [vmem:[#allocation8 + $0xf0] sm:$0xff] %v3665_v46 }
 0x149   :  { %4050 = vst [vmem:[#allocation8 + $0xf8] sm:$0xff] %v3666_v47  ;;  %v840_v49 = vpop.f32.mrf.mxu2  ;;  %v1009_v50 = vpop.f32.mrf.mxu3 }
 0x14a   :  { %v841_v53 = vadd.f32 %v840_v49, %v5773_v15  ;;  %v1010_v55 = vadd.f32 %v1009_v50, %v5781_v18  ;;  %v673_v56 = vpop.f32.mrf.mxu1  ;;  %v1180_v22 = vpop.f32.mrf.mxu0 }
 0x14b   :  { %v674_v60 = vadd.f32 %v673_v56, %v5760_v1  ;;  %v1181_v31 = vadd.f32 %v1180_v22, %v5765_v6 }
 0x14c   :  { %v2755_v57 = vmax.f32 %v841_v53, 0.0  ;;  %v2756_v58 = vmax.f32 %v1010_v55, 0.0 }
 0x14d   :  { %v2767_v2 = vmax.f32 %v674_v60, 0.0  ;;  %v2770_v4 = vmax.f32 %v1181_v31, 0.0 }
 0x14e   :  { %v3671_v59 = vpack.c.bf16 %v2755_v57, %v2754_v51  ;;  %v3672_v30 = vpack.c.bf16 %v2757_v52, %v2756_v58 }
 0x150   :  { %4055 = vst [vmem:[#allocation8 + $0x120] sm:$0xff] %v3671_v59 }
 0x151   :  { %4056 = vst [vmem:[#allocation8 + $0x128] sm:$0xff] %v3672_v30  ;;  %v842_v54 = vpop.f32.mrf.mxu2  ;;  %v1011_v38 = vpop.f32.mrf.mxu3 }
 0x152   :  { %v843_v23 = vadd.f32 %v842_v54, %v5773_v15  ;;  %v1012_v61 = vadd.f32 %v1011_v38, %v5781_v18  ;;  %v676_v62 = vpop.f32.mrf.mxu1  ;;  %v1183_v63 = vpop.f32.mrf.mxu0 }
 0x153   :  { %v677_v8 = vadd.f32 %v676_v62, %v5760_v1  ;;  %v1184_v11 = vadd.f32 %v1183_v63, %v5765_v6 }
 0x154   :  { %v2768_v5 = vmax.f32 %v843_v23, 0.0  ;;  %v2769_v7 = vmax.f32 %v1012_v61, 0.0 }
 0x155   :  { %4613 = vmatmul.msk.bf16.gmra.mxu1 %vm341_vm1, %v5552_v35  ;;  %4709 = vmatmul.msk.bf16.gmra.mxu0 %vm341_vm1, %v5552_v35  ;;  %v2780_v16 = vmax.f32 %v677_v8, 0.0  ;;  %v2783_v17 = vmax.f32 %v1184_v11, 0.0 }
 0x156   :  { %v3677_v9 = vpack.c.bf16 %v2768_v5, %v2767_v2  ;;  %v3678_v10 = vpack.c.bf16 %v2770_v4, %v2769_v7  ;;  %4645 = vmatmul.msk.bf16.gmra.mxu2 %vm341_vm1, %v5552_v35  ;;  %4677 = vmatmul.msk.bf16.gmra.mxu3 %vm341_vm1, %v5552_v35  ;;  %v5220_v5 = vld [vmem:[%s7188_s0 + $0x70] sm:$0xff] }
 0x158   :  { %4061 = vst [vmem:[#allocation8 + $0x150] sm:$0xff] %v3677_v9 }
 0x159   :  { %4062 = vst [vmem:[#allocation8 + $0x158] sm:$0xff] %v3678_v10  ;;  %v845_v12 = vpop.f32.mrf.mxu2  ;;  %v1014_v3 = vpop.f32.mrf.mxu3 }
 0x15a   :  { %v846_v19 = vadd.f32 %v845_v12, %v5773_v15  ;;  %v1015_v13 = vadd.f32 %v1014_v3, %v5781_v18  ;;  %v678_v20 = vpop.f32.mrf.mxu1  ;;  %v1185_v21 = vpop.f32.mrf.mxu0 }
 0x15b   :  { %v679_v34 = vadd.f32 %v678_v20, %v5760_v1  ;;  %v1186_v35 = vadd.f32 %v1185_v21, %v5765_v6 }
 0x15c   :  { %v2781_v24 = vmax.f32 %v846_v19, 0.0  ;;  %v2782_v26 = vmax.f32 %v1015_v13, 0.0 }
 0x15d   :  { %v2793_v33 = vmax.f32 %v679_v34, 0.0  ;;  %v2796_v36 = vmax.f32 %v1186_v35, 0.0 }
 0x15e   :  { %v3683_v25 = vpack.c.bf16 %v2781_v24, %v2780_v16  ;;  %v3684_v28 = vpack.c.bf16 %v2783_v17, %v2782_v26 }
 0x160   :  { %4067 = vst [vmem:[#allocation8 + $0x180] sm:$0xff] %v3683_v25 }
 0x161   :  { %4068 = vst [vmem:[#allocation8 + $0x188] sm:$0xff] %v3684_v28  ;;  %v847_v42 = vpop.f32.mrf.mxu2  ;;  %v1016_v29 = vpop.f32.mrf.mxu3 }
 0x162   :  { %v848_v32 = vadd.f32 %v847_v42, %v5773_v15  ;;  %v1017_v27 = vadd.f32 %v1016_v29, %v5781_v18  ;;  %v681_v14 = vpop.f32.mrf.mxu1  ;;  %v1188_v0 = vpop.f32.mrf.mxu0 }
 0x163   :  { %v682_v40 = vadd.f32 %v681_v14, %v5760_v1  ;;  %v1189_v45 = vadd.f32 %v1188_v0, %v5765_v6 }
 0x164   :  { %v2794_v37 = vmax.f32 %v848_v32, 0.0  ;;  %v2795_v39 = vmax.f32 %v1017_v27, 0.0 }
 0x165   :  { %4614 = vmatmul.msk.bf16.gmra.mxu1 %vm341_vm1, %v5219_v41  ;;  %4710 = vmatmul.msk.bf16.gmra.mxu0 %vm341_vm1, %v5219_v41  ;;  %v2806_v48 = vmax.f32 %v682_v40, 0.0  ;;  %v2809_v49 = vmax.f32 %v1189_v45, 0.0 }
 0x166   :  { %v3689_v43 = vpack.c.bf16 %v2794_v37, %v2793_v33  ;;  %v3690_v44 = vpack.c.bf16 %v2796_v36, %v2795_v39  ;;  %4646 = vmatmul.msk.bf16.gmra.mxu2 %vm341_vm1, %v5219_v41  ;;  %4678 = vmatmul.msk.bf16.gmra.mxu3 %vm341_vm1, %v5219_v41  ;;  %v5221_v39 = vld [vmem:[%s7188_s0 + $0x78] sm:$0xff] }
 0x168   :  { %4073 = vst [vmem:[#allocation8 + $0x1b0] sm:$0xff] %v3689_v43 }
 0x169   :  { %4074 = vst [vmem:[#allocation8 + $0x1b8] sm:$0xff] %v3690_v44  ;;  %v850_v46 = vpop.f32.mrf.mxu2  ;;  %v1019_v47 = vpop.f32.mrf.mxu3 }
 0x16a   :  { %v851_v50 = vadd.f32 %v850_v46, %v5773_v15  ;;  %v1020_v51 = vadd.f32 %v1019_v47, %v5781_v18  ;;  %v683_v52 = vpop.f32.mrf.mxu1  ;;  %v1190_v53 = vpop.f32.mrf.mxu0 }
 0x16b   :  { %v684_v58 = vadd.f32 %v683_v52, %v5760_v1  ;;  %v1191_v59 = vadd.f32 %v1190_v53, %v5765_v6 }
 0x16c   :  { %v2807_v55 = vmax.f32 %v851_v50, 0.0  ;;  %v2808_v56 = vmax.f32 %v1020_v51, 0.0 }
 0x16d   :  { %v2819_v61 = vmax.f32 %v684_v58, 0.0  ;;  %v2822_v62 = vmax.f32 %v1191_v59, 0.0 }
 0x16e   :  { %v3695_v22 = vpack.c.bf16 %v2807_v55, %v2806_v48  ;;  %v3696_v57 = vpack.c.bf16 %v2809_v49, %v2808_v56 }
 0x170   :  { %4079 = vst [vmem:[#allocation8 + $0x1e0] sm:$0xff] %v3695_v22 }
 0x171   :  { %4080 = vst [vmem:[#allocation8 + $0x1e8] sm:$0xff] %v3696_v57  ;;  %v852_v30 = vpop.f32.mrf.mxu2  ;;  %v1021_v60 = vpop.f32.mrf.mxu3 }
 0x172   :  { %v853_v31 = vadd.f32 %v852_v30, %v5773_v15  ;;  %v1022_v54 = vadd.f32 %v1021_v60, %v5781_v18  ;;  %v686_v38 = vpop.f32.mrf.mxu1  ;;  %v1193_v23 = vpop.f32.mrf.mxu0 }
 0x173   :  { %v687_v4 = vadd.f32 %v686_v38, %v5760_v1  ;;  %v1194_v9 = vadd.f32 %v1193_v23, %v5765_v6 }
 0x174   :  { %v2820_v63 = vmax.f32 %v853_v31, 0.0  ;;  %v2821_v2 = vmax.f32 %v1022_v54, 0.0 }
 0x175   :  { %4615 = vmatmul.msk.bf16.gmra.mxu1 %vm341_vm1, %v5220_v5  ;;  %4711 = vmatmul.msk.bf16.gmra.mxu0 %vm341_vm1, %v5220_v5  ;;  %v2832_v12 = vmax.f32 %v687_v4, 0.0  ;;  %v2835_v3 = vmax.f32 %v1194_v9, 0.0 }
 0x176   :  { %v3701_v7 = vpack.c.bf16 %v2820_v63, %v2819_v61  ;;  %v3702_v8 = vpack.c.bf16 %v2822_v62, %v2821_v2  ;;  %4647 = vmatmul.msk.bf16.gmra.mxu2 %vm341_vm1, %v5220_v5  ;;  %4679 = vmatmul.msk.bf16.gmra.mxu3 %vm341_vm1, %v5220_v5  ;;  %v5222_v2 = vld [vmem:[%s7188_s0 + $0x80] sm:$0xff] }
 0x178   :  { %4085 = vst [vmem:[#allocation8 + $0x210] sm:$0xff] %v3701_v7 }
 0x179   :  { %4086 = vst [vmem:[#allocation8 + $0x218] sm:$0xff] %v3702_v8  ;;  %v855_v10 = vpop.f32.mrf.mxu2  ;;  %v1024_v11 = vpop.f32.mrf.mxu3 }
 0x17a   :  { %v856_v16 = vadd.f32 %v855_v10, %v5773_v15  ;;  %v1025_v17 = vadd.f32 %v1024_v11, %v5781_v18  ;;  %v688_v19 = vpop.f32.mrf.mxu1  ;;  %v1195_v13 = vpop.f32.mrf.mxu0 }
 0x17b   :  { %v689_v25 = vadd.f32 %v688_v19, %v5760_v1  ;;  %v1196_v28 = vadd.f32 %v1195_v13, %v5765_v6 }
 0x17c   :  { %v2833_v20 = vmax.f32 %v856_v16, 0.0  ;;  %v2834_v21 = vmax.f32 %v1025_v17, 0.0 }
 0x17d   :  { %v2845_v14 = vmax.f32 %v689_v25, 0.0  ;;  %v2848_v0 = vmax.f32 %v1196_v28, 0.0 }
 0x17e   :  { %v3707_v24 = vpack.c.bf16 %v2833_v20, %v2832_v12  ;;  %v3708_v26 = vpack.c.bf16 %v2835_v3, %v2834_v21 }
 0x180   :  { %4091 = vst [vmem:[#allocation8 + $0x240] sm:$0xff] %v3707_v24 }
 0x181   :  { %4092 = vst [vmem:[#allocation8 + $0x248] sm:$0xff] %v3708_v26  ;;  %v857_v34 = vpop.f32.mrf.mxu2  ;;  %v1026_v35 = vpop.f32.mrf.mxu3 }
 0x182   :  { %v858_v42 = vadd.f32 %v857_v34, %v5773_v15  ;;  %v1027_v29 = vadd.f32 %v1026_v35, %v5781_v18  ;;  %v691_v32 = vpop.f32.mrf.mxu1  ;;  %v1198_v27 = vpop.f32.mrf.mxu0 }
 0x183   :  { %v692_v37 = vadd.f32 %v691_v32, %v5760_v1  ;;  %v1199_v43 = vadd.f32 %v1198_v27, %v5765_v6 }
 0x184   :  { %v2846_v33 = vmax.f32 %v858_v42, 0.0  ;;  %v2847_v36 = vmax.f32 %v1027_v29, 0.0 }
 0x185   :  { %4616 = vmatmul.msk.bf16.gmra.mxu1 %vm341_vm1, %v5221_v39  ;;  %4712 = vmatmul.msk.bf16.gmra.mxu0 %vm341_vm1, %v5221_v39  ;;  %v2858_v46 = vmax.f32 %v692_v37, 0.0  ;;  %v2861_v47 = vmax.f32 %v1199_v43, 0.0 }
 0x186   :  { %v3713_v40 = vpack.c.bf16 %v2846_v33, %v2845_v14  ;;  %v3714_v41 = vpack.c.bf16 %v2848_v0, %v2847_v36  ;;  %4648 = vmatmul.msk.bf16.gmra.mxu2 %vm341_vm1, %v5221_v39  ;;  %4680 = vmatmul.msk.bf16.gmra.mxu3 %vm341_vm1, %v5221_v39  ;;  %v5223_v36 = vld [vmem:[%s7188_s0 + $0x88] sm:$0xff] }
 0x188   :  { %4097 = vst [vmem:[#allocation8 + $0x270] sm:$0xff] %v3713_v40 }
 0x189   :  { %4098 = vst [vmem:[#allocation8 + $0x278] sm:$0xff] %v3714_v41  ;;  %v860_v44 = vpop.f32.mrf.mxu2  ;;  %v1029_v45 = vpop.f32.mrf.mxu3 }
 0x18a   :  { %v861_v48 = vadd.f32 %v860_v44, %v5773_v15  ;;  %v1030_v49 = vadd.f32 %v1029_v45, %v5781_v18  ;;  %v693_v50 = vpop.f32.mrf.mxu1  ;;  %v1200_v51 = vpop.f32.mrf.mxu0 }
 0x18b   :  { %v694_v22 = vadd.f32 %v693_v50, %v5760_v1  ;;  %v1201_v57 = vadd.f32 %v1200_v51, %v5765_v6 }
 0x18c   :  { %v2859_v52 = vmax.f32 %v861_v48, 0.0  ;;  %v2860_v53 = vmax.f32 %v1030_v49, 0.0 }
 0x18d   :  { %v2871_v38 = vmax.f32 %v694_v22, 0.0  ;;  %v2874_v23 = vmax.f32 %v1201_v57, 0.0 }
 0x18e   :  { %v3719_v55 = vpack.c.bf16 %v2859_v52, %v2858_v46  ;;  %v3720_v56 = vpack.c.bf16 %v2861_v47, %v2860_v53 }
 0x190   :  { %4103 = vst [vmem:[#allocation8 + $0x2a0] sm:$0xff] %v3719_v55 }
 0x191   :  { %4104 = vst [vmem:[#allocation8 + $0x2a8] sm:$0xff] %v3720_v56  ;;  %v862_v58 = vpop.f32.mrf.mxu2  ;;  %v1031_v59 = vpop.f32.mrf.mxu3 }
 0x192   :  { %v863_v30 = vadd.f32 %v862_v58, %v5773_v15  ;;  %v1032_v60 = vadd.f32 %v1031_v59, %v5781_v18  ;;  %v696_v31 = vpop.f32.mrf.mxu1  ;;  %v1203_v54 = vpop.f32.mrf.mxu0 }
 0x193   :  { %v697_v63 = vadd.f32 %v696_v31, %v5760_v1  ;;  %v1204_v7 = vadd.f32 %v1203_v54, %v5765_v6 }
 0x194   :  { %v2872_v61 = vmax.f32 %v863_v30, 0.0  ;;  %v2873_v62 = vmax.f32 %v1032_v60, 0.0 }
 0x195   :  { %4617 = vmatmul.msk.bf16.gmra.mxu1 %vm341_vm1, %v5222_v2  ;;  %4713 = vmatmul.msk.bf16.gmra.mxu0 %vm341_vm1, %v5222_v2  ;;  %v2884_v10 = vmax.f32 %v697_v63, 0.0  ;;  %v2887_v11 = vmax.f32 %v1204_v7, 0.0 }
 0x196   :  { %v3725_v4 = vpack.c.bf16 %v2872_v61, %v2871_v38  ;;  %v3726_v5 = vpack.c.bf16 %v2874_v23, %v2873_v62  ;;  %4649 = vmatmul.msk.bf16.gmra.mxu2 %vm341_vm1, %v5222_v2  ;;  %4681 = vmatmul.msk.bf16.gmra.mxu3 %vm341_vm1, %v5222_v2  ;;  %v5224_v62 = vld [vmem:[%s7188_s0 + $0x90] sm:$0xff] }
 0x198   :  { %4109 = vst [vmem:[#allocation8 + $0x2d0] sm:$0xff] %v3725_v4 }
 0x199   :  { %4110 = vst [vmem:[#allocation8 + $0x2d8] sm:$0xff] %v3726_v5  ;;  %v865_v8 = vpop.f32.mrf.mxu2  ;;  %v1034_v9 = vpop.f32.mrf.mxu3 }
 0x19a   :  { %v866_v12 = vadd.f32 %v865_v8, %v5773_v15  ;;  %v1035_v3 = vadd.f32 %v1034_v9, %v5781_v18  ;;  %v698_v16 = vpop.f32.mrf.mxu1  ;;  %v1205_v17 = vpop.f32.mrf.mxu0 }
 0x19b   :  { %v699_v24 = vadd.f32 %v698_v16, %v5760_v1  ;;  %v1206_v26 = vadd.f32 %v1205_v17, %v5765_v6 }
 0x19c   :  { %v2885_v19 = vmax.f32 %v866_v12, 0.0  ;;  %v2886_v13 = vmax.f32 %v1035_v3, 0.0 }
 0x19d   :  { %v2897_v32 = vmax.f32 %v699_v24, 0.0  ;;  %v2900_v27 = vmax.f32 %v1206_v26, 0.0 }
 0x19e   :  { %v3731_v20 = vpack.c.bf16 %v2885_v19, %v2884_v10  ;;  %v3732_v21 = vpack.c.bf16 %v2887_v11, %v2886_v13 }
 0x1a0   :  { %4115 = vst [vmem:[#allocation8 + $0x300] sm:$0xff] %v3731_v20 }
 0x1a1   :  { %4116 = vst [vmem:[#allocation8 + $0x308] sm:$0xff] %v3732_v21  ;;  %v867_v25 = vpop.f32.mrf.mxu2  ;;  %v1036_v28 = vpop.f32.mrf.mxu3 }
 0x1a2   :  { %v868_v34 = vadd.f32 %v867_v25, %v5773_v15  ;;  %v1037_v35 = vadd.f32 %v1036_v28, %v5781_v18  ;;  %v701_v42 = vpop.f32.mrf.mxu1  ;;  %v1208_v29 = vpop.f32.mrf.mxu0 }
 0x1a3   :  { %v702_v33 = vadd.f32 %v701_v42, %v5760_v1  ;;  %v1209_v40 = vadd.f32 %v1208_v29, %v5765_v6 }
 0x1a4   :  { %v2898_v14 = vmax.f32 %v868_v34, 0.0  ;;  %v2899_v0 = vmax.f32 %v1037_v35, 0.0 }
 0x1a5   :  { %4618 = vmatmul.msk.bf16.gmra.mxu1 %vm341_vm1, %v5223_v36  ;;  %4714 = vmatmul.msk.bf16.gmra.mxu0 %vm341_vm1, %v5223_v36  ;;  %v2910_v44 = vmax.f32 %v702_v33, 0.0  ;;  %v2913_v45 = vmax.f32 %v1209_v40, 0.0 }
 0x1a6   :  { %v3737_v37 = vpack.c.bf16 %v2898_v14, %v2897_v32  ;;  %v3738_v39 = vpack.c.bf16 %v2900_v27, %v2899_v0  ;;  %4650 = vmatmul.msk.bf16.gmra.mxu2 %vm341_vm1, %v5223_v36  ;;  %4682 = vmatmul.msk.bf16.gmra.mxu3 %vm341_vm1, %v5223_v36  ;;  %v5225_v0 = vld [vmem:[%s7188_s0 + $0x98] sm:$0xff] }
 0x1a8   :  { %4121 = vst [vmem:[#allocation8 + $0x330] sm:$0xff] %v3737_v37 }
 0x1a9   :  { %4122 = vst [vmem:[#allocation8 + $0x338] sm:$0xff] %v3738_v39  ;;  %v870_v41 = vpop.f32.mrf.mxu2  ;;  %v1039_v43 = vpop.f32.mrf.mxu3 }
 0x1aa   :  { %v871_v46 = vadd.f32 %v870_v41, %v5773_v15  ;;  %v1040_v47 = vadd.f32 %v1039_v43, %v5781_v18  ;;  %v703_v48 = vpop.f32.mrf.mxu1  ;;  %v1210_v49 = vpop.f32.mrf.mxu0 }
 0x1ab   :  { %v704_v55 = vadd.f32 %v703_v48, %v5760_v1  ;;  %v1211_v56 = vadd.f32 %v1210_v49, %v5765_v6 }
 0x1ac   :  { %v2911_v50 = vmax.f32 %v871_v46, 0.0  ;;  %v2912_v51 = vmax.f32 %v1040_v47, 0.0 }
 0x1ad   :  { %v2923_v31 = vmax.f32 %v704_v55, 0.0  ;;  %v2926_v54 = vmax.f32 %v1211_v56, 0.0 }
 0x1ae   :  { %v3743_v52 = vpack.c.bf16 %v2911_v50, %v2910_v44  ;;  %v3744_v53 = vpack.c.bf16 %v2913_v45, %v2912_v51 }
 0x1b0   :  { %4127 = vst [vmem:[#allocation8 + $0x360] sm:$0xff] %v3743_v52 }
 0x1b1   :  { %4128 = vst [vmem:[#allocation8 + $0x368] sm:$0xff] %v3744_v53  ;;  %v872_v22 = vpop.f32.mrf.mxu2  ;;  %v1041_v57 = vpop.f32.mrf.mxu3 }
 0x1b2   :  { %v873_v58 = vadd.f32 %v872_v22, %v5773_v15  ;;  %v1042_v59 = vadd.f32 %v1041_v57, %v5781_v18  ;;  %v706_v30 = vpop.f32.mrf.mxu1  ;;  %v1213_v60 = vpop.f32.mrf.mxu0 }
 0x1b3   :  { %v707_v61 = vadd.f32 %v706_v30, %v5760_v1  ;;  %v1214_v4 = vadd.f32 %v1213_v60, %v5765_v6 }
 0x1b4   :  { %v2924_v38 = vmax.f32 %v873_v58, 0.0  ;;  %v2925_v23 = vmax.f32 %v1042_v59, 0.0 }
 0x1b5   :  { %4619 = vmatmul.msk.bf16.gmra.mxu1 %vm341_vm1, %v5224_v62  ;;  %4715 = vmatmul.msk.bf16.gmra.mxu0 %vm341_vm1, %v5224_v62  ;;  %v2936_v8 = vmax.f32 %v707_v61, 0.0  ;;  %v2939_v9 = vmax.f32 %v1214_v4, 0.0 }
 0x1b6   :  { %v3749_v63 = vpack.c.bf16 %v2924_v38, %v2923_v31  ;;  %v3750_v2 = vpack.c.bf16 %v2926_v54, %v2925_v23  ;;  %4651 = vmatmul.msk.bf16.gmra.mxu2 %vm341_vm1, %v5224_v62  ;;  %4683 = vmatmul.msk.bf16.gmra.mxu3 %vm341_vm1, %v5224_v62  ;;  %v5226_v23 = vld [vmem:[%s7188_s0 + $0xa0] sm:$0xff] }
 0x1b8   :  { %4133 = vst [vmem:[#allocation8 + $0x390] sm:$0xff] %v3749_v63 }
 0x1b9   :  { %4134 = vst [vmem:[#allocation8 + $0x398] sm:$0xff] %v3750_v2  ;;  %v875_v5 = vpop.f32.mrf.mxu2  ;;  %v1044_v7 = vpop.f32.mrf.mxu3 }
 0x1ba   :  { %v876_v10 = vadd.f32 %v875_v5, %v5773_v15  ;;  %v1045_v11 = vadd.f32 %v1044_v7, %v5781_v18  ;;  %v708_v12 = vpop.f32.mrf.mxu1  ;;  %v1215_v3 = vpop.f32.mrf.mxu0 }
 0x1bb   :  { %v709_v20 = vadd.f32 %v708_v12, %v5760_v1  ;;  %v1216_v21 = vadd.f32 %v1215_v3, %v5765_v6 }
 0x1bc   :  { %v2937_v16 = vmax.f32 %v876_v10, 0.0  ;;  %v2938_v17 = vmax.f32 %v1045_v11, 0.0 }
 0x1bd   :  { %v2949_v42 = vmax.f32 %v709_v20, 0.0  ;;  %v2952_v29 = vmax.f32 %v1216_v21, 0.0 }
 0x1be   :  { %v3755_v19 = vpack.c.bf16 %v2937_v16, %v2936_v8  ;;  %v3756_v13 = vpack.c.bf16 %v2939_v9, %v2938_v17 }
 0x1c0   :  { %4139 = vst [vmem:[#allocation8 + $0x3c0] sm:$0xff] %v3755_v19 }
 0x1c1   :  { %4140 = vst [vmem:[#allocation8 + $0x3c8] sm:$0xff] %v3756_v13  ;;  %v877_v24 = vpop.f32.mrf.mxu2  ;;  %v1046_v26 = vpop.f32.mrf.mxu3 }
 0x1c2   :  { %v878_v25 = vadd.f32 %v877_v24, %v5773_v15  ;;  %v1047_v28 = vadd.f32 %v1046_v26, %v5781_v18  ;;  %v711_v34 = vpop.f32.mrf.mxu1  ;;  %v1218_v35 = vpop.f32.mrf.mxu0 }
 0x1c3   :  { %v712_v14 = vadd.f32 %v711_v34, %v5760_v1  ;;  %v1219_v37 = vadd.f32 %v1218_v35, %v5765_v6 }
 0x1c4   :  { %v2950_v32 = vmax.f32 %v878_v25, 0.0  ;;  %v2951_v27 = vmax.f32 %v1047_v28, 0.0 }
 0x1c5   :  { %4620 = vmatmul.msk.bf16.gmra.mxu1 %vm341_vm1, %v5225_v0  ;;  %4716 = vmatmul.msk.bf16.gmra.mxu0 %vm341_vm1, %v5225_v0  ;;  %v2962_v41 = vmax.f32 %v712_v14, 0.0  ;;  %v2965_v43 = vmax.f32 %v1219_v37, 0.0 }
 0x1c6   :  { %v3761_v33 = vpack.c.bf16 %v2950_v32, %v2949_v42  ;;  %v3762_v36 = vpack.c.bf16 %v2952_v29, %v2951_v27  ;;  %4652 = vmatmul.msk.bf16.gmra.mxu2 %vm341_vm1, %v5225_v0  ;;  %4684 = vmatmul.msk.bf16.gmra.mxu3 %vm341_vm1, %v5225_v0  ;;  %v5227_v27 = vld [vmem:[%s7188_s0 + $0xa8] sm:$0xff] }
 0x1c8   :  { %4145 = vst [vmem:[#allocation8 + $0x3f0] sm:$0xff] %v3761_v33 }
 0x1c9   :  { %4146 = vst [vmem:[#allocation8 + $0x3f8] sm:$0xff] %v3762_v36  ;;  %v880_v39 = vpop.f32.mrf.mxu2  ;;  %v1049_v40 = vpop.f32.mrf.mxu3 }
 0x1ca   :  { %v881_v44 = vadd.f32 %v880_v39, %v5773_v15  ;;  %v1050_v45 = vadd.f32 %v1049_v40, %v5781_v18  ;;  %v713_v46 = vpop.f32.mrf.mxu1  ;;  %v1220_v47 = vpop.f32.mrf.mxu0 }
 0x1cb   :  { %v714_v52 = vadd.f32 %v713_v46, %v5760_v1  ;;  %v1221_v53 = vadd.f32 %v1220_v47, %v5765_v6 }
 0x1cc   :  { %v2963_v48 = vmax.f32 %v881_v44, 0.0  ;;  %v2964_v49 = vmax.f32 %v1050_v45, 0.0 }
 0x1cd   :  { %v2975_v30 = vmax.f32 %v714_v52, 0.0  ;;  %v2978_v60 = vmax.f32 %v1221_v53, 0.0 }
 0x1ce   :  { %v3767_v50 = vpack.c.bf16 %v2963_v48, %v2962_v41  ;;  %v3768_v51 = vpack.c.bf16 %v2965_v43, %v2964_v49 }
 0x1d0   :  { %4151 = vst [vmem:[#allocation8 + $0x420] sm:$0xff] %v3767_v50 }
 0x1d1   :  { %4152 = vst [vmem:[#allocation8 + $0x428] sm:$0xff] %v3768_v51  ;;  %v882_v55 = vpop.f32.mrf.mxu2  ;;  %v1051_v56 = vpop.f32.mrf.mxu3 }
 0x1d2   :  { %v883_v22 = vadd.f32 %v882_v55, %v5773_v15  ;;  %v1052_v57 = vadd.f32 %v1051_v56, %v5781_v18  ;;  %v716_v58 = vpop.f32.mrf.mxu1  ;;  %v1223_v59 = vpop.f32.mrf.mxu0 }
 0x1d3   :  { %v717_v38 = vadd.f32 %v716_v58, %v5760_v1  ;;  %v1224_v63 = vadd.f32 %v1223_v59, %v5765_v6 }
 0x1d4   :  { %v2976_v31 = vmax.f32 %v883_v22, 0.0  ;;  %v2977_v54 = vmax.f32 %v1052_v57, 0.0 }
 0x1d5   :  { %4621 = vmatmul.msk.bf16.gmra.mxu1 %vm341_vm1, %v5226_v23  ;;  %4717 = vmatmul.msk.bf16.gmra.mxu0 %vm341_vm1, %v5226_v23  ;;  %v2988_v5 = vmax.f32 %v717_v38, 0.0  ;;  %v2991_v7 = vmax.f32 %v1224_v63, 0.0 }
 0x1d6   :  { %v3773_v61 = vpack.c.bf16 %v2976_v31, %v2975_v30  ;;  %v3774_v62 = vpack.c.bf16 %v2978_v60, %v2977_v54  ;;  %4653 = vmatmul.msk.bf16.gmra.mxu2 %vm341_vm1, %v5226_v23  ;;  %4685 = vmatmul.msk.bf16.gmra.mxu3 %vm341_vm1, %v5226_v23  ;;  %v5228_v54 = vld [vmem:[%s7188_s0 + $0xb0] sm:$0xff] }
 0x1d8   :  { %4157 = vst [vmem:[#allocation8 + $0x450] sm:$0xff] %v3773_v61 }
 0x1d9   :  { %4158 = vst [vmem:[#allocation8 + $0x458] sm:$0xff] %v3774_v62  ;;  %v885_v2 = vpop.f32.mrf.mxu2  ;;  %v1054_v4 = vpop.f32.mrf.mxu3 }
 0x1da   :  { %v886_v8 = vadd.f32 %v885_v2, %v5773_v15  ;;  %v1055_v9 = vadd.f32 %v1054_v4, %v5781_v18  ;;  %v718_v10 = vpop.f32.mrf.mxu1  ;;  %v1225_v11 = vpop.f32.mrf.mxu0 }
 0x1db   :  { %v719_v19 = vadd.f32 %v718_v10, %v5760_v1  ;;  %v1226_v13 = vadd.f32 %v1225_v11, %v5765_v6 }
 0x1dc   :  { %v2989_v12 = vmax.f32 %v886_v8, 0.0  ;;  %v2990_v3 = vmax.f32 %v1055_v9, 0.0 }
 0x1dd   :  { %v3001_v34 = vmax.f32 %v719_v19, 0.0  ;;  %v3004_v35 = vmax.f32 %v1226_v13, 0.0 }
 0x1de   :  { %v3779_v16 = vpack.c.bf16 %v2989_v12, %v2988_v5  ;;  %v3780_v17 = vpack.c.bf16 %v2991_v7, %v2990_v3 }
 0x1e0   :  { %4163 = vst [vmem:[#allocation8 + $0x480] sm:$0xff] %v3779_v16 }
 0x1e1   :  { %4164 = vst [vmem:[#allocation8 + $0x488] sm:$0xff] %v3780_v17  ;;  %v887_v20 = vpop.f32.mrf.mxu2  ;;  %v1056_v21 = vpop.f32.mrf.mxu3 }
 0x1e2   :  { %v888_v24 = vadd.f32 %v887_v20, %v5773_v15  ;;  %v1057_v26 = vadd.f32 %v1056_v21, %v5781_v18  ;;  %v721_v25 = vpop.f32.mrf.mxu1  ;;  %v1228_v28 = vpop.f32.mrf.mxu0 }
 0x1e3   :  { %v722_v32 = vadd.f32 %v721_v25, %v5760_v1  ;;  %v1229_v33 = vadd.f32 %v1228_v28, %v5765_v6 }
 0x1e4   :  { %v3002_v42 = vmax.f32 %v888_v24, 0.0  ;;  %v3003_v29 = vmax.f32 %v1057_v26, 0.0 }
 0x1e5   :  { %4622 = vmatmul.msk.bf16.gmra.mxu1 %vm341_vm1, %v5227_v27  ;;  %4718 = vmatmul.msk.bf16.gmra.mxu0 %vm341_vm1, %v5227_v27  ;;  %v3014_v39 = vmax.f32 %v722_v32, 0.0  ;;  %v3017_v40 = vmax.f32 %v1229_v33, 0.0 }
 0x1e6   :  { %v3785_v14 = vpack.c.bf16 %v3002_v42, %v3001_v34  ;;  %v3786_v0 = vpack.c.bf16 %v3004_v35, %v3003_v29  ;;  %4654 = vmatmul.msk.bf16.gmra.mxu2 %vm341_vm1, %v5227_v27  ;;  %4686 = vmatmul.msk.bf16.gmra.mxu3 %vm341_vm1, %v5227_v27  ;;  %v5229_v29 = vld [vmem:[%s7188_s0 + $0xb8] sm:$0xff] }
 0x1e8   :  { %4169 = vst [vmem:[#allocation8 + $0x4b0] sm:$0xff] %v3785_v14 }
 0x1e9   :  { %4170 = vst [vmem:[#allocation8 + $0x4b8] sm:$0xff] %v3786_v0  ;;  %v890_v36 = vpop.f32.mrf.mxu2  ;;  %v1059_v37 = vpop.f32.mrf.mxu3 }
 0x1ea   :  { %v891_v41 = vadd.f32 %v890_v36, %v5773_v15  ;;  %v1060_v43 = vadd.f32 %v1059_v37, %v5781_v18  ;;  %v723_v44 = vpop.f32.mrf.mxu1  ;;  %v1230_v45 = vpop.f32.mrf.mxu0 }
 0x1eb   :  { %v724_v50 = vadd.f32 %v723_v44, %v5760_v1  ;;  %v1231_v51 = vadd.f32 %v1230_v45, %v5765_v6 }
 0x1ec   :  { %v3015_v46 = vmax.f32 %v891_v41, 0.0  ;;  %v3016_v47 = vmax.f32 %v1060_v43, 0.0 }
 0x1ed   :  { %v3027_v58 = vmax.f32 %v724_v50, 0.0  ;;  %v3030_v59 = vmax.f32 %v1231_v51, 0.0 }
 0x1ee   :  { %v3791_v48 = vpack.c.bf16 %v3015_v46, %v3014_v39  ;;  %v3792_v49 = vpack.c.bf16 %v3017_v40, %v3016_v47 }
 0x1f0   :  { %4175 = vst [vmem:[#allocation8 + $0x4e0] sm:$0xff] %v3791_v48 }
 0x1f1   :  { %4176 = vst [vmem:[#allocation8 + $0x4e8] sm:$0xff] %v3792_v49  ;;  %v892_v52 = vpop.f32.mrf.mxu2  ;;  %v1061_v53 = vpop.f32.mrf.mxu3 }
 0x1f2   :  { %v893_v55 = vadd.f32 %v892_v52, %v5773_v15  ;;  %v1062_v56 = vadd.f32 %v1061_v53, %v5781_v18  ;;  %v726_v22 = vpop.f32.mrf.mxu1  ;;  %v1233_v57 = vpop.f32.mrf.mxu0 }
 0x1f3   :  { %v727_v31 = vadd.f32 %v726_v22, %v5760_v1  ;;  %v1234_v61 = vadd.f32 %v1233_v57, %v5765_v6 }
 0x1f4   :  { %v3028_v30 = vmax.f32 %v893_v55, 0.0  ;;  %v3029_v60 = vmax.f32 %v1062_v56, 0.0 }
 0x1f5   :  { %4623 = vmatmul.msk.bf16.gmra.mxu1 %vm341_vm1, %v5228_v54  ;;  %4719 = vmatmul.msk.bf16.gmra.mxu0 %vm341_vm1, %v5228_v54  ;;  %v3040_v2 = vmax.f32 %v727_v31, 0.0  ;;  %v3043_v4 = vmax.f32 %v1234_v61, 0.0 }
 0x1f6   :  { %v3797_v38 = vpack.c.bf16 %v3028_v30, %v3027_v58  ;;  %v3798_v23 = vpack.c.bf16 %v3030_v59, %v3029_v60  ;;  %4655 = vmatmul.msk.bf16.gmra.mxu2 %vm341_vm1, %v5228_v54  ;;  %4687 = vmatmul.msk.bf16.gmra.mxu3 %vm341_vm1, %v5228_v54  ;;  %v5230_v60 = vld [vmem:[%s7188_s0 + $0xc0] sm:$0xff] }
 0x1f8   :  { %4181 = vst [vmem:[#allocation8 + $0x510] sm:$0xff] %v3797_v38 }
 0x1f9   :  { %4182 = vst [vmem:[#allocation8 + $0x518] sm:$0xff] %v3798_v23  ;;  %v895_v62 = vpop.f32.mrf.mxu2  ;;  %v1064_v63 = vpop.f32.mrf.mxu3 }
 0x1fa   :  { %v896_v5 = vadd.f32 %v895_v62, %v5773_v15  ;;  %v1065_v7 = vadd.f32 %v1064_v63, %v5781_v18  ;;  %v728_v8 = vpop.f32.mrf.mxu1  ;;  %v1235_v9 = vpop.f32.mrf.mxu0 }
 0x1fb   :  { %v729_v16 = vadd.f32 %v728_v8, %v5760_v1  ;;  %v1236_v17 = vadd.f32 %v1235_v9, %v5765_v6 }
 0x1fc   :  { %v3041_v10 = vmax.f32 %v896_v5, 0.0  ;;  %v3042_v11 = vmax.f32 %v1065_v7, 0.0 }
 0x1fd   :  { %v3053_v25 = vmax.f32 %v729_v16, 0.0  ;;  %v3056_v28 = vmax.f32 %v1236_v17, 0.0 }
 0x1fe   :  { %v3803_v12 = vpack.c.bf16 %v3041_v10, %v3040_v2  ;;  %v3804_v3 = vpack.c.bf16 %v3043_v4, %v3042_v11 }
 0x200   :  { %4187 = vst [vmem:[#allocation8 + $0x540] sm:$0xff] %v3803_v12 }
 0x201   :  { %4188 = vst [vmem:[#allocation8 + $0x548] sm:$0xff] %v3804_v3  ;;  %v897_v19 = vpop.f32.mrf.mxu2  ;;  %v1066_v13 = vpop.f32.mrf.mxu3 }
 0x202   :  { %v898_v20 = vadd.f32 %v897_v19, %v5773_v15  ;;  %v1067_v21 = vadd.f32 %v1066_v13, %v5781_v18  ;;  %v731_v24 = vpop.f32.mrf.mxu1  ;;  %v1238_v26 = vpop.f32.mrf.mxu0 }
 0x203   :  { %v732_v42 = vadd.f32 %v731_v24, %v5760_v1  ;;  %v1239_v14 = vadd.f32 %v1238_v26, %v5765_v6 }
 0x204   :  { %v3054_v34 = vmax.f32 %v898_v20, 0.0  ;;  %v3055_v35 = vmax.f32 %v1067_v21, 0.0 }
 0x205   :  { %4624 = vmatmul.msk.bf16.gmra.mxu1 %vm341_vm1, %v5229_v29  ;;  %4720 = vmatmul.msk.bf16.gmra.mxu0 %vm341_vm1, %v5229_v29  ;;  %v3066_v36 = vmax.f32 %v732_v42, 0.0  ;;  %v3069_v37 = vmax.f32 %v1239_v14, 0.0 }
 0x206   :  { %v3809_v32 = vpack.c.bf16 %v3054_v34, %v3053_v25  ;;  %v3810_v27 = vpack.c.bf16 %v3056_v28, %v3055_v35  ;;  %4656 = vmatmul.msk.bf16.gmra.mxu2 %vm341_vm1, %v5229_v29  ;;  %4688 = vmatmul.msk.bf16.gmra.mxu3 %vm341_vm1, %v5229_v29  ;;  %v5231_v35 = vld [vmem:[%s7188_s0 + $0xc8] sm:$0xff] }
 0x208   :  { %4193 = vst [vmem:[#allocation8 + $0x570] sm:$0xff] %v3809_v32 }
 0x209   :  { %4194 = vst [vmem:[#allocation8 + $0x578] sm:$0xff] %v3810_v27  ;;  %v900_v0 = vpop.f32.mrf.mxu2  ;;  %v1069_v33 = vpop.f32.mrf.mxu3 }
 0x20a   :  { %v901_v39 = vadd.f32 %v900_v0, %v5773_v15  ;;  %v1070_v40 = vadd.f32 %v1069_v33, %v5781_v18  ;;  %v733_v41 = vpop.f32.mrf.mxu1  ;;  %v1240_v43 = vpop.f32.mrf.mxu0 }
 0x20b   :  { %v734_v48 = vadd.f32 %v733_v41, %v5760_v1  ;;  %v1241_v49 = vadd.f32 %v1240_v43, %v5765_v6 }
 0x20c   :  { %v3067_v44 = vmax.f32 %v901_v39, 0.0  ;;  %v3068_v45 = vmax.f32 %v1070_v40, 0.0 }
 0x20d   :  { %v3079_v22 = vmax.f32 %v734_v48, 0.0  ;;  %v3082_v57 = vmax.f32 %v1241_v49, 0.0 }
 0x20e   :  { %v3815_v46 = vpack.c.bf16 %v3067_v44, %v3066_v36  ;;  %v3816_v47 = vpack.c.bf16 %v3069_v37, %v3068_v45 }
 0x210   :  { %4199 = vst [vmem:[#allocation8 + $0x5a0] sm:$0xff] %v3815_v46 }
 0x211   :  { %4200 = vst [vmem:[#allocation8 + $0x5a8] sm:$0xff] %v3816_v47  ;;  %v902_v50 = vpop.f32.mrf.mxu2  ;;  %v1071_v51 = vpop.f32.mrf.mxu3 }
 0x212   :  { %v903_v52 = vadd.f32 %v902_v50, %v5773_v15  ;;  %v1072_v53 = vadd.f32 %v1071_v51, %v5781_v18  ;;  %v736_v55 = vpop.f32.mrf.mxu1  ;;  %v1243_v56 = vpop.f32.mrf.mxu0 }
 0x213   :  { %v737_v30 = vadd.f32 %v736_v55, %v5760_v1  ;;  %v1244_v38 = vadd.f32 %v1243_v56, %v5765_v6 }
 0x214   :  { %v3080_v58 = vmax.f32 %v903_v52, 0.0  ;;  %v3081_v59 = vmax.f32 %v1072_v53, 0.0 }
 0x215   :  { %4625 = vmatmul.msk.bf16.gmra.mxu1 %vm341_vm1, %v5230_v60  ;;  %4721 = vmatmul.msk.bf16.gmra.mxu0 %vm341_vm1, %v5230_v60  ;;  %v3092_v62 = vmax.f32 %v737_v30, 0.0  ;;  %v3095_v63 = vmax.f32 %v1244_v38, 0.0 }
 0x216   :  { %v3821_v31 = vpack.c.bf16 %v3080_v58, %v3079_v22  ;;  %v3822_v54 = vpack.c.bf16 %v3082_v57, %v3081_v59  ;;  %4657 = vmatmul.msk.bf16.gmra.mxu2 %vm341_vm1, %v5230_v60  ;;  %4689 = vmatmul.msk.bf16.gmra.mxu3 %vm341_vm1, %v5230_v60  ;;  %v5232_v59 = vld [vmem:[%s7188_s0 + $0xd0] sm:$0xff] }
 0x218   :  { %4205 = vst [vmem:[#allocation8 + $0x5d0] sm:$0xff] %v3821_v31 }
 0x219   :  { %4206 = vst [vmem:[#allocation8 + $0x5d8] sm:$0xff] %v3822_v54  ;;  %v905_v23 = vpop.f32.mrf.mxu2  ;;  %v1074_v61 = vpop.f32.mrf.mxu3 }
 0x21a   :  { %v906_v2 = vadd.f32 %v905_v23, %v5773_v15  ;;  %v1075_v4 = vadd.f32 %v1074_v61, %v5781_v18  ;;  %v738_v5 = vpop.f32.mrf.mxu1  ;;  %v1245_v7 = vpop.f32.mrf.mxu0 }
 0x21b   :  { %v739_v12 = vadd.f32 %v738_v5, %v5760_v1  ;;  %v1246_v3 = vadd.f32 %v1245_v7, %v5765_v6 }
 0x21c   :  { %v3093_v8 = vmax.f32 %v906_v2, 0.0  ;;  %v3094_v9 = vmax.f32 %v1075_v4, 0.0 }
 0x21d   :  { %v3105_v24 = vmax.f32 %v739_v12, 0.0  ;;  %v3108_v26 = vmax.f32 %v1246_v3, 0.0 }
 0x21e   :  { %v3827_v10 = vpack.c.bf16 %v3093_v8, %v3092_v62  ;;  %v3828_v11 = vpack.c.bf16 %v3095_v63, %v3094_v9 }
 0x220   :  { %4211 = vst [vmem:[#allocation8 + $0x600] sm:$0xff] %v3827_v10 }
 0x221   :  { %4212 = vst [vmem:[#allocation8 + $0x608] sm:$0xff] %v3828_v11  ;;  %v907_v16 = vpop.f32.mrf.mxu2  ;;  %v1076_v17 = vpop.f32.mrf.mxu3 }
 0x222   :  { %v908_v19 = vadd.f32 %v907_v16, %v5773_v15  ;;  %v1077_v13 = vadd.f32 %v1076_v17, %v5781_v18  ;;  %v741_v20 = vpop.f32.mrf.mxu1  ;;  %v1248_v21 = vpop.f32.mrf.mxu0 }
 0x223   :  { %v742_v34 = vadd.f32 %v741_v20, %v5760_v1  ;;  %v1249_v32 = vadd.f32 %v1248_v21, %v5765_v6 }
 0x224   :  { %v3106_v25 = vmax.f32 %v908_v19, 0.0  ;;  %v3107_v28 = vmax.f32 %v1077_v13, 0.0 }
 0x225   :  { %4626 = vmatmul.msk.bf16.gmra.mxu1 %vm341_vm1, %v5231_v35  ;;  %4722 = vmatmul.msk.bf16.gmra.mxu0 %vm341_vm1, %v5231_v35  ;;  %v3118_v0 = vmax.f32 %v742_v34, 0.0  ;;  %v3121_v33 = vmax.f32 %v1249_v32, 0.0 }
 0x226   :  { %v3833_v42 = vpack.c.bf16 %v3106_v25, %v3105_v24  ;;  %v3834_v29 = vpack.c.bf16 %v3108_v26, %v3107_v28  ;;  %4658 = vmatmul.msk.bf16.gmra.mxu2 %vm341_vm1, %v5231_v35  ;;  %4690 = vmatmul.msk.bf16.gmra.mxu3 %vm341_vm1, %v5231_v35  ;;  %v5233_v28 = vld [vmem:[%s7188_s0 + $0xd8] sm:$0xff] }
 0x228   :  { %4217 = vst [vmem:[#allocation8 + $0x630] sm:$0xff] %v3833_v42 }
 0x229   :  { %4218 = vst [vmem:[#allocation8 + $0x638] sm:$0xff] %v3834_v29  ;;  %v910_v27 = vpop.f32.mrf.mxu2  ;;  %v1079_v14 = vpop.f32.mrf.mxu3 }
 0x22a   :  { %v911_v36 = vadd.f32 %v910_v27, %v5773_v15  ;;  %v1080_v37 = vadd.f32 %v1079_v14, %v5781_v18  ;;  %v743_v39 = vpop.f32.mrf.mxu1  ;;  %v1250_v40 = vpop.f32.mrf.mxu0 }
 0x22b   :  { %v744_v46 = vadd.f32 %v743_v39, %v5760_v1  ;;  %v1251_v47 = vadd.f32 %v1250_v40, %v5765_v6 }
 0x22c   :  { %v3119_v41 = vmax.f32 %v911_v36, 0.0  ;;  %v3120_v43 = vmax.f32 %v1080_v37, 0.0 }
 0x22d   :  { %v3131_v55 = vmax.f32 %v744_v46, 0.0  ;;  %v3134_v56 = vmax.f32 %v1251_v47, 0.0 }
 0x22e   :  { %v3839_v44 = vpack.c.bf16 %v3119_v41, %v3118_v0  ;;  %v3840_v45 = vpack.c.bf16 %v3121_v33, %v3120_v43 }
 0x230   :  { %4223 = vst [vmem:[#allocation8 + $0x660] sm:$0xff] %v3839_v44 }
 0x231   :  { %4224 = vst [vmem:[#allocation8 + $0x668] sm:$0xff] %v3840_v45  ;;  %v912_v48 = vpop.f32.mrf.mxu2  ;;  %v1081_v49 = vpop.f32.mrf.mxu3 }
 0x232   :  { %v913_v50 = vadd.f32 %v912_v48, %v5773_v15  ;;  %v1082_v51 = vadd.f32 %v1081_v49, %v5781_v18  ;;  %v746_v52 = vpop.f32.mrf.mxu1  ;;  %v1253_v53 = vpop.f32.mrf.mxu0 }
 0x233   :  { %v747_v58 = vadd.f32 %v746_v52, %v5760_v1  ;;  %v1254_v31 = vadd.f32 %v1253_v53, %v5765_v6 }
 0x234   :  { %v3132_v22 = vmax.f32 %v913_v50, 0.0  ;;  %v3133_v57 = vmax.f32 %v1082_v51, 0.0 }
 0x235   :  { %4627 = vmatmul.msk.bf16.gmra.mxu1 %vm341_vm1, %v5232_v59  ;;  %4723 = vmatmul.msk.bf16.gmra.mxu0 %vm341_vm1, %v5232_v59  ;;  %v3144_v23 = vmax.f32 %v747_v58, 0.0  ;;  %v3147_v61 = vmax.f32 %v1254_v31, 0.0 }
 0x236   :  { %v3845_v30 = vpack.c.bf16 %v3132_v22, %v3131_v55  ;;  %v3846_v60 = vpack.c.bf16 %v3134_v56, %v3133_v57  ;;  %4659 = vmatmul.msk.bf16.gmra.mxu2 %vm341_vm1, %v5232_v59  ;;  %4691 = vmatmul.msk.bf16.gmra.mxu3 %vm341_vm1, %v5232_v59  ;;  %v5234_v57 = vld [vmem:[%s7188_s0 + $0xe0] sm:$0xff] }
 0x238   :  { %4229 = vst [vmem:[#allocation8 + $0x690] sm:$0xff] %v3845_v30 }
 0x239   :  { %4230 = vst [vmem:[#allocation8 + $0x698] sm:$0xff] %v3846_v60  ;;  %v915_v54 = vpop.f32.mrf.mxu2  ;;  %v1084_v38 = vpop.f32.mrf.mxu3 }
 0x23a   :  { %v916_v62 = vadd.f32 %v915_v54, %v5773_v15  ;;  %v1085_v63 = vadd.f32 %v1084_v38, %v5781_v18  ;;  %v748_v2 = vpop.f32.mrf.mxu1  ;;  %v1255_v4 = vpop.f32.mrf.mxu0 }
 0x23b   :  { %v749_v10 = vadd.f32 %v748_v2, %v5760_v1  ;;  %v1256_v11 = vadd.f32 %v1255_v4, %v5765_v6 }
 0x23c   :  { %v3145_v5 = vmax.f32 %v916_v62, 0.0  ;;  %v3146_v7 = vmax.f32 %v1085_v63, 0.0 }
 0x23d   :  { %v3157_v20 = vmax.f32 %v749_v10, 0.0  ;;  %v3160_v21 = vmax.f32 %v1256_v11, 0.0 }
 0x23e   :  { %v3851_v8 = vpack.c.bf16 %v3145_v5, %v3144_v23  ;;  %v3852_v9 = vpack.c.bf16 %v3147_v61, %v3146_v7 }
 0x240   :  { %4235 = vst [vmem:[#allocation8 + $0x6c0] sm:$0xff] %v3851_v8 }
 0x241   :  { %4236 = vst [vmem:[#allocation8 + $0x6c8] sm:$0xff] %v3852_v9  ;;  %v917_v12 = vpop.f32.mrf.mxu2  ;;  %v1086_v3 = vpop.f32.mrf.mxu3 }
 0x242   :  { %v918_v16 = vadd.f32 %v917_v12, %v5773_v15  ;;  %v1087_v17 = vadd.f32 %v1086_v3, %v5781_v18  ;;  %v751_v19 = vpop.f32.mrf.mxu1  ;;  %v1258_v13 = vpop.f32.mrf.mxu0 }
 0x243   :  { %v752_v25 = vadd.f32 %v751_v19, %v5760_v1  ;;  %v1259_v42 = vadd.f32 %v1258_v13, %v5765_v6 }
 0x244   :  { %v3158_v24 = vmax.f32 %v918_v16, 0.0  ;;  %v3159_v26 = vmax.f32 %v1087_v17, 0.0 }
 0x245   :  { %4628 = vmatmul.msk.bf16.gmra.mxu1 %vm341_vm1, %v5233_v28  ;;  %4724 = vmatmul.msk.bf16.gmra.mxu0 %vm341_vm1, %v5233_v28  ;;  %v3170_v27 = vmax.f32 %v752_v25, 0.0  ;;  %v3173_v14 = vmax.f32 %v1259_v42, 0.0 }
 0x246   :  { %v3857_v34 = vpack.c.bf16 %v3158_v24, %v3157_v20  ;;  %v3858_v35 = vpack.c.bf16 %v3160_v21, %v3159_v26  ;;  %4660 = vmatmul.msk.bf16.gmra.mxu2 %vm341_vm1, %v5233_v28  ;;  %4692 = vmatmul.msk.bf16.gmra.mxu3 %vm341_vm1, %v5233_v28  ;;  %v5235_v26 = vld [vmem:[%s7188_s0 + $0xe8] sm:$0xff] }
 0x248   :  { %4241 = vst [vmem:[#allocation8 + $0x6f0] sm:$0xff] %v3857_v34 }
 0x249   :  { %4242 = vst [vmem:[#allocation8 + $0x6f8] sm:$0xff] %v3858_v35  ;;  %v920_v29 = vpop.f32.mrf.mxu2  ;;  %v1089_v32 = vpop.f32.mrf.mxu3 }
 0x24a   :  { %v921_v0 = vadd.f32 %v920_v29, %v5773_v15  ;;  %v1090_v33 = vadd.f32 %v1089_v32, %v5781_v18  ;;  %v753_v36 = vpop.f32.mrf.mxu1  ;;  %v1260_v37 = vpop.f32.mrf.mxu0 }
 0x24b   :  { %v754_v44 = vadd.f32 %v753_v36, %v5760_v1  ;;  %v1261_v45 = vadd.f32 %v1260_v37, %v5765_v6 }
 0x24c   :  { %v3171_v39 = vmax.f32 %v921_v0, 0.0  ;;  %v3172_v40 = vmax.f32 %v1090_v33, 0.0 }
 0x24d   :  { %v3183_v52 = vmax.f32 %v754_v44, 0.0  ;;  %v3186_v53 = vmax.f32 %v1261_v45, 0.0 }
 0x24e   :  { %v3863_v41 = vpack.c.bf16 %v3171_v39, %v3170_v27  ;;  %v3864_v43 = vpack.c.bf16 %v3173_v14, %v3172_v40 }
 0x250   :  { %4247 = vst [vmem:[#allocation8 + $0x720] sm:$0xff] %v3863_v41 }
 0x251   :  { %4248 = vst [vmem:[#allocation8 + $0x728] sm:$0xff] %v3864_v43  ;;  %v922_v46 = vpop.f32.mrf.mxu2  ;;  %v1091_v47 = vpop.f32.mrf.mxu3 }
 0x252   :  { %v923_v48 = vadd.f32 %v922_v46, %v5773_v15  ;;  %v1092_v49 = vadd.f32 %v1091_v47, %v5781_v18  ;;  %v756_v50 = vpop.f32.mrf.mxu1  ;;  %v1263_v51 = vpop.f32.mrf.mxu0 }
 0x253   :  { %v757_v22 = vadd.f32 %v756_v50, %v5760_v1  ;;  %v1264_v30 = vadd.f32 %v1263_v51, %v5765_v6 }
 0x254   :  { %v3184_v55 = vmax.f32 %v923_v48, 0.0  ;;  %v3185_v56 = vmax.f32 %v1092_v49, 0.0 }
 0x255   :  { %4629 = vmatmul.msk.bf16.gmra.mxu1 %vm341_vm1, %v5234_v57  ;;  %4725 = vmatmul.msk.bf16.gmra.mxu0 %vm341_vm1, %v5234_v57  ;;  %v3196_v54 = vmax.f32 %v757_v22, 0.0  ;;  %v3199_v38 = vmax.f32 %v1264_v30, 0.0  ;;  %v5236_v22 = vld [vmem:[%s7188_s0 + $0xf0] sm:$0xff] }
 0x256   :  { %v3869_v58 = vpack.c.bf16 %v3184_v55, %v3183_v52  ;;  %v3870_v59 = vpack.c.bf16 %v3186_v53, %v3185_v56  ;;  %4661 = vmatmul.msk.bf16.gmra.mxu2 %vm341_vm1, %v5234_v57  ;;  %4693 = vmatmul.msk.bf16.gmra.mxu3 %vm341_vm1, %v5234_v57 }
 0x258   :  { %4253 = vst [vmem:[#allocation8 + $0x750] sm:$0xff] %v3869_v58 }
 0x259   :  { %4254 = vst [vmem:[#allocation8 + $0x758] sm:$0xff] %v3870_v59  ;;  %v925_v60 = vpop.f32.mrf.mxu2  ;;  %v1094_v31 = vpop.f32.mrf.mxu3 }
 0x25a   :  { %v926_v23 = vadd.f32 %v925_v60, %v5773_v15  ;;  %v1095_v61 = vadd.f32 %v1094_v31, %v5781_v18  ;;  %v758_v62 = vpop.f32.mrf.mxu1  ;;  %v1265_v63 = vpop.f32.mrf.mxu0 }
 0x25b   :  { %v759_v8 = vadd.f32 %v758_v62, %v5760_v1  ;;  %v1266_v9 = vadd.f32 %v1265_v63, %v5765_v6 }
 0x25c   :  { %v3197_v2 = vmax.f32 %v926_v23, 0.0  ;;  %v3198_v4 = vmax.f32 %v1095_v61, 0.0 }
 0x25d   :  { %v3209_v19 = vmax.f32 %v759_v8, 0.0  ;;  %v3212_v13 = vmax.f32 %v1266_v9, 0.0 }
 0x25e   :  { %v3875_v5 = vpack.c.bf16 %v3197_v2, %v3196_v54  ;;  %v3876_v7 = vpack.c.bf16 %v3199_v38, %v3198_v4  ;;  %v116_v54 = vld [vmem:[#allocation2 + $0x28] sm:$0xff] }
 0x25f   :  { %v325_v63 = vunpack.c.l.b16 %v116_v54  ;;  %v326_v2 = vunpack.c.h.b16 %v116_v54 }
 0x260   :  { %4259 = vst [vmem:[#allocation8 + $0x780] sm:$0xff] %v3875_v5 }
 0x261   :  { %4260 = vst [vmem:[#allocation8 + $0x788] sm:$0xff] %v3876_v7  ;;  %v927_v10 = vpop.f32.mrf.mxu2  ;;  %v1096_v11 = vpop.f32.mrf.mxu3  ;;  %v338_v7 = vpack.c.b16 %v325_v63, %v325_v63  ;;  %v339_v8 = vpack.c.b16 %v326_v2, %v326_v2  ;;  %v5239_v63 = vld [vmem:[%s7188_s0] sm:$0xff] }
 0x262   :  { %v928_v12 = vadd.f32 %v927_v10, %v5773_v15  ;;  %v1097_v3 = vadd.f32 %v1096_v11, %v5781_v18  ;;  %v761_v16 = vpop.f32.mrf.mxu1  ;;  %v1268_v17 = vpop.f32.mrf.mxu0 }
 0x263   :  { %v762_v24 = vadd.f32 %v761_v16, %v5760_v1  ;;  %v1269_v34 = vadd.f32 %v1268_v17, %v5765_v6  ;;  %v470_v11 = vsel %vm438_vm0, %v338_v7, 0 }
 0x264   :  { %v3210_v20 = vmax.f32 %v928_v12, 0.0  ;;  %v3211_v21 = vmax.f32 %v1097_v3, 0.0  ;;  %v473_v12 = vsel %vm438_vm0, %v339_v8, 0  ;;  %2175 = vmatpush.bf16.msrb.mxu2 %v470_v11 }
 0x265   :  { %4630 = vmatmul.msk.bf16.gmra.mxu1 %vm341_vm1, %v5235_v26  ;;  %4726 = vmatmul.msk.bf16.gmra.mxu0 %vm341_vm1, %v5235_v26  ;;  %v3222_v29 = vmax.f32 %v762_v24, 0.0  ;;  %v3225_v32 = vmax.f32 %v1269_v34, 0.0 }
 0x266   :  { %v3881_v25 = vpack.c.bf16 %v3210_v20, %v3209_v19  ;;  %v3882_v28 = vpack.c.bf16 %v3212_v13, %v3211_v21  ;;  %4662 = vmatmul.msk.bf16.gmra.mxu2 %vm341_vm1, %v5235_v26  ;;  %4694 = vmatmul.msk.bf16.gmra.mxu3 %vm341_vm1, %v5235_v26  ;;  %v5237_v13 = vld [vmem:[#allocation2 + $0x20] sm:$0xff]  ;;  %v117_v21 = vld [vmem:[#allocation2 + $0x30] sm:$0xf] }
 0x267   :  { %2344 = vmatpush.bf16.msrb.mxu3 %v473_v12  ;;  %v324_v20 = vunpack.c.h.b16 %v5237_v13  ;;  %v327_v34 = vunpack.c.l.b16 %v117_v21 }
 0x268   :  { %4265 = vst [vmem:[#allocation8 + $0x7b0] sm:$0xff] %v3881_v25 }
 0x269   :  { %4266 = vst [vmem:[#allocation8 + $0x7b8] sm:$0xff] %v3882_v28  ;;  %v930_v35 = vpop.f32.mrf.mxu2  ;;  %v1099_v42 = vpop.f32.mrf.mxu3 }
 0x26a   :  { %v931_v27 = vadd.f32 %v930_v35, %v5773_v15  ;;  %v1100_v14 = vadd.f32 %v1099_v42, %v5781_v18  ;;  %v763_v0 = vpop.f32.mrf.mxu1  ;;  %v1270_v33 = vpop.f32.mrf.mxu0  ;;  %v337_v42 = vpack.c.b16 %v324_v20, %v324_v20 }
 0x26b   :  { %v764_v41 = vadd.f32 %v763_v0, %v5760_v1  ;;  %v1271_v43 = vadd.f32 %v1270_v33, %v5765_v6  ;;  %v5238_v33 = vld [vmem:[%s7188_s0 + $0xf8] sm:$0xff] }
 0x26c   :  { %v3223_v36 = vmax.f32 %v931_v27, 0.0  ;;  %v3224_v37 = vmax.f32 %v1100_v14, 0.0  ;;  %v340_v14 = vpack.c.b16 %v327_v34, %v327_v34 }
 0x26d   :  { %v3235_v50 = vmax.f32 %v764_v41, 0.0  ;;  %v3238_v51 = vmax.f32 %v1271_v43, 0.0 }
 0x26e   :  { %v3887_v39 = vpack.c.bf16 %v3223_v36, %v3222_v29  ;;  %v3888_v40 = vpack.c.bf16 %v3225_v32, %v3224_v37  ;;  %v467_v36 = vsel %vm438_vm0, %v337_v42, 0  ;;  %v476_v41 = vsel %vm438_vm0, %v340_v14, 0 }
 0x26f   :  { %2006 = vmatpush.bf16.msrb.mxu1 %v467_v36  ;;  %2513 = vmatpush.bf16.msrb.mxu0 %v476_v41 }
 0x270   :  { %4271 = vst [vmem:[#allocation8 + $0x7e0] sm:$0xff] %v3887_v39 }
 0x271   :  { %4272 = vst [vmem:[#allocation8 + $0x7e8] sm:$0xff] %v3888_v40  ;;  %v932_v44 = vpop.f32.mrf.mxu2  ;;  %v1101_v45 = vpop.f32.mrf.mxu3 }
 0x272   :  { %v933_v46 = vadd.f32 %v932_v44, %v5773_v15  ;;  %v1102_v47 = vadd.f32 %v1101_v45, %v5781_v18  ;;  %v766_v48 = vpop.f32.mrf.mxu1  ;;  %v1273_v49 = vpop.f32.mrf.mxu0 }
 0x273   :  { %v767_v55 = vadd.f32 %v766_v48, %v5760_v1  ;;  %v1274_v56 = vadd.f32 %v1273_v49, %v5765_v6 }
 0x274   :  { %v3236_v52 = vmax.f32 %v933_v46, 0.0  ;;  %v3237_v53 = vmax.f32 %v1102_v47, 0.0 }
 0x275   :  { %4631 = vmatmul.msk.bf16.gmra.mxu1 %vm341_vm1, %v5236_v22  ;;  %4727 = vmatmul.msk.bf16.gmra.mxu0 %vm341_vm1, %v5236_v22  ;;  %v3248_v59 = vmax.f32 %v767_v55, 0.0  ;;  %v3251_v30 = vmax.f32 %v1274_v56, 0.0 }
 0x276   :  { %v3893_v57 = vpack.c.bf16 %v3236_v52, %v3235_v50  ;;  %v3894_v58 = vpack.c.bf16 %v3238_v51, %v3237_v53  ;;  %4663 = vmatmul.msk.bf16.gmra.mxu2 %vm341_vm1, %v5236_v22  ;;  %4695 = vmatmul.msk.bf16.gmra.mxu3 %vm341_vm1, %v5236_v22 }
 0x278   :  { %4277 = vst [vmem:[#allocation8 + $0x810] sm:$0xff] %v3893_v57 }
 0x279   :  { %4278 = vst [vmem:[#allocation8 + $0x818] sm:$0xff] %v3894_v58  ;;  %v935_v60 = vpop.f32.mrf.mxu2  ;;  %v1104_v31 = vpop.f32.mrf.mxu3 }
 0x27a   :  { %v936_v38 = vadd.f32 %v935_v60, %v5773_v15  ;;  %v1105_v23 = vadd.f32 %v1104_v31, %v5781_v18  ;;  %v768_v61 = vpop.f32.mrf.mxu1  ;;  %v1275_v62 = vpop.f32.mrf.mxu0 }
 0x27b   :  { %v769_v3 = vadd.f32 %v768_v61, %v5760_v1  ;;  %v1276_v16 = vadd.f32 %v1275_v62, %v5765_v6 }
 0x27c   :  { %v3249_v4 = vmax.f32 %v936_v38, 0.0  ;;  %v3250_v5 = vmax.f32 %v1105_v23, 0.0 }
 0x27d   :  { %v3261_v35 = vmax.f32 %v769_v3, 0.0  ;;  %v3264_v29 = vmax.f32 %v1276_v16, 0.0 }
 0x27e   :  { %v3899_v9 = vpack.c.bf16 %v3249_v4, %v3248_v59  ;;  %v3900_v10 = vpack.c.bf16 %v3251_v30, %v3250_v5 }
 0x280   :  { %4283 = vst [vmem:[#allocation8 + $0x840] sm:$0xff] %v3899_v9 }
 0x281   :  { %4284 = vst [vmem:[#allocation8 + $0x848] sm:$0xff] %v3900_v10  ;;  %v937_v17 = vpop.f32.mrf.mxu2  ;;  %v1106_v19 = vpop.f32.mrf.mxu3 }
 0x282   :  { %v938_v24 = vadd.f32 %v937_v17, %v5773_v15  ;;  %v1107_v26 = vadd.f32 %v1106_v19, %v5781_v18  ;;  %v771_v25 = vpop.f32.mrf.mxu1  ;;  %v1278_v28 = vpop.f32.mrf.mxu0 }
 0x283   :  { %v772_v0 = vadd.f32 %v771_v25, %v5760_v1  ;;  %v1279_v40 = vadd.f32 %v1278_v28, %v5765_v6 }
 0x284   :  { %v3262_v32 = vmax.f32 %v938_v24, 0.0  ;;  %v3263_v27 = vmax.f32 %v1107_v26, 0.0 }
 0x285   :  { %4632 = vmatmul.msk.bf16.gmra.mxu1 %vm341_vm1, %v5238_v33  ;;  %4728 = vmatmul.msk.bf16.gmra.mxu0 %vm341_vm1, %v5238_v33  ;;  %v3274_v45 = vmax.f32 %v772_v0, 0.0  ;;  %v3277_v46 = vmax.f32 %v1279_v40, 0.0 }
 0x286   :  { %v3905_v37 = vpack.c.bf16 %v3262_v32, %v3261_v35  ;;  %v3906_v39 = vpack.c.bf16 %v3264_v29, %v3263_v27  ;;  %4664 = vmatmul.msk.bf16.gmra.mxu2 %vm341_vm1, %v5238_v33  ;;  %4696 = vmatmul.msk.bf16.gmra.mxu3 %vm341_vm1, %v5238_v33  ;;  %v5240_v33 = vld [vmem:[%s7188_s0 + $0x8] sm:$0xff] }
 0x288   :  { %4289 = vst [vmem:[#allocation8 + $0x870] sm:$0xff] %v3905_v37 }
 0x289   :  { %4290 = vst [vmem:[#allocation8 + $0x878] sm:$0xff] %v3906_v39  ;;  %v940_v43 = vpop.f32.mrf.mxu2  ;;  %v1109_v44 = vpop.f32.mrf.mxu3 }
 0x28a   :  { %v941_v47 = vadd.f32 %v940_v43, %v5773_v15  ;;  %v1110_v48 = vadd.f32 %v1109_v44, %v5781_v18  ;;  %v773_v49 = vpop.f32.mrf.mxu1  ;;  %v1280_v50 = vpop.f32.mrf.mxu0 }
 0x28b   :  { %v774_v56 = vadd.f32 %v773_v49, %v5760_v1  ;;  %v1281_v22 = vadd.f32 %v1280_v50, %v5765_v6 }
 0x28c   :  { %v3275_v51 = vmax.f32 %v941_v47, 0.0  ;;  %v3276_v52 = vmax.f32 %v1110_v48, 0.0 }
 0x28d   :  { %v3287_v54 = vmax.f32 %v774_v56, 0.0  ;;  %v3290_v38 = vmax.f32 %v1281_v22, 0.0 }
 0x28e   :  { %v3911_v53 = vpack.c.bf16 %v3275_v51, %v3274_v45  ;;  %v3912_v55 = vpack.c.bf16 %v3277_v46, %v3276_v52 }
 0x290   :  { %4295 = vst [vmem:[#allocation8 + $0x8a0] sm:$0xff] %v3911_v53 }
 0x291   :  { %4296 = vst [vmem:[#allocation8 + $0x8a8] sm:$0xff] %v3912_v55  ;;  %v942_v57 = vpop.f32.mrf.mxu2  ;;  %v1111_v58 = vpop.f32.mrf.mxu3 }
 0x292   :  { %v943_v59 = vadd.f32 %v942_v57, %v5773_v15  ;;  %v1112_v30 = vadd.f32 %v1111_v58, %v5781_v18  ;;  %v776_v60 = vpop.f32.mrf.mxu1  ;;  %v1283_v31 = vpop.f32.mrf.mxu0 }
 0x293   :  { %v777_v62 = vadd.f32 %v776_v60, %v5760_v1  ;;  %v1284_v5 = vadd.f32 %v1283_v31, %v5765_v6 }
 0x294   :  { %v3288_v23 = vmax.f32 %v943_v59, 0.0  ;;  %v3289_v61 = vmax.f32 %v1112_v30, 0.0 }
 0x295   :  { %4729 = vmatmul.msk.bf16.vlgmr.msra.gmra.mxu1 %vm341_vm1, %v5239_v63  ;;  %4825 = vmatmul.msk.bf16.vlgmr.msra.gmra.mxu0 %vm341_vm1, %v5239_v63  ;;  %v3300_v9 = vmax.f32 %v777_v62, 0.0  ;;  %v3303_v10 = vmax.f32 %v1284_v5, 0.0 }
 0x296   :  { %v3917_v2 = vpack.c.bf16 %v3288_v23, %v3287_v54  ;;  %v3918_v4 = vpack.c.bf16 %v3290_v38, %v3289_v61  ;;  %4761 = vmatmul.msk.bf16.vlgmr.msra.gmra.mxu2 %vm341_vm1, %v5239_v63  ;;  %4793 = vmatmul.msk.bf16.vlgmr.msra.gmra.mxu3 %vm341_vm1, %v5239_v63  ;;  %v5241_v61 = vld [vmem:[%s7188_s0 + $0x10] sm:$0xff] }
 0x298   :  { %4301 = vst [vmem:[#allocation8 + $0x8d0] sm:$0xff] %v3917_v2 }
 0x299   :  { %4302 = vst [vmem:[#allocation8 + $0x8d8] sm:$0xff] %v3918_v4  ;;  %v945_v7 = vpop.f32.mrf.mxu2  ;;  %v1114_v8 = vpop.f32.mrf.mxu3 }
 0x29a   :  { %v946_v11 = vadd.f32 %v945_v7, %v5773_v15  ;;  %v1115_v12 = vadd.f32 %v1114_v8, %v5781_v18  ;;  %v778_v3 = vpop.f32.mrf.mxu1  ;;  %v1285_v16 = vpop.f32.mrf.mxu0 }
 0x29b   :  { %v779_v21 = vadd.f32 %v778_v3, %v5760_v1  ;;  %v1286_v24 = vadd.f32 %v1285_v16, %v5765_v6 }
 0x29c   :  { %v3301_v17 = vmax.f32 %v946_v11, 0.0  ;;  %v3302_v19 = vmax.f32 %v1115_v12, 0.0 }
 0x29d   :  { %v3313_v29 = vmax.f32 %v779_v21, 0.0  ;;  %v3316_v32 = vmax.f32 %v1286_v24, 0.0 }
 0x29e   :  { %v3923_v13 = vpack.c.bf16 %v3301_v17, %v3300_v9  ;;  %v3924_v20 = vpack.c.bf16 %v3303_v10, %v3302_v19 }
 0x2a0   :  { %4307 = vst [vmem:[#allocation8 + $0x900] sm:$0xff] %v3923_v13 }
 0x2a1   :  { %4308 = vst [vmem:[#allocation8 + $0x908] sm:$0xff] %v3924_v20  ;;  %v947_v26 = vpop.f32.mrf.mxu2  ;;  %v1116_v25 = vpop.f32.mrf.mxu3 }
 0x2a2   :  { %v948_v28 = vadd.f32 %v947_v26, %v5773_v15  ;;  %v1117_v34 = vadd.f32 %v1116_v25, %v5781_v18  ;;  %v781_v35 = vpop.f32.mrf.mxu1  ;;  %v1288_v42 = vpop.f32.mrf.mxu0 }
 0x2a3   :  { %v782_v0 = vadd.f32 %v781_v35, %v5760_v1  ;;  %v1289_v39 = vadd.f32 %v1288_v42, %v5765_v6 }
 0x2a4   :  { %v3314_v27 = vmax.f32 %v948_v28, 0.0  ;;  %v3315_v14 = vmax.f32 %v1117_v34, 0.0 }
 0x2a5   :  { %4730 = vmatmul.msk.bf16.gmra.mxu1 %vm341_vm1, %v5240_v33  ;;  %4826 = vmatmul.msk.bf16.gmra.mxu0 %vm341_vm1, %v5240_v33  ;;  %v3326_v43 = vmax.f32 %v782_v0, 0.0  ;;  %v3329_v44 = vmax.f32 %v1289_v39, 0.0 }
 0x2a6   :  { %v3929_v36 = vpack.c.bf16 %v3314_v27, %v3313_v29  ;;  %v3930_v37 = vpack.c.bf16 %v3316_v32, %v3315_v14  ;;  %4762 = vmatmul.msk.bf16.gmra.mxu2 %vm341_vm1, %v5240_v33  ;;  %4794 = vmatmul.msk.bf16.gmra.mxu3 %vm341_vm1, %v5240_v33  ;;  %v5242_v14 = vld [vmem:[%s7188_s0 + $0x18] sm:$0xff] }
 0x2a8   :  { %4313 = vst [vmem:[#allocation8 + $0x930] sm:$0xff] %v3929_v36 }
 0x2a9   :  { %4314 = vst [vmem:[#allocation8 + $0x938] sm:$0xff] %v3930_v37  ;;  %v950_v40 = vpop.f32.mrf.mxu2  ;;  %v1119_v41 = vpop.f32.mrf.mxu3 }
 0x2aa   :  { %v951_v45 = vadd.f32 %v950_v40, %v5773_v15  ;;  %v1120_v46 = vadd.f32 %v1119_v41, %v5781_v18  ;;  %v783_v47 = vpop.f32.mrf.mxu1  ;;  %v1290_v48 = vpop.f32.mrf.mxu0 }
 0x2ab   :  { %v784_v53 = vadd.f32 %v783_v47, %v5760_v1  ;;  %v1291_v55 = vadd.f32 %v1290_v48, %v5765_v6 }
 0x2ac   :  { %v3327_v49 = vmax.f32 %v951_v45, 0.0  ;;  %v3328_v50 = vmax.f32 %v1120_v46, 0.0 }
 0x2ad   :  { %v3339_v60 = vmax.f32 %v784_v53, 0.0  ;;  %v3342_v31 = vmax.f32 %v1291_v55, 0.0 }
 0x2ae   :  { %v3935_v51 = vpack.c.bf16 %v3327_v49, %v3326_v43  ;;  %v3936_v52 = vpack.c.bf16 %v3329_v44, %v3328_v50 }
 0x2b0   :  { %4319 = vst [vmem:[#allocation8 + $0x960] sm:$0xff] %v3935_v51 }
 0x2b1   :  { %4320 = vst [vmem:[#allocation8 + $0x968] sm:$0xff] %v3936_v52  ;;  %v952_v56 = vpop.f32.mrf.mxu2  ;;  %v1121_v22 = vpop.f32.mrf.mxu3 }
 0x2b2   :  { %v953_v57 = vadd.f32 %v952_v56, %v5773_v15  ;;  %v1122_v58 = vadd.f32 %v1121_v22, %v5781_v18  ;;  %v786_v59 = vpop.f32.mrf.mxu1  ;;  %v1293_v30 = vpop.f32.mrf.mxu0 }
 0x2b3   :  { %v787_v23 = vadd.f32 %v786_v59, %v5760_v1  ;;  %v1294_v2 = vadd.f32 %v1293_v30, %v5765_v6 }
 0x2b4   :  { %v3340_v54 = vmax.f32 %v953_v57, 0.0  ;;  %v3341_v38 = vmax.f32 %v1122_v58, 0.0 }
 0x2b5   :  { %4731 = vmatmul.msk.bf16.gmra.mxu1 %vm341_vm1, %v5241_v61  ;;  %4827 = vmatmul.msk.bf16.gmra.mxu0 %vm341_vm1, %v5241_v61  ;;  %v3352_v7 = vmax.f32 %v787_v23, 0.0  ;;  %v3355_v8 = vmax.f32 %v1294_v2, 0.0 }
 0x2b6   :  { %v3941_v62 = vpack.c.bf16 %v3340_v54, %v3339_v60  ;;  %v3942_v63 = vpack.c.bf16 %v3342_v31, %v3341_v38  ;;  %4763 = vmatmul.msk.bf16.gmra.mxu2 %vm341_vm1, %v5241_v61  ;;  %4795 = vmatmul.msk.bf16.gmra.mxu3 %vm341_vm1, %v5241_v61  ;;  %v5243_v38 = vld [vmem:[%s7188_s0 + $0x20] sm:$0xff] }
 0x2b8   :  { %4325 = vst [vmem:[#allocation8 + $0x990] sm:$0xff] %v3941_v62 }
 0x2b9   :  { %4326 = vst [vmem:[#allocation8 + $0x998] sm:$0xff] %v3942_v63  ;;  %v955_v4 = vpop.f32.mrf.mxu2  ;;  %v1124_v5 = vpop.f32.mrf.mxu3 }
 0x2ba   :  { %v956_v9 = vadd.f32 %v955_v4, %v5773_v15  ;;  %v1125_v10 = vadd.f32 %v1124_v5, %v5781_v18  ;;  %v788_v11 = vpop.f32.mrf.mxu1  ;;  %v1295_v12 = vpop.f32.mrf.mxu0 }
 0x2bb   :  { %v789_v13 = vadd.f32 %v788_v11, %v5760_v1  ;;  %v1296_v20 = vadd.f32 %v1295_v12, %v5765_v6 }
 0x2bc   :  { %v3353_v3 = vmax.f32 %v956_v9, 0.0  ;;  %v3354_v16 = vmax.f32 %v1125_v10, 0.0 }
 0x2bd   :  { %v3365_v35 = vmax.f32 %v789_v13, 0.0  ;;  %v3368_v42 = vmax.f32 %v1296_v20, 0.0 }
 0x2be   :  { %v3947_v17 = vpack.c.bf16 %v3353_v3, %v3352_v7  ;;  %v3948_v19 = vpack.c.bf16 %v3355_v8, %v3354_v16 }
 0x2c0   :  { %4331 = vst [vmem:[#allocation8 + $0x9c0] sm:$0xff] %v3947_v17 }
 0x2c1   :  { %4332 = vst [vmem:[#allocation8 + $0x9c8] sm:$0xff] %v3948_v19  ;;  %v957_v21 = vpop.f32.mrf.mxu2  ;;  %v1126_v24 = vpop.f32.mrf.mxu3 }
 0x2c2   :  { %v958_v26 = vadd.f32 %v957_v21, %v5773_v15  ;;  %v1127_v25 = vadd.f32 %v1126_v24, %v5781_v18  ;;  %v791_v28 = vpop.f32.mrf.mxu1  ;;  %v1298_v34 = vpop.f32.mrf.mxu0 }
 0x2c3   :  { %v792_v27 = vadd.f32 %v791_v28, %v5760_v1  ;;  %v1299_v36 = vadd.f32 %v1298_v34, %v5765_v6 }
 0x2c4   :  { %v3366_v29 = vmax.f32 %v958_v26, 0.0  ;;  %v3367_v32 = vmax.f32 %v1127_v25, 0.0 }
 0x2c5   :  { %4732 = vmatmul.msk.bf16.gmra.mxu1 %vm341_vm1, %v5242_v14  ;;  %4828 = vmatmul.msk.bf16.gmra.mxu0 %vm341_vm1, %v5242_v14  ;;  %v3378_v40 = vmax.f32 %v792_v27, 0.0  ;;  %v3381_v41 = vmax.f32 %v1299_v36, 0.0 }
 0x2c6   :  { %v3953_v0 = vpack.c.bf16 %v3366_v29, %v3365_v35  ;;  %v3954_v33 = vpack.c.bf16 %v3368_v42, %v3367_v32  ;;  %4764 = vmatmul.msk.bf16.gmra.mxu2 %vm341_vm1, %v5242_v14  ;;  %4796 = vmatmul.msk.bf16.gmra.mxu3 %vm341_vm1, %v5242_v14  ;;  %v5244_v32 = vld [vmem:[%s7188_s0 + $0x28] sm:$0xff] }
 0x2c8   :  { %4337 = vst [vmem:[#allocation8 + $0x9f0] sm:$0xff] %v3953_v0 }
 0x2c9   :  { %4338 = vst [vmem:[#allocation8 + $0x9f8] sm:$0xff] %v3954_v33  ;;  %v960_v37 = vpop.f32.mrf.mxu2  ;;  %v1129_v39 = vpop.f32.mrf.mxu3 }
 0x2ca   :  { %v961_v43 = vadd.f32 %v960_v37, %v5773_v15  ;;  %v1130_v44 = vadd.f32 %v1129_v39, %v5781_v18  ;;  %v793_v45 = vpop.f32.mrf.mxu1  ;;  %v1300_v46 = vpop.f32.mrf.mxu0 }
 0x2cb   :  { %v794_v51 = vadd.f32 %v793_v45, %v5760_v1  ;;  %v1301_v52 = vadd.f32 %v1300_v46, %v5765_v6 }
 0x2cc   :  { %v3379_v47 = vmax.f32 %v961_v43, 0.0  ;;  %v3380_v48 = vmax.f32 %v1130_v44, 0.0 }
 0x2cd   :  { %v3391_v59 = vmax.f32 %v794_v51, 0.0  ;;  %v3394_v30 = vmax.f32 %v1301_v52, 0.0 }
 0x2ce   :  { %v3959_v49 = vpack.c.bf16 %v3379_v47, %v3378_v40  ;;  %v3960_v50 = vpack.c.bf16 %v3381_v41, %v3380_v48 }
 0x2d0   :  { %4343 = vst [vmem:[#allocation8 + $0xa20] sm:$0xff] %v3959_v49 }
 0x2d1   :  { %4344 = vst [vmem:[#allocation8 + $0xa28] sm:$0xff] %v3960_v50  ;;  %v962_v53 = vpop.f32.mrf.mxu2  ;;  %v1131_v55 = vpop.f32.mrf.mxu3 }
 0x2d2   :  { %v963_v56 = vadd.f32 %v962_v53, %v5773_v15  ;;  %v1132_v22 = vadd.f32 %v1131_v55, %v5781_v18  ;;  %v796_v57 = vpop.f32.mrf.mxu1  ;;  %v1303_v58 = vpop.f32.mrf.mxu0 }
 0x2d3   :  { %v797_v54 = vadd.f32 %v796_v57, %v5760_v1  ;;  %v1304_v62 = vadd.f32 %v1303_v58, %v5765_v6 }
 0x2d4   :  { %v3392_v60 = vmax.f32 %v963_v56, 0.0  ;;  %v3393_v31 = vmax.f32 %v1132_v22, 0.0 }
 0x2d5   :  { %4733 = vmatmul.msk.bf16.gmra.mxu1 %vm341_vm1, %v5243_v38  ;;  %4829 = vmatmul.msk.bf16.gmra.mxu0 %vm341_vm1, %v5243_v38  ;;  %v3404_v4 = vmax.f32 %v797_v54, 0.0  ;;  %v3407_v5 = vmax.f32 %v1304_v62, 0.0 }
 0x2d6   :  { %v3965_v23 = vpack.c.bf16 %v3392_v60, %v3391_v59  ;;  %v3966_v61 = vpack.c.bf16 %v3394_v30, %v3393_v31  ;;  %4765 = vmatmul.msk.bf16.gmra.mxu2 %vm341_vm1, %v5243_v38  ;;  %4797 = vmatmul.msk.bf16.gmra.mxu3 %vm341_vm1, %v5243_v38  ;;  %v5245_v31 = vld [vmem:[%s7188_s0 + $0x30] sm:$0xff] }
 0x2d8   :  { %4349 = vst [vmem:[#allocation8 + $0xa50] sm:$0xff] %v3965_v23 }
 0x2d9   :  { %4350 = vst [vmem:[#allocation8 + $0xa58] sm:$0xff] %v3966_v61  ;;  %v965_v63 = vpop.f32.mrf.mxu2  ;;  %v1134_v2 = vpop.f32.mrf.mxu3 }
 0x2da   :  { %v966_v7 = vadd.f32 %v965_v63, %v5773_v15  ;;  %v1135_v8 = vadd.f32 %v1134_v2, %v5781_v18  ;;  %v798_v9 = vpop.f32.mrf.mxu1  ;;  %v1305_v10 = vpop.f32.mrf.mxu0 }
 0x2db   :  { %v799_v17 = vadd.f32 %v798_v9, %v5760_v1  ;;  %v1306_v19 = vadd.f32 %v1305_v10, %v5765_v6 }
 0x2dc   :  { %v3405_v11 = vmax.f32 %v966_v7, 0.0  ;;  %v3406_v12 = vmax.f32 %v1135_v8, 0.0 }
 0x2dd   :  { %v3417_v28 = vmax.f32 %v799_v17, 0.0  ;;  %v3420_v34 = vmax.f32 %v1306_v19, 0.0 }
 0x2de   :  { %v3971_v3 = vpack.c.bf16 %v3405_v11, %v3404_v4  ;;  %v3972_v16 = vpack.c.bf16 %v3407_v5, %v3406_v12 }
 0x2e0   :  { %4355 = vst [vmem:[#allocation8 + $0xa80] sm:$0xff] %v3971_v3 }
 0x2e1   :  { %4356 = vst [vmem:[#allocation8 + $0xa88] sm:$0xff] %v3972_v16  ;;  %v967_v13 = vpop.f32.mrf.mxu2  ;;  %v1136_v20 = vpop.f32.mrf.mxu3 }
 0x2e2   :  { %v968_v21 = vadd.f32 %v967_v13, %v5773_v15  ;;  %v1137_v24 = vadd.f32 %v1136_v20, %v5781_v18  ;;  %v801_v26 = vpop.f32.mrf.mxu1  ;;  %v1308_v25 = vpop.f32.mrf.mxu0 }
 0x2e3   :  { %v802_v29 = vadd.f32 %v801_v26, %v5760_v1  ;;  %v1309_v0 = vadd.f32 %v1308_v25, %v5765_v6 }
 0x2e4   :  { %v3418_v35 = vmax.f32 %v968_v21, 0.0  ;;  %v3419_v42 = vmax.f32 %v1137_v24, 0.0 }
 0x2e5   :  { %4734 = vmatmul.msk.bf16.gmra.mxu1 %vm341_vm1, %v5244_v32  ;;  %4830 = vmatmul.msk.bf16.gmra.mxu0 %vm341_vm1, %v5244_v32  ;;  %v3430_v37 = vmax.f32 %v802_v29, 0.0  ;;  %v3433_v39 = vmax.f32 %v1309_v0, 0.0 }
 0x2e6   :  { %v3977_v27 = vpack.c.bf16 %v3418_v35, %v3417_v28  ;;  %v3978_v14 = vpack.c.bf16 %v3420_v34, %v3419_v42  ;;  %4766 = vmatmul.msk.bf16.gmra.mxu2 %vm341_vm1, %v5244_v32  ;;  %4798 = vmatmul.msk.bf16.gmra.mxu3 %vm341_vm1, %v5244_v32  ;;  %v5246_v42 = vld [vmem:[%s7188_s0 + $0x38] sm:$0xff] }
 0x2e8   :  { %4361 = vst [vmem:[#allocation8 + $0xab0] sm:$0xff] %v3977_v27 }
 0x2e9   :  { %4362 = vst [vmem:[#allocation8 + $0xab8] sm:$0xff] %v3978_v14  ;;  %v970_v33 = vpop.f32.mrf.mxu2  ;;  %v1139_v36 = vpop.f32.mrf.mxu3 }
 0x2ea   :  { %v971_v40 = vadd.f32 %v970_v33, %v5773_v15  ;;  %v1140_v41 = vadd.f32 %v1139_v36, %v5781_v18  ;;  %v803_v43 = vpop.f32.mrf.mxu1  ;;  %v1310_v44 = vpop.f32.mrf.mxu0 }
 0x2eb   :  { %v804_v49 = vadd.f32 %v803_v43, %v5760_v1  ;;  %v1311_v50 = vadd.f32 %v1310_v44, %v5765_v6 }
 0x2ec   :  { %v3431_v45 = vmax.f32 %v971_v40, 0.0  ;;  %v3432_v46 = vmax.f32 %v1140_v41, 0.0 }
 0x2ed   :  { %v3443_v57 = vmax.f32 %v804_v49, 0.0  ;;  %v3446_v58 = vmax.f32 %v1311_v50, 0.0 }
 0x2ee   :  { %v3983_v47 = vpack.c.bf16 %v3431_v45, %v3430_v37  ;;  %v3984_v48 = vpack.c.bf16 %v3433_v39, %v3432_v46 }
 0x2f0   :  { %4367 = vst [vmem:[#allocation8 + $0xae0] sm:$0xff] %v3983_v47  ;;  %v119_v47 = vld [vmem:[#allocation5 + $0x8] sm:$0x1f] }
 0x2f1   :  { %4368 = vst [vmem:[#allocation8 + $0xae8] sm:$0xff] %v3984_v48  ;;  %v972_v51 = vpop.f32.mrf.mxu2  ;;  %v1141_v52 = vpop.f32.mrf.mxu3 }
 0x2f2   :  { %v973_v53 = vadd.f32 %v972_v51, %v5773_v15  ;;  %v1142_v55 = vadd.f32 %v1141_v52, %v5781_v18  ;;  %v806_v56 = vpop.f32.mrf.mxu1  ;;  %v1313_v22 = vpop.f32.mrf.mxu0  ;;  %v5247_v52 = vld [vmem:[#allocation5] sm:$0xff] }
 0x2f3   :  { %v807_v60 = vadd.f32 %v806_v56, %v5760_v1  ;;  %v1314_v23 = vadd.f32 %v1313_v22, %v5765_v6 }
 0x2f4   :  { %v3444_v59 = vmax.f32 %v973_v53, 0.0  ;;  %v3445_v30 = vmax.f32 %v1142_v55, 0.0  ;;  %v6260_v53 = vperm.slane %v5247_v52, 5 }
 0x2f5   :  { %4735 = vmatmul.msk.bf16.gmra.mxu1 %vm341_vm1, %v5245_v31  ;;  %4831 = vmatmul.msk.bf16.gmra.mxu0 %vm341_vm1, %v5245_v31  ;;  %v3456_v63 = vmax.f32 %v807_v60, 0.0  ;;  %v3459_v2 = vmax.f32 %v1314_v23, 0.0  ;;  %v6277_v23 = vperm.slane %v5247_v52, 7 }
 0x2f6   :  { %v3989_v54 = vpack.c.bf16 %v3444_v59, %v3443_v57  ;;  %v3990_v38 = vpack.c.bf16 %v3446_v58, %v3445_v30  ;;  %4767 = vmatmul.msk.bf16.gmra.mxu2 %vm341_vm1, %v5245_v31  ;;  %4799 = vmatmul.msk.bf16.gmra.mxu3 %vm341_vm1, %v5245_v31  ;;  %v6264_v57 = vperm.slane %v119_v47, 0  ;;  %v5248_v31 = vld [vmem:[%s7188_s0 + $0x40] sm:$0xff] }
 0x2f8   :  { %4373 = vst [vmem:[#allocation8 + $0xb10] sm:$0xff] %v3989_v54 }
 0x2f9   :  { %4374 = vst [vmem:[#allocation8 + $0xb18] sm:$0xff] %v3990_v38  ;;  %v975_v61 = vpop.f32.mrf.mxu2  ;;  %v1144_v62 = vpop.f32.mrf.mxu3 }
 0x2fa   :  { %v976_v4 = vadd.f32 %v975_v61, %v5773_v15  ;;  %v1145_v5 = vadd.f32 %v1144_v62, %v5781_v18  ;;  %v808_v7 = vpop.f32.mrf.mxu1  ;;  %v1315_v8 = vpop.f32.mrf.mxu0 }
 0x2fb   :  { %v809_v3 = vadd.f32 %v808_v7, %v5760_v1  ;;  %v1316_v16 = vadd.f32 %v1315_v8, %v5765_v6 }
 0x2fc   :  { %v3457_v9 = vmax.f32 %v976_v4, 0.0  ;;  %v3458_v10 = vmax.f32 %v1145_v5, 0.0 }
 0x2fd   :  { %v3469_v26 = vmax.f32 %v809_v3, 0.0  ;;  %v3472_v25 = vmax.f32 %v1316_v16, 0.0 }
 0x2fe   :  { %v3995_v11 = vpack.c.bf16 %v3457_v9, %v3456_v63  ;;  %v3996_v12 = vpack.c.bf16 %v3459_v2, %v3458_v10 }
 0x300   :  { %4379 = vst [vmem:[#allocation8 + $0xb40] sm:$0xff] %v3995_v11 }
 0x301   :  { %4380 = vst [vmem:[#allocation8 + $0xb48] sm:$0xff] %v3996_v12  ;;  %v977_v17 = vpop.f32.mrf.mxu2  ;;  %v1146_v19 = vpop.f32.mrf.mxu3 }
 0x302   :  { %v978_v13 = vadd.f32 %v977_v17, %v5773_v15  ;;  %v1147_v20 = vadd.f32 %v1146_v19, %v5781_v18  ;;  %v811_v21 = vpop.f32.mrf.mxu1  ;;  %v1318_v24 = vpop.f32.mrf.mxu0 }
 0x303   :  { %v812_v35 = vadd.f32 %v811_v21, %v5760_v1  ;;  %v1319_v27 = vadd.f32 %v1318_v24, %v5765_v6 }
 0x304   :  { %v3470_v28 = vmax.f32 %v978_v13, 0.0  ;;  %v3471_v34 = vmax.f32 %v1147_v20, 0.0 }
 0x305   :  { %4736 = vmatmul.msk.bf16.gmra.mxu1 %vm341_vm1, %v5246_v42  ;;  %4832 = vmatmul.msk.bf16.gmra.mxu0 %vm341_vm1, %v5246_v42  ;;  %v3482_v33 = vmax.f32 %v812_v35, 0.0  ;;  %v3485_v36 = vmax.f32 %v1319_v27, 0.0 }
 0x306   :  { %v4001_v29 = vpack.c.bf16 %v3470_v28, %v3469_v26  ;;  %v4002_v32 = vpack.c.bf16 %v3472_v25, %v3471_v34  ;;  %4768 = vmatmul.msk.bf16.gmra.mxu2 %vm341_vm1, %v5246_v42  ;;  %4800 = vmatmul.msk.bf16.gmra.mxu3 %vm341_vm1, %v5246_v42  ;;  %v5249_v42 = vld [vmem:[%s7188_s0 + $0x48] sm:$0xff] }
 0x308   :  { %4385 = vst [vmem:[#allocation8 + $0xb70] sm:$0xff] %v4001_v29 }
 0x309   :  { %4386 = vst [vmem:[#allocation8 + $0xb78] sm:$0xff] %v4002_v32  ;;  %v980_v14 = vpop.f32.mrf.mxu2  ;;  %v1149_v0 = vpop.f32.mrf.mxu3 }
 0x30a   :  { %v981_v37 = vadd.f32 %v980_v14, %v5773_v15  ;;  %v1150_v39 = vadd.f32 %v1149_v0, %v5781_v18  ;;  %v813_v40 = vpop.f32.mrf.mxu1  ;;  %v1320_v41 = vpop.f32.mrf.mxu0 }
 0x30b   :  { %v814_v48 = vadd.f32 %v813_v40, %v5760_v1  ;;  %v1321_v49 = vadd.f32 %v1320_v41, %v5765_v6 }
 0x30c   :  { %v3483_v43 = vmax.f32 %v981_v37, 0.0  ;;  %v3484_v44 = vmax.f32 %v1150_v39, 0.0 }
 0x30d   :  { %v3495_v59 = vmax.f32 %v814_v48, 0.0  ;;  %v3498_v30 = vmax.f32 %v1321_v49, 0.0 }
 0x30e   :  { %v4007_v45 = vpack.c.bf16 %v3483_v43, %v3482_v33  ;;  %v4008_v46 = vpack.c.bf16 %v3485_v36, %v3484_v44 }
 0x310   :  { %4391 = vst [vmem:[#allocation8 + $0xba0] sm:$0xff] %v4007_v45 }
 0x311   :  { %4392 = vst [vmem:[#allocation8 + $0xba8] sm:$0xff] %v4008_v46  ;;  %v982_v50 = vpop.f32.mrf.mxu2  ;;  %v1151_v51 = vpop.f32.mrf.mxu3 }
 0x312   :  { %v983_v55 = vadd.f32 %v982_v50, %v5773_v15  ;;  %v1152_v56 = vadd.f32 %v1151_v51, %v5781_v18  ;;  %v1332_v22 = vpop.f32.mrf.mxu1  ;;  %v1839_v58 = vpop.f32.mrf.mxu0  ;;  %v6272_v15 = vperm.slane %v5247_v52, 6 }
 0x313   :  { %v1333_v6 = vadd.f32 %v1332_v22, %v6260_v53  ;;  %v1840_v38 = vadd.f32 %v1839_v58, %v6264_v57 }
 0x314   :  { %v3496_v60 = vmax.f32 %v983_v55, 0.0  ;;  %v3497_v1 = vmax.f32 %v1152_v56, 0.0 }
 0x315   :  { %4737 = vmatmul.msk.bf16.gmra.mxu1 %vm341_vm1, %v5248_v31  ;;  %4833 = vmatmul.msk.bf16.gmra.mxu0 %vm341_vm1, %v5248_v31  ;;  %v2680_v63 = vmax.f32 %v1333_v6, 0.0  ;;  %v2683_v2 = vmax.f32 %v1840_v38, 0.0 }
 0x316   :  { %v4013_v18 = vpack.c.bf16 %v3496_v60, %v3495_v59  ;;  %v4014_v54 = vpack.c.bf16 %v3498_v30, %v3497_v1  ;;  %4769 = vmatmul.msk.bf16.gmra.mxu2 %vm341_vm1, %v5248_v31  ;;  %4801 = vmatmul.msk.bf16.gmra.mxu3 %vm341_vm1, %v5248_v31  ;;  %v5250_v1 = vld [vmem:[%s7188_s0 + $0x50] sm:$0xff] }
 0x318   :  { %4397 = vst [vmem:[#allocation8 + $0xbd0] sm:$0xff] %v4013_v18 }
 0x319   :  { %4398 = vst [vmem:[#allocation8 + $0xbd8] sm:$0xff] %v4014_v54  ;;  %v1501_v61 = vpop.f32.mrf.mxu2  ;;  %v1670_v62 = vpop.f32.mrf.mxu3 }
 0x31a   :  { %v1502_v4 = vadd.f32 %v1501_v61, %v6272_v15  ;;  %v1671_v5 = vadd.f32 %v1670_v62, %v6277_v23  ;;  %v1334_v7 = vpop.f32.mrf.mxu1  ;;  %v1841_v8 = vpop.f32.mrf.mxu0 }
 0x31b   :  { %v1335_v3 = vadd.f32 %v1334_v7, %v6260_v53  ;;  %v1842_v16 = vadd.f32 %v1841_v8, %v6264_v57 }
 0x31c   :  { %v2681_v9 = vmax.f32 %v1502_v4, 0.0  ;;  %v2682_v10 = vmax.f32 %v1671_v5, 0.0 }
 0x31d   :  { %v2693_v26 = vmax.f32 %v1335_v3, 0.0  ;;  %v2696_v25 = vmax.f32 %v1842_v16, 0.0 }
 0x31e   :  { %v3637_v11 = vpack.c.bf16 %v2681_v9, %v2680_v63  ;;  %v3638_v12 = vpack.c.bf16 %v2683_v2, %v2682_v10 }
 0x320   :  { %4021 = vst [vmem:[#allocation8 + $0x10] sm:$0xff] %v3637_v11 }
 0x321   :  { %4022 = vst [vmem:[#allocation8 + $0x18] sm:$0xff] %v3638_v12  ;;  %v1503_v17 = vpop.f32.mrf.mxu2  ;;  %v1672_v19 = vpop.f32.mrf.mxu3 }
 0x322   :  { %v1504_v13 = vadd.f32 %v1503_v17, %v6272_v15  ;;  %v1673_v20 = vadd.f32 %v1672_v19, %v6277_v23  ;;  %v1337_v21 = vpop.f32.mrf.mxu1  ;;  %v1844_v24 = vpop.f32.mrf.mxu0 }
 0x323   :  { %v1338_v35 = vadd.f32 %v1337_v21, %v6260_v53  ;;  %v1845_v27 = vadd.f32 %v1844_v24, %v6264_v57 }
 0x324   :  { %v2694_v28 = vmax.f32 %v1504_v13, 0.0  ;;  %v2695_v34 = vmax.f32 %v1673_v20, 0.0 }
 0x325   :  { %4738 = vmatmul.msk.bf16.gmra.mxu1 %vm341_vm1, %v5249_v42  ;;  %4834 = vmatmul.msk.bf16.gmra.mxu0 %vm341_vm1, %v5249_v42  ;;  %v2706_v33 = vmax.f32 %v1338_v35, 0.0  ;;  %v2709_v36 = vmax.f32 %v1845_v27, 0.0 }
 0x326   :  { %v3643_v29 = vpack.c.bf16 %v2694_v28, %v2693_v26  ;;  %v3644_v32 = vpack.c.bf16 %v2696_v25, %v2695_v34  ;;  %4770 = vmatmul.msk.bf16.gmra.mxu2 %vm341_vm1, %v5249_v42  ;;  %4802 = vmatmul.msk.bf16.gmra.mxu3 %vm341_vm1, %v5249_v42  ;;  %v5251_v34 = vld [vmem:[%s7188_s0 + $0x58] sm:$0xff] }
 0x328   :  { %4027 = vst [vmem:[#allocation8 + $0x40] sm:$0xff] %v3643_v29 }
 0x329   :  { %4028 = vst [vmem:[#allocation8 + $0x48] sm:$0xff] %v3644_v32  ;;  %v1506_v14 = vpop.f32.mrf.mxu2  ;;  %v1675_v0 = vpop.f32.mrf.mxu3 }
 0x32a   :  { %v1507_v37 = vadd.f32 %v1506_v14, %v6272_v15  ;;  %v1676_v39 = vadd.f32 %v1675_v0, %v6277_v23  ;;  %v1339_v40 = vpop.f32.mrf.mxu1  ;;  %v1846_v41 = vpop.f32.mrf.mxu0 }
 0x32b   :  { %v1340_v47 = vadd.f32 %v1339_v40, %v6260_v53  ;;  %v1847_v48 = vadd.f32 %v1846_v41, %v6264_v57 }
 0x32c   :  { %v2707_v43 = vmax.f32 %v1507_v37, 0.0  ;;  %v2708_v44 = vmax.f32 %v1676_v39, 0.0 }
 0x32d   :  { %v2719_v22 = vmax.f32 %v1340_v47, 0.0  ;;  %v2722_v58 = vmax.f32 %v1847_v48, 0.0 }
 0x32e   :  { %v3649_v45 = vpack.c.bf16 %v2707_v43, %v2706_v33  ;;  %v3650_v46 = vpack.c.bf16 %v2709_v36, %v2708_v44 }
 0x330   :  { %4033 = vst [vmem:[#allocation8 + $0x70] sm:$0xff] %v3649_v45 }
 0x331   :  { %4034 = vst [vmem:[#allocation8 + $0x78] sm:$0xff] %v3650_v46  ;;  %v1508_v49 = vpop.f32.mrf.mxu2  ;;  %v1677_v50 = vpop.f32.mrf.mxu3 }
 0x332   :  { %v1509_v51 = vadd.f32 %v1508_v49, %v6272_v15  ;;  %v1678_v52 = vadd.f32 %v1677_v50, %v6277_v23  ;;  %v1342_v55 = vpop.f32.mrf.mxu1  ;;  %v1849_v56 = vpop.f32.mrf.mxu0 }
 0x333   :  { %v1343_v60 = vadd.f32 %v1342_v55, %v6260_v53  ;;  %v1850_v18 = vadd.f32 %v1849_v56, %v6264_v57 }
 0x334   :  { %v2720_v59 = vmax.f32 %v1509_v51, 0.0  ;;  %v2721_v30 = vmax.f32 %v1678_v52, 0.0 }
 0x335   :  { %4739 = vmatmul.msk.bf16.gmra.mxu1 %vm341_vm1, %v5250_v1  ;;  %4835 = vmatmul.msk.bf16.gmra.mxu0 %vm341_vm1, %v5250_v1  ;;  %v2732_v61 = vmax.f32 %v1343_v60, 0.0  ;;  %v2735_v62 = vmax.f32 %v1850_v18, 0.0 }
 0x336   :  { %v3655_v6 = vpack.c.bf16 %v2720_v59, %v2719_v22  ;;  %v3656_v31 = vpack.c.bf16 %v2722_v58, %v2721_v30  ;;  %4771 = vmatmul.msk.bf16.gmra.mxu2 %vm341_vm1, %v5250_v1  ;;  %4803 = vmatmul.msk.bf16.gmra.mxu3 %vm341_vm1, %v5250_v1  ;;  %v5252_v30 = vld [vmem:[%s7188_s0 + $0x60] sm:$0xff] }
 0x338   :  { %4039 = vst [vmem:[#allocation8 + $0xa0] sm:$0xff] %v3655_v6 }
 0x339   :  { %4040 = vst [vmem:[#allocation8 + $0xa8] sm:$0xff] %v3656_v31  ;;  %v1511_v54 = vpop.f32.mrf.mxu2  ;;  %v1680_v38 = vpop.f32.mrf.mxu3 }
 0x33a   :  { %v1512_v63 = vadd.f32 %v1511_v54, %v6272_v15  ;;  %v1681_v2 = vadd.f32 %v1680_v38, %v6277_v23  ;;  %v1344_v4 = vpop.f32.mrf.mxu1  ;;  %v1851_v5 = vpop.f32.mrf.mxu0 }
 0x33b   :  { %v1345_v11 = vadd.f32 %v1344_v4, %v6260_v53  ;;  %v1852_v12 = vadd.f32 %v1851_v5, %v6264_v57 }
 0x33c   :  { %v2733_v7 = vmax.f32 %v1512_v63, 0.0  ;;  %v2734_v8 = vmax.f32 %v1681_v2, 0.0 }
 0x33d   :  { %v2745_v21 = vmax.f32 %v1345_v11, 0.0  ;;  %v2748_v24 = vmax.f32 %v1852_v12, 0.0 }
 0x33e   :  { %v3661_v9 = vpack.c.bf16 %v2733_v7, %v2732_v61  ;;  %v3662_v10 = vpack.c.bf16 %v2735_v62, %v2734_v8 }
 0x340   :  { %4045 = vst [vmem:[#allocation8 + $0xd0] sm:$0xff] %v3661_v9 }
 0x341   :  { %4046 = vst [vmem:[#allocation8 + $0xd8] sm:$0xff] %v3662_v10  ;;  %v1513_v3 = vpop.f32.mrf.mxu2  ;;  %v1682_v16 = vpop.f32.mrf.mxu3 }
 0x342   :  { %v1514_v17 = vadd.f32 %v1513_v3, %v6272_v15  ;;  %v1683_v19 = vadd.f32 %v1682_v16, %v6277_v23  ;;  %v1347_v13 = vpop.f32.mrf.mxu1  ;;  %v1854_v20 = vpop.f32.mrf.mxu0 }
 0x343   :  { %v1348_v28 = vadd.f32 %v1347_v13, %v6260_v53  ;;  %v1855_v29 = vadd.f32 %v1854_v20, %v6264_v57 }
 0x344   :  { %v2746_v26 = vmax.f32 %v1514_v17, 0.0  ;;  %v2747_v25 = vmax.f32 %v1683_v19, 0.0 }
 0x345   :  { %4740 = vmatmul.msk.bf16.gmra.mxu1 %vm341_vm1, %v5251_v34  ;;  %4836 = vmatmul.msk.bf16.gmra.mxu0 %vm341_vm1, %v5251_v34  ;;  %v2758_v14 = vmax.f32 %v1348_v28, 0.0  ;;  %v2761_v0 = vmax.f32 %v1855_v29, 0.0 }
 0x346   :  { %v3667_v35 = vpack.c.bf16 %v2746_v26, %v2745_v21  ;;  %v3668_v42 = vpack.c.bf16 %v2748_v24, %v2747_v25  ;;  %4772 = vmatmul.msk.bf16.gmra.mxu2 %vm341_vm1, %v5251_v34  ;;  %4804 = vmatmul.msk.bf16.gmra.mxu3 %vm341_vm1, %v5251_v34  ;;  %v5253_v25 = vld [vmem:[%s7188_s0 + $0x68] sm:$0xff] }
 0x348   :  { %4051 = vst [vmem:[#allocation8 + $0x100] sm:$0xff] %v3667_v35 }
 0x349   :  { %4052 = vst [vmem:[#allocation8 + $0x108] sm:$0xff] %v3668_v42  ;;  %v1516_v32 = vpop.f32.mrf.mxu2  ;;  %v1685_v27 = vpop.f32.mrf.mxu3 }
 0x34a   :  { %v1517_v33 = vadd.f32 %v1516_v32, %v6272_v15  ;;  %v1686_v36 = vadd.f32 %v1685_v27, %v6277_v23  ;;  %v1349_v37 = vpop.f32.mrf.mxu1  ;;  %v1856_v39 = vpop.f32.mrf.mxu0 }
 0x34b   :  { %v1350_v45 = vadd.f32 %v1349_v37, %v6260_v53  ;;  %v1857_v46 = vadd.f32 %v1856_v39, %v6264_v57 }
 0x34c   :  { %v2759_v40 = vmax.f32 %v1517_v33, 0.0  ;;  %v2760_v41 = vmax.f32 %v1686_v36, 0.0 }
 0x34d   :  { %v2771_v55 = vmax.f32 %v1350_v45, 0.0  ;;  %v2774_v56 = vmax.f32 %v1857_v46, 0.0 }
 0x34e   :  { %v3673_v43 = vpack.c.bf16 %v2759_v40, %v2758_v14  ;;  %v3674_v44 = vpack.c.bf16 %v2761_v0, %v2760_v41 }
 0x350   :  { %4057 = vst [vmem:[#allocation8 + $0x130] sm:$0xff] %v3673_v43 }
 0x351   :  { %4058 = vst [vmem:[#allocation8 + $0x138] sm:$0xff] %v3674_v44  ;;  %v1518_v47 = vpop.f32.mrf.mxu2  ;;  %v1687_v48 = vpop.f32.mrf.mxu3 }
 0x352   :  { %v1519_v49 = vadd.f32 %v1518_v47, %v6272_v15  ;;  %v1688_v50 = vadd.f32 %v1687_v48, %v6277_v23  ;;  %v1352_v51 = vpop.f32.mrf.mxu1  ;;  %v1859_v52 = vpop.f32.mrf.mxu0 }
 0x353   :  { %v1353_v59 = vadd.f32 %v1352_v51, %v6260_v53  ;;  %v1860_v6 = vadd.f32 %v1859_v52, %v6264_v57 }
 0x354   :  { %v2772_v22 = vmax.f32 %v1519_v49, 0.0  ;;  %v2773_v58 = vmax.f32 %v1688_v50, 0.0 }
 0x355   :  { %4741 = vmatmul.msk.bf16.gmra.mxu1 %vm341_vm1, %v5252_v30  ;;  %4837 = vmatmul.msk.bf16.gmra.mxu0 %vm341_vm1, %v5252_v30  ;;  %v2784_v54 = vmax.f32 %v1353_v59, 0.0  ;;  %v2787_v38 = vmax.f32 %v1860_v6, 0.0 }
 0x356   :  { %v3679_v60 = vpack.c.bf16 %v2772_v22, %v2771_v55  ;;  %v3680_v1 = vpack.c.bf16 %v2774_v56, %v2773_v58  ;;  %4773 = vmatmul.msk.bf16.gmra.mxu2 %vm341_vm1, %v5252_v30  ;;  %4805 = vmatmul.msk.bf16.gmra.mxu3 %vm341_vm1, %v5252_v30  ;;  %v5254_v58 = vld [vmem:[%s7188_s0 + $0x70] sm:$0xff] }
 0x358   :  { %4063 = vst [vmem:[#allocation8 + $0x160] sm:$0xff] %v3679_v60 }
 0x359   :  { %4064 = vst [vmem:[#allocation8 + $0x168] sm:$0xff] %v3680_v1  ;;  %v1521_v31 = vpop.f32.mrf.mxu2  ;;  %v1690_v18 = vpop.f32.mrf.mxu3 }
 0x35a   :  { %v1522_v61 = vadd.f32 %v1521_v31, %v6272_v15  ;;  %v1691_v62 = vadd.f32 %v1690_v18, %v6277_v23  ;;  %v1354_v63 = vpop.f32.mrf.mxu1  ;;  %v1861_v2 = vpop.f32.mrf.mxu0 }
 0x35b   :  { %v1355_v9 = vadd.f32 %v1354_v63, %v6260_v53  ;;  %v1862_v10 = vadd.f32 %v1861_v2, %v6264_v57 }
 0x35c   :  { %v2785_v4 = vmax.f32 %v1522_v61, 0.0  ;;  %v2786_v5 = vmax.f32 %v1691_v62, 0.0 }
 0x35d   :  { %v2797_v13 = vmax.f32 %v1355_v9, 0.0  ;;  %v2800_v20 = vmax.f32 %v1862_v10, 0.0 }
 0x35e   :  { %v3685_v7 = vpack.c.bf16 %v2785_v4, %v2784_v54  ;;  %v3686_v8 = vpack.c.bf16 %v2787_v38, %v2786_v5 }
 0x360   :  { %4069 = vst [vmem:[#allocation8 + $0x190] sm:$0xff] %v3685_v7 }
 0x361   :  { %4070 = vst [vmem:[#allocation8 + $0x198] sm:$0xff] %v3686_v8  ;;  %v1523_v11 = vpop.f32.mrf.mxu2  ;;  %v1692_v12 = vpop.f32.mrf.mxu3 }
 0x362   :  { %v1524_v3 = vadd.f32 %v1523_v11, %v6272_v15  ;;  %v1693_v16 = vadd.f32 %v1692_v12, %v6277_v23  ;;  %v1357_v17 = vpop.f32.mrf.mxu1  ;;  %v1864_v19 = vpop.f32.mrf.mxu0 }
 0x363   :  { %v1358_v26 = vadd.f32 %v1357_v17, %v6260_v53  ;;  %v1865_v35 = vadd.f32 %v1864_v19, %v6264_v57 }
 0x364   :  { %v2798_v21 = vmax.f32 %v1524_v3, 0.0  ;;  %v2799_v24 = vmax.f32 %v1693_v16, 0.0 }
 0x365   :  { %4742 = vmatmul.msk.bf16.gmra.mxu1 %vm341_vm1, %v5253_v25  ;;  %4838 = vmatmul.msk.bf16.gmra.mxu0 %vm341_vm1, %v5253_v25  ;;  %v2810_v32 = vmax.f32 %v1358_v26, 0.0  ;;  %v2813_v27 = vmax.f32 %v1865_v35, 0.0 }
 0x366   :  { %v3691_v28 = vpack.c.bf16 %v2798_v21, %v2797_v13  ;;  %v3692_v34 = vpack.c.bf16 %v2800_v20, %v2799_v24  ;;  %4774 = vmatmul.msk.bf16.gmra.mxu2 %vm341_vm1, %v5253_v25  ;;  %4806 = vmatmul.msk.bf16.gmra.mxu3 %vm341_vm1, %v5253_v25  ;;  %v5255_v24 = vld [vmem:[%s7188_s0 + $0x78] sm:$0xff] }
 0x368   :  { %4075 = vst [vmem:[#allocation8 + $0x1c0] sm:$0xff] %v3691_v28 }
 0x369   :  { %4076 = vst [vmem:[#allocation8 + $0x1c8] sm:$0xff] %v3692_v34  ;;  %v1526_v42 = vpop.f32.mrf.mxu2  ;;  %v1695_v29 = vpop.f32.mrf.mxu3 }
 0x36a   :  { %v1527_v14 = vadd.f32 %v1526_v42, %v6272_v15  ;;  %v1696_v0 = vadd.f32 %v1695_v29, %v6277_v23  ;;  %v1359_v33 = vpop.f32.mrf.mxu1  ;;  %v1866_v36 = vpop.f32.mrf.mxu0 }
 0x36b   :  { %v1360_v43 = vadd.f32 %v1359_v33, %v6260_v53  ;;  %v1867_v44 = vadd.f32 %v1866_v36, %v6264_v57 }
 0x36c   :  { %v2811_v37 = vmax.f32 %v1527_v14, 0.0  ;;  %v2812_v39 = vmax.f32 %v1696_v0, 0.0 }
 0x36d   :  { %v2823_v51 = vmax.f32 %v1360_v43, 0.0  ;;  %v2826_v52 = vmax.f32 %v1867_v44, 0.0 }
 0x36e   :  { %v3697_v40 = vpack.c.bf16 %v2811_v37, %v2810_v32  ;;  %v3698_v41 = vpack.c.bf16 %v2813_v27, %v2812_v39 }
 0x370   :  { %4081 = vst [vmem:[#allocation8 + $0x1f0] sm:$0xff] %v3697_v40 }
 0x371   :  { %4082 = vst [vmem:[#allocation8 + $0x1f8] sm:$0xff] %v3698_v41  ;;  %v1528_v45 = vpop.f32.mrf.mxu2  ;;  %v1697_v46 = vpop.f32.mrf.mxu3 }
 0x372   :  { %v1529_v47 = vadd.f32 %v1528_v45, %v6272_v15  ;;  %v1698_v48 = vadd.f32 %v1697_v46, %v6277_v23  ;;  %v1362_v49 = vpop.f32.mrf.mxu1  ;;  %v1869_v50 = vpop.f32.mrf.mxu0 }
 0x373   :  { %v1363_v22 = vadd.f32 %v1362_v49, %v6260_v53  ;;  %v1870_v60 = vadd.f32 %v1869_v50, %v6264_v57 }
 0x374   :  { %v2824_v55 = vmax.f32 %v1529_v47, 0.0  ;;  %v2825_v56 = vmax.f32 %v1698_v48, 0.0 }
 0x375   :  { %4743 = vmatmul.msk.bf16.gmra.mxu1 %vm341_vm1, %v5254_v58  ;;  %4839 = vmatmul.msk.bf16.gmra.mxu0 %vm341_vm1, %v5254_v58  ;;  %v2836_v31 = vmax.f32 %v1363_v22, 0.0  ;;  %v2839_v18 = vmax.f32 %v1870_v60, 0.0 }
 0x376   :  { %v3703_v59 = vpack.c.bf16 %v2824_v55, %v2823_v51  ;;  %v3704_v30 = vpack.c.bf16 %v2826_v52, %v2825_v56  ;;  %4775 = vmatmul.msk.bf16.gmra.mxu2 %vm341_vm1, %v5254_v58  ;;  %4807 = vmatmul.msk.bf16.gmra.mxu3 %vm341_vm1, %v5254_v58  ;;  %v5256_v56 = vld [vmem:[%s7188_s0 + $0x80] sm:$0xff] }
 0x378   :  { %4087 = vst [vmem:[#allocation8 + $0x220] sm:$0xff] %v3703_v59 }
 0x379   :  { %4088 = vst [vmem:[#allocation8 + $0x228] sm:$0xff] %v3704_v30  ;;  %v1531_v1 = vpop.f32.mrf.mxu2  ;;  %v1700_v6 = vpop.f32.mrf.mxu3 }
 0x37a   :  { %v1532_v54 = vadd.f32 %v1531_v1, %v6272_v15  ;;  %v1701_v38 = vadd.f32 %v1700_v6, %v6277_v23  ;;  %v1364_v61 = vpop.f32.mrf.mxu1  ;;  %v1871_v62 = vpop.f32.mrf.mxu0 }
 0x37b   :  { %v1365_v7 = vadd.f32 %v1364_v61, %v6260_v53  ;;  %v1872_v8 = vadd.f32 %v1871_v62, %v6264_v57 }
 0x37c   :  { %v2837_v63 = vmax.f32 %v1532_v54, 0.0  ;;  %v2838_v2 = vmax.f32 %v1701_v38, 0.0 }
 0x37d   :  { %v2849_v17 = vmax.f32 %v1365_v7, 0.0  ;;  %v2852_v19 = vmax.f32 %v1872_v8, 0.0 }
 0x37e   :  { %v3709_v4 = vpack.c.bf16 %v2837_v63, %v2836_v31  ;;  %v3710_v5 = vpack.c.bf16 %v2839_v18, %v2838_v2 }
 0x380   :  { %4093 = vst [vmem:[#allocation8 + $0x250] sm:$0xff] %v3709_v4 }
 0x381   :  { %4094 = vst [vmem:[#allocation8 + $0x258] sm:$0xff] %v3710_v5  ;;  %v1533_v9 = vpop.f32.mrf.mxu2  ;;  %v1702_v10 = vpop.f32.mrf.mxu3 }
 0x382   :  { %v1534_v11 = vadd.f32 %v1533_v9, %v6272_v15  ;;  %v1703_v12 = vadd.f32 %v1702_v10, %v6277_v23  ;;  %v1367_v3 = vpop.f32.mrf.mxu1  ;;  %v1874_v16 = vpop.f32.mrf.mxu0 }
 0x383   :  { %v1368_v21 = vadd.f32 %v1367_v3, %v6260_v53  ;;  %v1875_v28 = vadd.f32 %v1874_v16, %v6264_v57 }
 0x384   :  { %v2850_v13 = vmax.f32 %v1534_v11, 0.0  ;;  %v2851_v20 = vmax.f32 %v1703_v12, 0.0 }
 0x385   :  { %4744 = vmatmul.msk.bf16.gmra.mxu1 %vm341_vm1, %v5255_v24  ;;  %4840 = vmatmul.msk.bf16.gmra.mxu0 %vm341_vm1, %v5255_v24  ;;  %v2862_v42 = vmax.f32 %v1368_v21, 0.0  ;;  %v2865_v29 = vmax.f32 %v1875_v28, 0.0 }
 0x386   :  { %v3715_v26 = vpack.c.bf16 %v2850_v13, %v2849_v17  ;;  %v3716_v25 = vpack.c.bf16 %v2852_v19, %v2851_v20  ;;  %4776 = vmatmul.msk.bf16.gmra.mxu2 %vm341_vm1, %v5255_v24  ;;  %4808 = vmatmul.msk.bf16.gmra.mxu3 %vm341_vm1, %v5255_v24  ;;  %v5257_v20 = vld [vmem:[%s7188_s0 + $0x88] sm:$0xff] }
 0x388   :  { %4099 = vst [vmem:[#allocation8 + $0x280] sm:$0xff] %v3715_v26 }
 0x389   :  { %4100 = vst [vmem:[#allocation8 + $0x288] sm:$0xff] %v3716_v25  ;;  %v1536_v34 = vpop.f32.mrf.mxu2  ;;  %v1705_v35 = vpop.f32.mrf.mxu3 }
 0x38a   :  { %v1537_v32 = vadd.f32 %v1536_v34, %v6272_v15  ;;  %v1706_v27 = vadd.f32 %v1705_v35, %v6277_v23  ;;  %v1369_v14 = vpop.f32.mrf.mxu1  ;;  %v1876_v0 = vpop.f32.mrf.mxu0 }
 0x38b   :  { %v1370_v40 = vadd.f32 %v1369_v14, %v6260_v53  ;;  %v1877_v41 = vadd.f32 %v1876_v0, %v6264_v57 }
 0x38c   :  { %v2863_v33 = vmax.f32 %v1537_v32, 0.0  ;;  %v2864_v36 = vmax.f32 %v1706_v27, 0.0 }
 0x38d   :  { %v2875_v49 = vmax.f32 %v1370_v40, 0.0  ;;  %v2878_v50 = vmax.f32 %v1877_v41, 0.0 }
 0x38e   :  { %v3721_v37 = vpack.c.bf16 %v2863_v33, %v2862_v42  ;;  %v3722_v39 = vpack.c.bf16 %v2865_v29, %v2864_v36 }
 0x390   :  { %4105 = vst [vmem:[#allocation8 + $0x2b0] sm:$0xff] %v3721_v37 }
 0x391   :  { %4106 = vst [vmem:[#allocation8 + $0x2b8] sm:$0xff] %v3722_v39  ;;  %v1538_v43 = vpop.f32.mrf.mxu2  ;;  %v1707_v44 = vpop.f32.mrf.mxu3 }
 0x392   :  { %v1539_v45 = vadd.f32 %v1538_v43, %v6272_v15  ;;  %v1708_v46 = vadd.f32 %v1707_v44, %v6277_v23  ;;  %v1372_v47 = vpop.f32.mrf.mxu1  ;;  %v1879_v48 = vpop.f32.mrf.mxu0 }
 0x393   :  { %v1373_v55 = vadd.f32 %v1372_v47, %v6260_v53  ;;  %v1880_v59 = vadd.f32 %v1879_v48, %v6264_v57 }
 0x394   :  { %v2876_v51 = vmax.f32 %v1539_v45, 0.0  ;;  %v2877_v52 = vmax.f32 %v1708_v46, 0.0 }
 0x395   :  { %4745 = vmatmul.msk.bf16.gmra.mxu1 %vm341_vm1, %v5256_v56  ;;  %4841 = vmatmul.msk.bf16.gmra.mxu0 %vm341_vm1, %v5256_v56  ;;  %v2888_v1 = vmax.f32 %v1373_v55, 0.0  ;;  %v2891_v6 = vmax.f32 %v1880_v59, 0.0 }
 0x396   :  { %v3727_v22 = vpack.c.bf16 %v2876_v51, %v2875_v49  ;;  %v3728_v58 = vpack.c.bf16 %v2878_v50, %v2877_v52  ;;  %4777 = vmatmul.msk.bf16.gmra.mxu2 %vm341_vm1, %v5256_v56  ;;  %4809 = vmatmul.msk.bf16.gmra.mxu3 %vm341_vm1, %v5256_v56  ;;  %v5258_v52 = vld [vmem:[%s7188_s0 + $0x90] sm:$0xff] }
 0x398   :  { %4111 = vst [vmem:[#allocation8 + $0x2e0] sm:$0xff] %v3727_v22 }
 0x399   :  { %4112 = vst [vmem:[#allocation8 + $0x2e8] sm:$0xff] %v3728_v58  ;;  %v1541_v30 = vpop.f32.mrf.mxu2  ;;  %v1710_v60 = vpop.f32.mrf.mxu3 }
 0x39a   :  { %v1542_v31 = vadd.f32 %v1541_v30, %v6272_v15  ;;  %v1711_v18 = vadd.f32 %v1710_v60, %v6277_v23  ;;  %v1374_v54 = vpop.f32.mrf.mxu1  ;;  %v1881_v38 = vpop.f32.mrf.mxu0 }
 0x39b   :  { %v1375_v4 = vadd.f32 %v1374_v54, %v6260_v53  ;;  %v1882_v5 = vadd.f32 %v1881_v38, %v6264_v57 }
 0x39c   :  { %v2889_v61 = vmax.f32 %v1542_v31, 0.0  ;;  %v2890_v62 = vmax.f32 %v1711_v18, 0.0 }
 0x39d   :  { %v2901_v3 = vmax.f32 %v1375_v4, 0.0  ;;  %v2904_v16 = vmax.f32 %v1882_v5, 0.0 }
 0x39e   :  { %v3733_v63 = vpack.c.bf16 %v2889_v61, %v2888_v1  ;;  %v3734_v2 = vpack.c.bf16 %v2891_v6, %v2890_v62 }
 0x3a0   :  { %4117 = vst [vmem:[#allocation8 + $0x310] sm:$0xff] %v3733_v63 }
 0x3a1   :  { %4118 = vst [vmem:[#allocation8 + $0x318] sm:$0xff] %v3734_v2  ;;  %v1543_v7 = vpop.f32.mrf.mxu2  ;;  %v1712_v8 = vpop.f32.mrf.mxu3 }
 0x3a2   :  { %v1544_v9 = vadd.f32 %v1543_v7, %v6272_v15  ;;  %v1713_v10 = vadd.f32 %v1712_v8, %v6277_v23  ;;  %v1377_v11 = vpop.f32.mrf.mxu1  ;;  %v1884_v12 = vpop.f32.mrf.mxu0 }
 0x3a3   :  { %v1378_v13 = vadd.f32 %v1377_v11, %v6260_v53  ;;  %v1885_v26 = vadd.f32 %v1884_v12, %v6264_v57 }
 0x3a4   :  { %v2902_v17 = vmax.f32 %v1544_v9, 0.0  ;;  %v2903_v19 = vmax.f32 %v1713_v10, 0.0 }
 0x3a5   :  { %4746 = vmatmul.msk.bf16.gmra.mxu1 %vm341_vm1, %v5257_v20  ;;  %4842 = vmatmul.msk.bf16.gmra.mxu0 %vm341_vm1, %v5257_v20  ;;  %v2914_v34 = vmax.f32 %v1378_v13, 0.0  ;;  %v2917_v35 = vmax.f32 %v1885_v26, 0.0 }
 0x3a6   :  { %v3739_v21 = vpack.c.bf16 %v2902_v17, %v2901_v3  ;;  %v3740_v24 = vpack.c.bf16 %v2904_v16, %v2903_v19  ;;  %4778 = vmatmul.msk.bf16.gmra.mxu2 %vm341_vm1, %v5257_v20  ;;  %4810 = vmatmul.msk.bf16.gmra.mxu3 %vm341_vm1, %v5257_v20  ;;  %v5259_v19 = vld [vmem:[%s7188_s0 + $0x98] sm:$0xff] }
 0x3a8   :  { %4123 = vst [vmem:[#allocation8 + $0x340] sm:$0xff] %v3739_v21 }
 0x3a9   :  { %4124 = vst [vmem:[#allocation8 + $0x348] sm:$0xff] %v3740_v24  ;;  %v1546_v25 = vpop.f32.mrf.mxu2  ;;  %v1715_v28 = vpop.f32.mrf.mxu3 }
 0x3aa   :  { %v1547_v42 = vadd.f32 %v1546_v25, %v6272_v15  ;;  %v1716_v29 = vadd.f32 %v1715_v28, %v6277_v23  ;;  %v1379_v32 = vpop.f32.mrf.mxu1  ;;  %v1886_v27 = vpop.f32.mrf.mxu0 }
 0x3ab   :  { %v1380_v37 = vadd.f32 %v1379_v32, %v6260_v53  ;;  %v1887_v39 = vadd.f32 %v1886_v27, %v6264_v57 }
 0x3ac   :  { %v2915_v14 = vmax.f32 %v1547_v42, 0.0  ;;  %v2916_v0 = vmax.f32 %v1716_v29, 0.0 }
 0x3ad   :  { %v2927_v47 = vmax.f32 %v1380_v37, 0.0  ;;  %v2930_v48 = vmax.f32 %v1887_v39, 0.0 }
 0x3ae   :  { %v3745_v33 = vpack.c.bf16 %v2915_v14, %v2914_v34  ;;  %v3746_v36 = vpack.c.bf16 %v2917_v35, %v2916_v0 }
 0x3b0   :  { %4129 = vst [vmem:[#allocation8 + $0x370] sm:$0xff] %v3745_v33 }
 0x3b1   :  { %4130 = vst [vmem:[#allocation8 + $0x378] sm:$0xff] %v3746_v36  ;;  %v1548_v40 = vpop.f32.mrf.mxu2  ;;  %v1717_v41 = vpop.f32.mrf.mxu3 }
 0x3b2   :  { %v1549_v43 = vadd.f32 %v1548_v40, %v6272_v15  ;;  %v1718_v44 = vadd.f32 %v1717_v41, %v6277_v23  ;;  %v1382_v45 = vpop.f32.mrf.mxu1  ;;  %v1889_v46 = vpop.f32.mrf.mxu0 }
 0x3b3   :  { %v1383_v51 = vadd.f32 %v1382_v45, %v6260_v53  ;;  %v1890_v22 = vadd.f32 %v1889_v46, %v6264_v57 }
 0x3b4   :  { %v2928_v49 = vmax.f32 %v1549_v43, 0.0  ;;  %v2929_v50 = vmax.f32 %v1718_v44, 0.0 }
 0x3b5   :  { %4747 = vmatmul.msk.bf16.gmra.mxu1 %vm341_vm1, %v5258_v52  ;;  %4843 = vmatmul.msk.bf16.gmra.mxu0 %vm341_vm1, %v5258_v52  ;;  %v2940_v30 = vmax.f32 %v1383_v51, 0.0  ;;  %v2943_v60 = vmax.f32 %v1890_v22, 0.0 }
 0x3b6   :  { %v3751_v55 = vpack.c.bf16 %v2928_v49, %v2927_v47  ;;  %v3752_v56 = vpack.c.bf16 %v2930_v48, %v2929_v50  ;;  %4779 = vmatmul.msk.bf16.gmra.mxu2 %vm341_vm1, %v5258_v52  ;;  %4811 = vmatmul.msk.bf16.gmra.mxu3 %vm341_vm1, %v5258_v52  ;;  %v5260_v50 = vld [vmem:[%s7188_s0 + $0xa0] sm:$0xff] }
 0x3b8   :  { %4135 = vst [vmem:[#allocation8 + $0x3a0] sm:$0xff] %v3751_v55 }
 0x3b9   :  { %4136 = vst [vmem:[#allocation8 + $0x3a8] sm:$0xff] %v3752_v56  ;;  %v1551_v58 = vpop.f32.mrf.mxu2  ;;  %v1720_v59 = vpop.f32.mrf.mxu3 }
 0x3ba   :  { %v1552_v1 = vadd.f32 %v1551_v58, %v6272_v15  ;;  %v1721_v6 = vadd.f32 %v1720_v59, %v6277_v23  ;;  %v1384_v31 = vpop.f32.mrf.mxu1  ;;  %v1891_v18 = vpop.f32.mrf.mxu0 }
 0x3bb   :  { %v1385_v63 = vadd.f32 %v1384_v31, %v6260_v53  ;;  %v1892_v2 = vadd.f32 %v1891_v18, %v6264_v57 }
 0x3bc   :  { %v2941_v54 = vmax.f32 %v1552_v1, 0.0  ;;  %v2942_v38 = vmax.f32 %v1721_v6, 0.0 }
 0x3bd   :  { %v2953_v11 = vmax.f32 %v1385_v63, 0.0  ;;  %v2956_v12 = vmax.f32 %v1892_v2, 0.0 }
 0x3be   :  { %v3757_v61 = vpack.c.bf16 %v2941_v54, %v2940_v30  ;;  %v3758_v62 = vpack.c.bf16 %v2943_v60, %v2942_v38 }
 0x3c0   :  { %4141 = vst [vmem:[#allocation8 + $0x3d0] sm:$0xff] %v3757_v61 }
 0x3c1   :  { %4142 = vst [vmem:[#allocation8 + $0x3d8] sm:$0xff] %v3758_v62  ;;  %v1553_v4 = vpop.f32.mrf.mxu2  ;;  %v1722_v5 = vpop.f32.mrf.mxu3 }
 0x3c2   :  { %v1554_v7 = vadd.f32 %v1553_v4, %v6272_v15  ;;  %v1723_v8 = vadd.f32 %v1722_v5, %v6277_v23  ;;  %v1387_v9 = vpop.f32.mrf.mxu1  ;;  %v1894_v10 = vpop.f32.mrf.mxu0 }
 0x3c3   :  { %v1388_v17 = vadd.f32 %v1387_v9, %v6260_v53  ;;  %v1895_v21 = vadd.f32 %v1894_v10, %v6264_v57 }
 0x3c4   :  { %v2954_v3 = vmax.f32 %v1554_v7, 0.0  ;;  %v2955_v16 = vmax.f32 %v1723_v8, 0.0 }
 0x3c5   :  { %4748 = vmatmul.msk.bf16.gmra.mxu1 %vm341_vm1, %v5259_v19  ;;  %4844 = vmatmul.msk.bf16.gmra.mxu0 %vm341_vm1, %v5259_v19  ;;  %v2966_v25 = vmax.f32 %v1388_v17, 0.0  ;;  %v2969_v28 = vmax.f32 %v1895_v21, 0.0 }
 0x3c6   :  { %v3763_v13 = vpack.c.bf16 %v2954_v3, %v2953_v11  ;;  %v3764_v20 = vpack.c.bf16 %v2956_v12, %v2955_v16  ;;  %4780 = vmatmul.msk.bf16.gmra.mxu2 %vm341_vm1, %v5259_v19  ;;  %4812 = vmatmul.msk.bf16.gmra.mxu3 %vm341_vm1, %v5259_v19  ;;  %v5261_v16 = vld [vmem:[%s7188_s0 + $0xa8] sm:$0xff] }
 0x3c8   :  { %4147 = vst [vmem:[#allocation8 + $0x400] sm:$0xff] %v3763_v13 }
 0x3c9   :  { %4148 = vst [vmem:[#allocation8 + $0x408] sm:$0xff] %v3764_v20  ;;  %v1556_v24 = vpop.f32.mrf.mxu2  ;;  %v1725_v26 = vpop.f32.mrf.mxu3 }
 0x3ca   :  { %v1557_v34 = vadd.f32 %v1556_v24, %v6272_v15  ;;  %v1726_v35 = vadd.f32 %v1725_v26, %v6277_v23  ;;  %v1389_v42 = vpop.f32.mrf.mxu1  ;;  %v1896_v29 = vpop.f32.mrf.mxu0 }
 0x3cb   :  { %v1390_v33 = vadd.f32 %v1389_v42, %v6260_v53  ;;  %v1897_v36 = vadd.f32 %v1896_v29, %v6264_v57 }
 0x3cc   :  { %v2967_v32 = vmax.f32 %v1557_v34, 0.0  ;;  %v2968_v27 = vmax.f32 %v1726_v35, 0.0 }
 0x3cd   :  { %v2979_v45 = vmax.f32 %v1390_v33, 0.0  ;;  %v2982_v46 = vmax.f32 %v1897_v36, 0.0 }
 0x3ce   :  { %v3769_v14 = vpack.c.bf16 %v2967_v32, %v2966_v25  ;;  %v3770_v0 = vpack.c.bf16 %v2969_v28, %v2968_v27 }
 0x3d0   :  { %4153 = vst [vmem:[#allocation8 + $0x430] sm:$0xff] %v3769_v14 }
 0x3d1   :  { %4154 = vst [vmem:[#allocation8 + $0x438] sm:$0xff] %v3770_v0  ;;  %v1558_v37 = vpop.f32.mrf.mxu2  ;;  %v1727_v39 = vpop.f32.mrf.mxu3 }
 0x3d2   :  { %v1559_v40 = vadd.f32 %v1558_v37, %v6272_v15  ;;  %v1728_v41 = vadd.f32 %v1727_v39, %v6277_v23  ;;  %v1392_v43 = vpop.f32.mrf.mxu1  ;;  %v1899_v44 = vpop.f32.mrf.mxu0 }
 0x3d3   :  { %v1393_v49 = vadd.f32 %v1392_v43, %v6260_v53  ;;  %v1900_v55 = vadd.f32 %v1899_v44, %v6264_v57 }
 0x3d4   :  { %v2980_v47 = vmax.f32 %v1559_v40, 0.0  ;;  %v2981_v48 = vmax.f32 %v1728_v41, 0.0 }
 0x3d5   :  { %4749 = vmatmul.msk.bf16.gmra.mxu1 %vm341_vm1, %v5260_v50  ;;  %4845 = vmatmul.msk.bf16.gmra.mxu0 %vm341_vm1, %v5260_v50  ;;  %v2992_v58 = vmax.f32 %v1393_v49, 0.0  ;;  %v2995_v59 = vmax.f32 %v1900_v55, 0.0 }
 0x3d6   :  { %v3775_v51 = vpack.c.bf16 %v2980_v47, %v2979_v45  ;;  %v3776_v52 = vpack.c.bf16 %v2982_v46, %v2981_v48  ;;  %4781 = vmatmul.msk.bf16.gmra.mxu2 %vm341_vm1, %v5260_v50  ;;  %4813 = vmatmul.msk.bf16.gmra.mxu3 %vm341_vm1, %v5260_v50  ;;  %v5262_v48 = vld [vmem:[%s7188_s0 + $0xb0] sm:$0xff] }
 0x3d8   :  { %4159 = vst [vmem:[#allocation8 + $0x460] sm:$0xff] %v3775_v51 }
 0x3d9   :  { %4160 = vst [vmem:[#allocation8 + $0x468] sm:$0xff] %v3776_v52  ;;  %v1561_v56 = vpop.f32.mrf.mxu2  ;;  %v1730_v22 = vpop.f32.mrf.mxu3 }
 0x3da   :  { %v1562_v30 = vadd.f32 %v1561_v56, %v6272_v15  ;;  %v1731_v60 = vadd.f32 %v1730_v22, %v6277_v23  ;;  %v1394_v1 = vpop.f32.mrf.mxu1  ;;  %v1901_v6 = vpop.f32.mrf.mxu0 }
 0x3db   :  { %v1395_v61 = vadd.f32 %v1394_v1, %v6260_v53  ;;  %v1902_v62 = vadd.f32 %v1901_v6, %v6264_v57 }
 0x3dc   :  { %v2993_v31 = vmax.f32 %v1562_v30, 0.0  ;;  %v2994_v18 = vmax.f32 %v1731_v60, 0.0 }
 0x3dd   :  { %v3005_v9 = vmax.f32 %v1395_v61, 0.0  ;;  %v3008_v10 = vmax.f32 %v1902_v62, 0.0 }
 0x3de   :  { %v3781_v54 = vpack.c.bf16 %v2993_v31, %v2992_v58  ;;  %v3782_v38 = vpack.c.bf16 %v2995_v59, %v2994_v18 }
 0x3e0   :  { %4165 = vst [vmem:[#allocation8 + $0x490] sm:$0xff] %v3781_v54 }
 0x3e1   :  { %4166 = vst [vmem:[#allocation8 + $0x498] sm:$0xff] %v3782_v38  ;;  %v1563_v63 = vpop.f32.mrf.mxu2  ;;  %v1732_v2 = vpop.f32.mrf.mxu3 }
 0x3e2   :  { %v1564_v4 = vadd.f32 %v1563_v63, %v6272_v15  ;;  %v1733_v5 = vadd.f32 %v1732_v2, %v6277_v23  ;;  %v1397_v7 = vpop.f32.mrf.mxu1  ;;  %v1904_v8 = vpop.f32.mrf.mxu0 }
 0x3e3   :  { %v1398_v3 = vadd.f32 %v1397_v7, %v6260_v53  ;;  %v1905_v13 = vadd.f32 %v1904_v8, %v6264_v57 }
 0x3e4   :  { %v3006_v11 = vmax.f32 %v1564_v4, 0.0  ;;  %v3007_v12 = vmax.f32 %v1733_v5, 0.0 }
 0x3e5   :  { %4750 = vmatmul.msk.bf16.gmra.mxu1 %vm341_vm1, %v5261_v16  ;;  %4846 = vmatmul.msk.bf16.gmra.mxu0 %vm341_vm1, %v5261_v16  ;;  %v3018_v24 = vmax.f32 %v1398_v3, 0.0  ;;  %v3021_v26 = vmax.f32 %v1905_v13, 0.0 }
 0x3e6   :  { %v3787_v17 = vpack.c.bf16 %v3006_v11, %v3005_v9  ;;  %v3788_v19 = vpack.c.bf16 %v3008_v10, %v3007_v12  ;;  %4782 = vmatmul.msk.bf16.gmra.mxu2 %vm341_vm1, %v5261_v16  ;;  %4814 = vmatmul.msk.bf16.gmra.mxu3 %vm341_vm1, %v5261_v16  ;;  %v5263_v12 = vld [vmem:[%s7188_s0 + $0xb8] sm:$0xff] }
 0x3e8   :  { %4171 = vst [vmem:[#allocation8 + $0x4c0] sm:$0xff] %v3787_v17 }
 0x3e9   :  { %4172 = vst [vmem:[#allocation8 + $0x4c8] sm:$0xff] %v3788_v19  ;;  %v1566_v20 = vpop.f32.mrf.mxu2  ;;  %v1735_v21 = vpop.f32.mrf.mxu3 }
 0x3ea   :  { %v1567_v25 = vadd.f32 %v1566_v20, %v6272_v15  ;;  %v1736_v28 = vadd.f32 %v1735_v21, %v6277_v23  ;;  %v1399_v34 = vpop.f32.mrf.mxu1  ;;  %v1906_v35 = vpop.f32.mrf.mxu0 }
 0x3eb   :  { %v1400_v14 = vadd.f32 %v1399_v34, %v6260_v53  ;;  %v1907_v0 = vadd.f32 %v1906_v35, %v6264_v57 }
 0x3ec   :  { %v3019_v42 = vmax.f32 %v1567_v25, 0.0  ;;  %v3020_v29 = vmax.f32 %v1736_v28, 0.0 }
 0x3ed   :  { %v3031_v43 = vmax.f32 %v1400_v14, 0.0  ;;  %v3034_v44 = vmax.f32 %v1907_v0, 0.0 }
 0x3ee   :  { %v3793_v32 = vpack.c.bf16 %v3019_v42, %v3018_v24  ;;  %v3794_v27 = vpack.c.bf16 %v3021_v26, %v3020_v29 }
 0x3f0   :  { %4177 = vst [vmem:[#allocation8 + $0x4f0] sm:$0xff] %v3793_v32 }
 0x3f1   :  { %4178 = vst [vmem:[#allocation8 + $0x4f8] sm:$0xff] %v3794_v27  ;;  %v1568_v33 = vpop.f32.mrf.mxu2  ;;  %v1737_v36 = vpop.f32.mrf.mxu3 }
 0x3f2   :  { %v1569_v37 = vadd.f32 %v1568_v33, %v6272_v15  ;;  %v1738_v39 = vadd.f32 %v1737_v36, %v6277_v23  ;;  %v1402_v40 = vpop.f32.mrf.mxu1  ;;  %v1909_v41 = vpop.f32.mrf.mxu0 }
 0x3f3   :  { %v1403_v47 = vadd.f32 %v1402_v40, %v6260_v53  ;;  %v1910_v51 = vadd.f32 %v1909_v41, %v6264_v57 }
 0x3f4   :  { %v3032_v45 = vmax.f32 %v1569_v37, 0.0  ;;  %v3033_v46 = vmax.f32 %v1738_v39, 0.0 }
 0x3f5   :  { %4751 = vmatmul.msk.bf16.gmra.mxu1 %vm341_vm1, %v5262_v48  ;;  %4847 = vmatmul.msk.bf16.gmra.mxu0 %vm341_vm1, %v5262_v48  ;;  %v3044_v56 = vmax.f32 %v1403_v47, 0.0  ;;  %v3047_v22 = vmax.f32 %v1910_v51, 0.0 }
 0x3f6   :  { %v3799_v49 = vpack.c.bf16 %v3032_v45, %v3031_v43  ;;  %v3800_v50 = vpack.c.bf16 %v3034_v44, %v3033_v46  ;;  %4783 = vmatmul.msk.bf16.gmra.mxu2 %vm341_vm1, %v5262_v48  ;;  %4815 = vmatmul.msk.bf16.gmra.mxu3 %vm341_vm1, %v5262_v48  ;;  %v5264_v46 = vld [vmem:[%s7188_s0 + $0xc0] sm:$0xff] }
 0x3f8   :  { %4183 = vst [vmem:[#allocation8 + $0x520] sm:$0xff] %v3799_v49 }
 0x3f9   :  { %4184 = vst [vmem:[#allocation8 + $0x528] sm:$0xff] %v3800_v50  ;;  %v1571_v52 = vpop.f32.mrf.mxu2  ;;  %v1740_v55 = vpop.f32.mrf.mxu3 }
 0x3fa   :  { %v1572_v58 = vadd.f32 %v1571_v52, %v6272_v15  ;;  %v1741_v59 = vadd.f32 %v1740_v55, %v6277_v23  ;;  %v1404_v30 = vpop.f32.mrf.mxu1  ;;  %v1911_v60 = vpop.f32.mrf.mxu0 }
 0x3fb   :  { %v1405_v54 = vadd.f32 %v1404_v30, %v6260_v53  ;;  %v1912_v38 = vadd.f32 %v1911_v60, %v6264_v57 }
 0x3fc   :  { %v3045_v1 = vmax.f32 %v1572_v58, 0.0  ;;  %v3046_v6 = vmax.f32 %v1741_v59, 0.0 }
 0x3fd   :  { %v3057_v7 = vmax.f32 %v1405_v54, 0.0  ;;  %v3060_v8 = vmax.f32 %v1912_v38, 0.0 }
 0x3fe   :  { %v3805_v31 = vpack.c.bf16 %v3045_v1, %v3044_v56  ;;  %v3806_v18 = vpack.c.bf16 %v3047_v22, %v3046_v6 }
 0x400   :  { %4189 = vst [vmem:[#allocation8 + $0x550] sm:$0xff] %v3805_v31 }
 0x401   :  { %4190 = vst [vmem:[#allocation8 + $0x558] sm:$0xff] %v3806_v18  ;;  %v1573_v61 = vpop.f32.mrf.mxu2  ;;  %v1742_v62 = vpop.f32.mrf.mxu3 }
 0x402   :  { %v1574_v63 = vadd.f32 %v1573_v61, %v6272_v15  ;;  %v1743_v2 = vadd.f32 %v1742_v62, %v6277_v23  ;;  %v1407_v4 = vpop.f32.mrf.mxu1  ;;  %v1914_v5 = vpop.f32.mrf.mxu0 }
 0x403   :  { %v1408_v11 = vadd.f32 %v1407_v4, %v6260_v53  ;;  %v1915_v17 = vadd.f32 %v1914_v5, %v6264_v57 }
 0x404   :  { %v3058_v9 = vmax.f32 %v1574_v63, 0.0  ;;  %v3059_v10 = vmax.f32 %v1743_v2, 0.0 }
 0x405   :  { %4752 = vmatmul.msk.bf16.gmra.mxu1 %vm341_vm1, %v5263_v12  ;;  %4848 = vmatmul.msk.bf16.gmra.mxu0 %vm341_vm1, %v5263_v12  ;;  %v3070_v20 = vmax.f32 %v1408_v11, 0.0  ;;  %v3073_v21 = vmax.f32 %v1915_v17, 0.0 }
 0x406   :  { %v3811_v3 = vpack.c.bf16 %v3058_v9, %v3057_v7  ;;  %v3812_v16 = vpack.c.bf16 %v3060_v8, %v3059_v10  ;;  %4784 = vmatmul.msk.bf16.gmra.mxu2 %vm341_vm1, %v5263_v12  ;;  %4816 = vmatmul.msk.bf16.gmra.mxu3 %vm341_vm1, %v5263_v12  ;;  %v5265_v10 = vld [vmem:[%s7188_s0 + $0xc8] sm:$0xff] }
 0x408   :  { %4195 = vst [vmem:[#allocation8 + $0x580] sm:$0xff] %v3811_v3 }
 0x409   :  { %4196 = vst [vmem:[#allocation8 + $0x588] sm:$0xff] %v3812_v16  ;;  %v1576_v19 = vpop.f32.mrf.mxu2  ;;  %v1745_v13 = vpop.f32.mrf.mxu3 }
 0x40a   :  { %v1577_v24 = vadd.f32 %v1576_v19, %v6272_v15  ;;  %v1746_v26 = vadd.f32 %v1745_v13, %v6277_v23  ;;  %v1409_v25 = vpop.f32.mrf.mxu1  ;;  %v1916_v28 = vpop.f32.mrf.mxu0 }
 0x40b   :  { %v1410_v32 = vadd.f32 %v1409_v25, %v6260_v53  ;;  %v1917_v27 = vadd.f32 %v1916_v28, %v6264_v57 }
 0x40c   :  { %v3071_v34 = vmax.f32 %v1577_v24, 0.0  ;;  %v3072_v35 = vmax.f32 %v1746_v26, 0.0 }
 0x40d   :  { %v3083_v40 = vmax.f32 %v1410_v32, 0.0  ;;  %v3086_v41 = vmax.f32 %v1917_v27, 0.0 }
 0x40e   :  { %v3817_v42 = vpack.c.bf16 %v3071_v34, %v3070_v20  ;;  %v3818_v29 = vpack.c.bf16 %v3073_v21, %v3072_v35 }
 0x410   :  { %4201 = vst [vmem:[#allocation8 + $0x5b0] sm:$0xff] %v3817_v42 }
 0x411   :  { %4202 = vst [vmem:[#allocation8 + $0x5b8] sm:$0xff] %v3818_v29  ;;  %v1578_v14 = vpop.f32.mrf.mxu2  ;;  %v1747_v0 = vpop.f32.mrf.mxu3 }
 0x412   :  { %v1579_v33 = vadd.f32 %v1578_v14, %v6272_v15  ;;  %v1748_v36 = vadd.f32 %v1747_v0, %v6277_v23  ;;  %v1412_v37 = vpop.f32.mrf.mxu1  ;;  %v1919_v39 = vpop.f32.mrf.mxu0 }
 0x413   :  { %v1413_v45 = vadd.f32 %v1412_v37, %v6260_v53  ;;  %v1920_v49 = vadd.f32 %v1919_v39, %v6264_v57 }
 0x414   :  { %v3084_v43 = vmax.f32 %v1579_v33, 0.0  ;;  %v3085_v44 = vmax.f32 %v1748_v36, 0.0 }
 0x415   :  { %4753 = vmatmul.msk.bf16.gmra.mxu1 %vm341_vm1, %v5264_v46  ;;  %4849 = vmatmul.msk.bf16.gmra.mxu0 %vm341_vm1, %v5264_v46  ;;  %v3096_v52 = vmax.f32 %v1413_v45, 0.0  ;;  %v3099_v55 = vmax.f32 %v1920_v49, 0.0 }
 0x416   :  { %v3823_v47 = vpack.c.bf16 %v3084_v43, %v3083_v40  ;;  %v3824_v48 = vpack.c.bf16 %v3086_v41, %v3085_v44  ;;  %4785 = vmatmul.msk.bf16.gmra.mxu2 %vm341_vm1, %v5264_v46  ;;  %4817 = vmatmul.msk.bf16.gmra.mxu3 %vm341_vm1, %v5264_v46  ;;  %v5266_v44 = vld [vmem:[%s7188_s0 + $0xd0] sm:$0xff] }
 0x418   :  { %4207 = vst [vmem:[#allocation8 + $0x5e0] sm:$0xff] %v3823_v47 }
 0x419   :  { %4208 = vst [vmem:[#allocation8 + $0x5e8] sm:$0xff] %v3824_v48  ;;  %v1581_v50 = vpop.f32.mrf.mxu2  ;;  %v1750_v51 = vpop.f32.mrf.mxu3 }
 0x41a   :  { %v1582_v56 = vadd.f32 %v1581_v50, %v6272_v15  ;;  %v1751_v22 = vadd.f32 %v1750_v51, %v6277_v23  ;;  %v1414_v58 = vpop.f32.mrf.mxu1  ;;  %v1921_v59 = vpop.f32.mrf.mxu0 }
 0x41b   :  { %v1415_v31 = vadd.f32 %v1414_v58, %v6260_v53  ;;  %v1922_v18 = vadd.f32 %v1921_v59, %v6264_v57 }
 0x41c   :  { %v3097_v30 = vmax.f32 %v1582_v56, 0.0  ;;  %v3098_v60 = vmax.f32 %v1751_v22, 0.0 }
 0x41d   :  { %v3109_v4 = vmax.f32 %v1415_v31, 0.0  ;;  %v3112_v5 = vmax.f32 %v1922_v18, 0.0 }
 0x41e   :  { %v3829_v1 = vpack.c.bf16 %v3097_v30, %v3096_v52  ;;  %v3830_v6 = vpack.c.bf16 %v3099_v55, %v3098_v60 }
 0x420   :  { %4213 = vst [vmem:[#allocation8 + $0x610] sm:$0xff] %v3829_v1 }
 0x421   :  { %4214 = vst [vmem:[#allocation8 + $0x618] sm:$0xff] %v3830_v6  ;;  %v1583_v54 = vpop.f32.mrf.mxu2  ;;  %v1752_v38 = vpop.f32.mrf.mxu3 }
 0x422   :  { %v1584_v61 = vadd.f32 %v1583_v54, %v6272_v15  ;;  %v1753_v62 = vadd.f32 %v1752_v38, %v6277_v23  ;;  %v1417_v63 = vpop.f32.mrf.mxu1  ;;  %v1924_v2 = vpop.f32.mrf.mxu0 }
 0x423   :  { %v1418_v9 = vadd.f32 %v1417_v63, %v6260_v53  ;;  %v1925_v3 = vadd.f32 %v1924_v2, %v6264_v57 }
 0x424   :  { %v3110_v7 = vmax.f32 %v1584_v61, 0.0  ;;  %v3111_v8 = vmax.f32 %v1753_v62, 0.0 }
 0x425   :  { %4754 = vmatmul.msk.bf16.gmra.mxu1 %vm341_vm1, %v5265_v10  ;;  %4850 = vmatmul.msk.bf16.gmra.mxu0 %vm341_vm1, %v5265_v10  ;;  %v3122_v19 = vmax.f32 %v1418_v9, 0.0  ;;  %v3125_v13 = vmax.f32 %v1925_v3, 0.0 }
 0x426   :  { %v3835_v11 = vpack.c.bf16 %v3110_v7, %v3109_v4  ;;  %v3836_v12 = vpack.c.bf16 %v3112_v5, %v3111_v8  ;;  %4786 = vmatmul.msk.bf16.gmra.mxu2 %vm341_vm1, %v5265_v10  ;;  %4818 = vmatmul.msk.bf16.gmra.mxu3 %vm341_vm1, %v5265_v10  ;;  %v5267_v8 = vld [vmem:[%s7188_s0 + $0xd8] sm:$0xff] }
 0x428   :  { %4219 = vst [vmem:[#allocation8 + $0x640] sm:$0xff] %v3835_v11 }
 0x429   :  { %4220 = vst [vmem:[#allocation8 + $0x648] sm:$0xff] %v3836_v12  ;;  %v1586_v16 = vpop.f32.mrf.mxu2  ;;  %v1755_v17 = vpop.f32.mrf.mxu3 }
 0x42a   :  { %v1587_v20 = vadd.f32 %v1586_v16, %v6272_v15  ;;  %v1756_v21 = vadd.f32 %v1755_v17, %v6277_v23  ;;  %v1419_v24 = vpop.f32.mrf.mxu1  ;;  %v1926_v26 = vpop.f32.mrf.mxu0 }
 0x42b   :  { %v1420_v42 = vadd.f32 %v1419_v24, %v6260_v53  ;;  %v1927_v29 = vadd.f32 %v1926_v26, %v6264_v57 }
 0x42c   :  { %v3123_v25 = vmax.f32 %v1587_v20, 0.0  ;;  %v3124_v28 = vmax.f32 %v1756_v21, 0.0 }
 0x42d   :  { %v3135_v37 = vmax.f32 %v1420_v42, 0.0  ;;  %v3138_v39 = vmax.f32 %v1927_v29, 0.0 }
 0x42e   :  { %v3841_v34 = vpack.c.bf16 %v3123_v25, %v3122_v19  ;;  %v3842_v35 = vpack.c.bf16 %v3125_v13, %v3124_v28 }
 0x430   :  { %4225 = vst [vmem:[#allocation8 + $0x670] sm:$0xff] %v3841_v34 }
 0x431   :  { %4226 = vst [vmem:[#allocation8 + $0x678] sm:$0xff] %v3842_v35  ;;  %v1588_v32 = vpop.f32.mrf.mxu2  ;;  %v1757_v27 = vpop.f32.mrf.mxu3 }
 0x432   :  { %v1589_v14 = vadd.f32 %v1588_v32, %v6272_v15  ;;  %v1758_v0 = vadd.f32 %v1757_v27, %v6277_v23  ;;  %v1422_v33 = vpop.f32.mrf.mxu1  ;;  %v1929_v36 = vpop.f32.mrf.mxu0 }
 0x433   :  { %v1423_v43 = vadd.f32 %v1422_v33, %v6260_v53  ;;  %v1930_v47 = vadd.f32 %v1929_v36, %v6264_v57 }
 0x434   :  { %v3136_v40 = vmax.f32 %v1589_v14, 0.0  ;;  %v3137_v41 = vmax.f32 %v1758_v0, 0.0 }
 0x435   :  { %4755 = vmatmul.msk.bf16.gmra.mxu1 %vm341_vm1, %v5266_v44  ;;  %4851 = vmatmul.msk.bf16.gmra.mxu0 %vm341_vm1, %v5266_v44  ;;  %v3148_v50 = vmax.f32 %v1423_v43, 0.0  ;;  %v3151_v51 = vmax.f32 %v1930_v47, 0.0 }
 0x436   :  { %v3847_v45 = vpack.c.bf16 %v3136_v40, %v3135_v37  ;;  %v3848_v46 = vpack.c.bf16 %v3138_v39, %v3137_v41  ;;  %4787 = vmatmul.msk.bf16.gmra.mxu2 %vm341_vm1, %v5266_v44  ;;  %4819 = vmatmul.msk.bf16.gmra.mxu3 %vm341_vm1, %v5266_v44  ;;  %v5268_v41 = vld [vmem:[%s7188_s0 + $0xe0] sm:$0xff] }
 0x438   :  { %4231 = vst [vmem:[#allocation8 + $0x6a0] sm:$0xff] %v3847_v45 }
 0x439   :  { %4232 = vst [vmem:[#allocation8 + $0x6a8] sm:$0xff] %v3848_v46  ;;  %v1591_v48 = vpop.f32.mrf.mxu2  ;;  %v1760_v49 = vpop.f32.mrf.mxu3 }
 0x43a   :  { %v1592_v52 = vadd.f32 %v1591_v48, %v6272_v15  ;;  %v1761_v55 = vadd.f32 %v1760_v49, %v6277_v23  ;;  %v1424_v56 = vpop.f32.mrf.mxu1  ;;  %v1931_v22 = vpop.f32.mrf.mxu0 }
 0x43b   :  { %v1425_v1 = vadd.f32 %v1424_v56, %v6260_v53  ;;  %v1932_v6 = vadd.f32 %v1931_v22, %v6264_v57 }
 0x43c   :  { %v3149_v58 = vmax.f32 %v1592_v52, 0.0  ;;  %v3150_v59 = vmax.f32 %v1761_v55, 0.0 }
 0x43d   :  { %v3161_v63 = vmax.f32 %v1425_v1, 0.0  ;;  %v3164_v2 = vmax.f32 %v1932_v6, 0.0 }
 0x43e   :  { %v3853_v30 = vpack.c.bf16 %v3149_v58, %v3148_v50  ;;  %v3854_v60 = vpack.c.bf16 %v3151_v51, %v3150_v59 }
 0x440   :  { %4237 = vst [vmem:[#allocation8 + $0x6d0] sm:$0xff] %v3853_v30 }
 0x441   :  { %4238 = vst [vmem:[#allocation8 + $0x6d8] sm:$0xff] %v3854_v60  ;;  %v1593_v31 = vpop.f32.mrf.mxu2  ;;  %v1762_v18 = vpop.f32.mrf.mxu3 }
 0x442   :  { %v1594_v54 = vadd.f32 %v1593_v31, %v6272_v15  ;;  %v1763_v38 = vadd.f32 %v1762_v18, %v6277_v23  ;;  %v1427_v61 = vpop.f32.mrf.mxu1  ;;  %v1934_v62 = vpop.f32.mrf.mxu0 }
 0x443   :  { %v1428_v7 = vadd.f32 %v1427_v61, %v6260_v53  ;;  %v1935_v11 = vadd.f32 %v1934_v62, %v6264_v57 }
 0x444   :  { %v3162_v4 = vmax.f32 %v1594_v54, 0.0  ;;  %v3163_v5 = vmax.f32 %v1763_v38, 0.0 }
 0x445   :  { %4756 = vmatmul.msk.bf16.gmra.mxu1 %vm341_vm1, %v5267_v8  ;;  %4852 = vmatmul.msk.bf16.gmra.mxu0 %vm341_vm1, %v5267_v8  ;;  %v3174_v16 = vmax.f32 %v1428_v7, 0.0  ;;  %v3177_v17 = vmax.f32 %v1935_v11, 0.0 }
 0x446   :  { %v3859_v9 = vpack.c.bf16 %v3162_v4, %v3161_v63  ;;  %v3860_v10 = vpack.c.bf16 %v3164_v2, %v3163_v5  ;;  %4788 = vmatmul.msk.bf16.gmra.mxu2 %vm341_vm1, %v5267_v8  ;;  %4820 = vmatmul.msk.bf16.gmra.mxu3 %vm341_vm1, %v5267_v8  ;;  %v5269_v5 = vld [vmem:[%s7188_s0 + $0xe8] sm:$0xff] }
 0x448   :  { %4243 = vst [vmem:[#allocation8 + $0x700] sm:$0xff] %v3859_v9 }
 0x449   :  { %4244 = vst [vmem:[#allocation8 + $0x708] sm:$0xff] %v3860_v10  ;;  %v1596_v12 = vpop.f32.mrf.mxu2  ;;  %v1765_v3 = vpop.f32.mrf.mxu3 }
 0x44a   :  { %v1597_v19 = vadd.f32 %v1596_v12, %v6272_v15  ;;  %v1766_v13 = vadd.f32 %v1765_v3, %v6277_v23  ;;  %v1429_v20 = vpop.f32.mrf.mxu1  ;;  %v1936_v21 = vpop.f32.mrf.mxu0 }
 0x44b   :  { %v1430_v34 = vadd.f32 %v1429_v20, %v6260_v53  ;;  %v1937_v35 = vadd.f32 %v1936_v21, %v6264_v57 }
 0x44c   :  { %v3175_v24 = vmax.f32 %v1597_v19, 0.0  ;;  %v3176_v26 = vmax.f32 %v1766_v13, 0.0 }
 0x44d   :  { %v3187_v33 = vmax.f32 %v1430_v34, 0.0  ;;  %v3190_v36 = vmax.f32 %v1937_v35, 0.0 }
 0x44e   :  { %v3865_v25 = vpack.c.bf16 %v3175_v24, %v3174_v16  ;;  %v3866_v28 = vpack.c.bf16 %v3177_v17, %v3176_v26 }
 0x450   :  { %4249 = vst [vmem:[#allocation8 + $0x730] sm:$0xff] %v3865_v25 }
 0x451   :  { %4250 = vst [vmem:[#allocation8 + $0x738] sm:$0xff] %v3866_v28  ;;  %v1598_v42 = vpop.f32.mrf.mxu2  ;;  %v1767_v29 = vpop.f32.mrf.mxu3 }
 0x452   :  { %v1599_v32 = vadd.f32 %v1598_v42, %v6272_v15  ;;  %v1768_v27 = vadd.f32 %v1767_v29, %v6277_v23  ;;  %v1432_v14 = vpop.f32.mrf.mxu1  ;;  %v1939_v0 = vpop.f32.mrf.mxu0 }
 0x453   :  { %v1433_v40 = vadd.f32 %v1432_v14, %v6260_v53  ;;  %v1940_v45 = vadd.f32 %v1939_v0, %v6264_v57 }
 0x454   :  { %v3188_v37 = vmax.f32 %v1599_v32, 0.0  ;;  %v3189_v39 = vmax.f32 %v1768_v27, 0.0 }
 0x455   :  { %4757 = vmatmul.msk.bf16.gmra.mxu1 %vm341_vm1, %v5268_v41  ;;  %4853 = vmatmul.msk.bf16.gmra.mxu0 %vm341_vm1, %v5268_v41  ;;  %v3200_v48 = vmax.f32 %v1433_v40, 0.0  ;;  %v3203_v49 = vmax.f32 %v1940_v45, 0.0 }
 0x456   :  { %v3871_v43 = vpack.c.bf16 %v3188_v37, %v3187_v33  ;;  %v3872_v44 = vpack.c.bf16 %v3190_v36, %v3189_v39  ;;  %4789 = vmatmul.msk.bf16.gmra.mxu2 %vm341_vm1, %v5268_v41  ;;  %4821 = vmatmul.msk.bf16.gmra.mxu3 %vm341_vm1, %v5268_v41  ;;  %v5270_v39 = vld [vmem:[%s7188_s0 + $0xf0] sm:$0xff] }
 0x458   :  { %4255 = vst [vmem:[#allocation8 + $0x760] sm:$0xff] %v3871_v43 }
 0x459   :  { %4256 = vst [vmem:[#allocation8 + $0x768] sm:$0xff] %v3872_v44  ;;  %v1601_v46 = vpop.f32.mrf.mxu2  ;;  %v1770_v47 = vpop.f32.mrf.mxu3 }
 0x45a   :  { %v1602_v50 = vadd.f32 %v1601_v46, %v6272_v15  ;;  %v1771_v51 = vadd.f32 %v1770_v47, %v6277_v23  ;;  %v1434_v52 = vpop.f32.mrf.mxu1  ;;  %v1941_v55 = vpop.f32.mrf.mxu0 }
 0x45b   :  { %v1435_v30 = vadd.f32 %v1434_v52, %v6260_v53  ;;  %v1942_v60 = vadd.f32 %v1941_v55, %v6264_v57 }
 0x45c   :  { %v3201_v56 = vmax.f32 %v1602_v50, 0.0  ;;  %v3202_v22 = vmax.f32 %v1771_v51, 0.0 }
 0x45d   :  { %v3213_v61 = vmax.f32 %v1435_v30, 0.0  ;;  %v3216_v62 = vmax.f32 %v1942_v60, 0.0 }
 0x45e   :  { %v3877_v58 = vpack.c.bf16 %v3201_v56, %v3200_v48  ;;  %v3878_v59 = vpack.c.bf16 %v3203_v49, %v3202_v22 }
 0x460   :  { %4261 = vst [vmem:[#allocation8 + $0x790] sm:$0xff] %v3877_v58 }
 0x461   :  { %4262 = vst [vmem:[#allocation8 + $0x798] sm:$0xff] %v3878_v59  ;;  %v1603_v1 = vpop.f32.mrf.mxu2  ;;  %v1772_v6 = vpop.f32.mrf.mxu3 }
 0x462   :  { %v1604_v31 = vadd.f32 %v1603_v1, %v6272_v15  ;;  %v1773_v18 = vadd.f32 %v1772_v6, %v6277_v23  ;;  %v1437_v54 = vpop.f32.mrf.mxu1  ;;  %v1944_v38 = vpop.f32.mrf.mxu0 }
 0x463   :  { %v1438_v4 = vadd.f32 %v1437_v54, %v6260_v53  ;;  %v1945_v9 = vadd.f32 %v1944_v38, %v6264_v57 }
 0x464   :  { %v3214_v63 = vmax.f32 %v1604_v31, 0.0  ;;  %v3215_v2 = vmax.f32 %v1773_v18, 0.0 }
 0x465   :  { %4758 = vmatmul.msk.bf16.gmra.mxu1 %vm341_vm1, %v5269_v5  ;;  %4854 = vmatmul.msk.bf16.gmra.mxu0 %vm341_vm1, %v5269_v5  ;;  %v3226_v12 = vmax.f32 %v1438_v4, 0.0  ;;  %v3229_v3 = vmax.f32 %v1945_v9, 0.0 }
 0x466   :  { %v3883_v7 = vpack.c.bf16 %v3214_v63, %v3213_v61  ;;  %v3884_v8 = vpack.c.bf16 %v3216_v62, %v3215_v2  ;;  %4790 = vmatmul.msk.bf16.gmra.mxu2 %vm341_vm1, %v5269_v5  ;;  %4822 = vmatmul.msk.bf16.gmra.mxu3 %vm341_vm1, %v5269_v5  ;;  %v5271_v2 = vld [vmem:[%s7188_s0 + $0xf8] sm:$0xff] }
 0x468   :  { %4267 = vst [vmem:[#allocation8 + $0x7c0] sm:$0xff] %v3883_v7 }
 0x469   :  { %4268 = vst [vmem:[#allocation8 + $0x7c8] sm:$0xff] %v3884_v8  ;;  %v1606_v10 = vpop.f32.mrf.mxu2  ;;  %v1775_v11 = vpop.f32.mrf.mxu3 }
 0x46a   :  { %v1607_v16 = vadd.f32 %v1606_v10, %v6272_v15  ;;  %v1776_v17 = vadd.f32 %v1775_v11, %v6277_v23  ;;  %v1439_v19 = vpop.f32.mrf.mxu1  ;;  %v1946_v13 = vpop.f32.mrf.mxu0 }
 0x46b   :  { %v1440_v25 = vadd.f32 %v1439_v19, %v6260_v53  ;;  %v1947_v28 = vadd.f32 %v1946_v13, %v6264_v57 }
 0x46c   :  { %v3227_v20 = vmax.f32 %v1607_v16, 0.0  ;;  %v3228_v21 = vmax.f32 %v1776_v17, 0.0 }
 0x46d   :  { %v3239_v14 = vmax.f32 %v1440_v25, 0.0  ;;  %v3242_v0 = vmax.f32 %v1947_v28, 0.0 }
 0x46e   :  { %v3889_v24 = vpack.c.bf16 %v3227_v20, %v3226_v12  ;;  %v3890_v26 = vpack.c.bf16 %v3229_v3, %v3228_v21 }
 0x470   :  { %4273 = vst [vmem:[#allocation8 + $0x7f0] sm:$0xff] %v3889_v24 }
 0x471   :  { %4274 = vst [vmem:[#allocation8 + $0x7f8] sm:$0xff] %v3890_v26  ;;  %v1608_v34 = vpop.f32.mrf.mxu2  ;;  %v1777_v35 = vpop.f32.mrf.mxu3 }
 0x472   :  { %v1609_v42 = vadd.f32 %v1608_v34, %v6272_v15  ;;  %v1778_v29 = vadd.f32 %v1777_v35, %v6277_v23  ;;  %v1442_v32 = vpop.f32.mrf.mxu1  ;;  %v1949_v27 = vpop.f32.mrf.mxu0 }
 0x473   :  { %v1443_v37 = vadd.f32 %v1442_v32, %v6260_v53  ;;  %v1950_v43 = vadd.f32 %v1949_v27, %v6264_v57 }
 0x474   :  { %v3240_v33 = vmax.f32 %v1609_v42, 0.0  ;;  %v3241_v36 = vmax.f32 %v1778_v29, 0.0 }
 0x475   :  { %4759 = vmatmul.msk.bf16.gmra.mxu1 %vm341_vm1, %v5270_v39  ;;  %4855 = vmatmul.msk.bf16.gmra.mxu0 %vm341_vm1, %v5270_v39  ;;  %v3252_v46 = vmax.f32 %v1443_v37, 0.0  ;;  %v3255_v47 = vmax.f32 %v1950_v43, 0.0 }
 0x476   :  { %v3895_v40 = vpack.c.bf16 %v3240_v33, %v3239_v14  ;;  %v3896_v41 = vpack.c.bf16 %v3242_v0, %v3241_v36  ;;  %4791 = vmatmul.msk.bf16.gmra.mxu2 %vm341_vm1, %v5270_v39  ;;  %4823 = vmatmul.msk.bf16.gmra.mxu3 %vm341_vm1, %v5270_v39  ;;  %v5272_v36 = vld [vmem:[%s7188_s0] sm:$0xff] }
 0x478   :  { %4279 = vst [vmem:[#allocation8 + $0x820] sm:$0xff] %v3895_v40 }
 0x479   :  { %4280 = vst [vmem:[#allocation8 + $0x828] sm:$0xff] %v3896_v41  ;;  %v1611_v44 = vpop.f32.mrf.mxu2  ;;  %v1780_v45 = vpop.f32.mrf.mxu3 }
 0x47a   :  { %v1612_v48 = vadd.f32 %v1611_v44, %v6272_v15  ;;  %v1781_v49 = vadd.f32 %v1780_v45, %v6277_v23  ;;  %v1444_v50 = vpop.f32.mrf.mxu1  ;;  %v1951_v51 = vpop.f32.mrf.mxu0 }
 0x47b   :  { %v1445_v58 = vadd.f32 %v1444_v50, %v6260_v53  ;;  %v1952_v59 = vadd.f32 %v1951_v51, %v6264_v57 }
 0x47c   :  { %v3253_v52 = vmax.f32 %v1612_v48, 0.0  ;;  %v3254_v55 = vmax.f32 %v1781_v49, 0.0 }
 0x47d   :  { %v3265_v54 = vmax.f32 %v1445_v58, 0.0  ;;  %v3268_v38 = vmax.f32 %v1952_v59, 0.0 }
 0x47e   :  { %v3901_v56 = vpack.c.bf16 %v3253_v52, %v3252_v46  ;;  %v3902_v22 = vpack.c.bf16 %v3255_v47, %v3254_v55 }
 0x480   :  { %4285 = vst [vmem:[#allocation8 + $0x850] sm:$0xff] %v3901_v56 }
 0x481   :  { %4286 = vst [vmem:[#allocation8 + $0x858] sm:$0xff] %v3902_v22  ;;  %v1613_v30 = vpop.f32.mrf.mxu2  ;;  %v1782_v60 = vpop.f32.mrf.mxu3 }
 0x482   :  { %v1614_v1 = vadd.f32 %v1613_v30, %v6272_v15  ;;  %v1783_v6 = vadd.f32 %v1782_v60, %v6277_v23  ;;  %v1447_v31 = vpop.f32.mrf.mxu1  ;;  %v1954_v18 = vpop.f32.mrf.mxu0 }
 0x483   :  { %v1448_v63 = vadd.f32 %v1447_v31, %v6260_v53  ;;  %v1955_v7 = vadd.f32 %v1954_v18, %v6264_v57 }
 0x484   :  { %v3266_v61 = vmax.f32 %v1614_v1, 0.0  ;;  %v3267_v62 = vmax.f32 %v1783_v6, 0.0 }
 0x485   :  { %4760 = vmatmul.msk.bf16.gmra.mxu1 %vm341_vm1, %v5271_v2  ;;  %4856 = vmatmul.msk.bf16.gmra.mxu0 %vm341_vm1, %v5271_v2  ;;  %v3278_v10 = vmax.f32 %v1448_v63, 0.0  ;;  %v3281_v11 = vmax.f32 %v1955_v7, 0.0 }
 0x486   :  { %v3907_v4 = vpack.c.bf16 %v3266_v61, %v3265_v54  ;;  %v3908_v5 = vpack.c.bf16 %v3268_v38, %v3267_v62  ;;  %4792 = vmatmul.msk.bf16.gmra.mxu2 %vm341_vm1, %v5271_v2  ;;  %4824 = vmatmul.msk.bf16.gmra.mxu3 %vm341_vm1, %v5271_v2  ;;  %v5273_v62 = vld [vmem:[%s7188_s0 + $0x8] sm:$0xff] }
 0x488   :  { %4291 = vst [vmem:[#allocation8 + $0x880] sm:$0xff] %v3907_v4 }
 0x489   :  { %4292 = vst [vmem:[#allocation8 + $0x888] sm:$0xff] %v3908_v5  ;;  %v1616_v8 = vpop.f32.mrf.mxu2  ;;  %v1785_v9 = vpop.f32.mrf.mxu3 }
 0x48a   :  { %v1617_v12 = vadd.f32 %v1616_v8, %v6272_v15  ;;  %v1786_v3 = vadd.f32 %v1785_v9, %v6277_v23  ;;  %v1449_v16 = vpop.f32.mrf.mxu1  ;;  %v1956_v17 = vpop.f32.mrf.mxu0 }
 0x48b   :  { %v1450_v24 = vadd.f32 %v1449_v16, %v6260_v53  ;;  %v1957_v26 = vadd.f32 %v1956_v17, %v6264_v57 }
 0x48c   :  { %v3279_v19 = vmax.f32 %v1617_v12, 0.0  ;;  %v3280_v13 = vmax.f32 %v1786_v3, 0.0 }
 0x48d   :  { %v3291_v32 = vmax.f32 %v1450_v24, 0.0  ;;  %v3294_v27 = vmax.f32 %v1957_v26, 0.0 }
 0x48e   :  { %v3913_v20 = vpack.c.bf16 %v3279_v19, %v3278_v10  ;;  %v3914_v21 = vpack.c.bf16 %v3281_v11, %v3280_v13 }
 0x490   :  { %4297 = vst [vmem:[#allocation8 + $0x8b0] sm:$0xff] %v3913_v20 }
 0x491   :  { %4298 = vst [vmem:[#allocation8 + $0x8b8] sm:$0xff] %v3914_v21  ;;  %v1618_v25 = vpop.f32.mrf.mxu2  ;;  %v1787_v28 = vpop.f32.mrf.mxu3 }
 0x492   :  { %v1619_v34 = vadd.f32 %v1618_v25, %v6272_v15  ;;  %v1788_v35 = vadd.f32 %v1787_v28, %v6277_v23  ;;  %v1452_v42 = vpop.f32.mrf.mxu1  ;;  %v1959_v29 = vpop.f32.mrf.mxu0 }
 0x493   :  { %v1453_v33 = vadd.f32 %v1452_v42, %v6260_v53  ;;  %v1960_v40 = vadd.f32 %v1959_v29, %v6264_v57 }
 0x494   :  { %v3292_v14 = vmax.f32 %v1619_v34, 0.0  ;;  %v3293_v0 = vmax.f32 %v1788_v35, 0.0 }
 0x495   :  { %4857 = vmatmul.msk.bf16.vlgmr.msrb.gmra.mxu1 %vm341_vm1, %v5272_v36  ;;  %4953 = vmatmul.msk.bf16.vlgmr.msrb.gmra.mxu0 %vm341_vm1, %v5272_v36  ;;  %v3304_v44 = vmax.f32 %v1453_v33, 0.0  ;;  %v3307_v45 = vmax.f32 %v1960_v40, 0.0 }
 0x496   :  { %v3919_v37 = vpack.c.bf16 %v3292_v14, %v3291_v32  ;;  %v3920_v39 = vpack.c.bf16 %v3294_v27, %v3293_v0  ;;  %4889 = vmatmul.msk.bf16.vlgmr.msrb.gmra.mxu2 %vm341_vm1, %v5272_v36  ;;  %4921 = vmatmul.msk.bf16.vlgmr.msrb.gmra.mxu3 %vm341_vm1, %v5272_v36  ;;  %v5274_v0 = vld [vmem:[%s7188_s0 + $0x10] sm:$0xff] }
 0x498   :  { %4303 = vst [vmem:[#allocation8 + $0x8e0] sm:$0xff] %v3919_v37 }
 0x499   :  { %4304 = vst [vmem:[#allocation8 + $0x8e8] sm:$0xff] %v3920_v39  ;;  %v1621_v41 = vpop.f32.mrf.mxu2  ;;  %v1790_v43 = vpop.f32.mrf.mxu3 }
 0x49a   :  { %v1622_v46 = vadd.f32 %v1621_v41, %v6272_v15  ;;  %v1791_v47 = vadd.f32 %v1790_v43, %v6277_v23  ;;  %v1454_v48 = vpop.f32.mrf.mxu1  ;;  %v1961_v49 = vpop.f32.mrf.mxu0 }
 0x49b   :  { %v1455_v56 = vadd.f32 %v1454_v48, %v6260_v53  ;;  %v1962_v22 = vadd.f32 %v1961_v49, %v6264_v57 }
 0x49c   :  { %v3305_v50 = vmax.f32 %v1622_v46, 0.0  ;;  %v3306_v51 = vmax.f32 %v1791_v47, 0.0 }
 0x49d   :  { %v3317_v31 = vmax.f32 %v1455_v56, 0.0  ;;  %v3320_v18 = vmax.f32 %v1962_v22, 0.0 }
 0x49e   :  { %v3925_v52 = vpack.c.bf16 %v3305_v50, %v3304_v44  ;;  %v3926_v55 = vpack.c.bf16 %v3307_v45, %v3306_v51 }
 0x4a0   :  { %4309 = vst [vmem:[#allocation8 + $0x910] sm:$0xff] %v3925_v52 }
 0x4a1   :  { %4310 = vst [vmem:[#allocation8 + $0x918] sm:$0xff] %v3926_v55  ;;  %v1623_v58 = vpop.f32.mrf.mxu2  ;;  %v1792_v59 = vpop.f32.mrf.mxu3 }
 0x4a2   :  { %v1624_v30 = vadd.f32 %v1623_v58, %v6272_v15  ;;  %v1793_v60 = vadd.f32 %v1792_v59, %v6277_v23  ;;  %v1457_v1 = vpop.f32.mrf.mxu1  ;;  %v1964_v6 = vpop.f32.mrf.mxu0 }
 0x4a3   :  { %v1458_v61 = vadd.f32 %v1457_v1, %v6260_v53  ;;  %v1965_v4 = vadd.f32 %v1964_v6, %v6264_v57 }
 0x4a4   :  { %v3318_v54 = vmax.f32 %v1624_v30, 0.0  ;;  %v3319_v38 = vmax.f32 %v1793_v60, 0.0 }
 0x4a5   :  { %4858 = vmatmul.msk.bf16.gmra.mxu1 %vm341_vm1, %v5273_v62  ;;  %4954 = vmatmul.msk.bf16.gmra.mxu0 %vm341_vm1, %v5273_v62  ;;  %v3330_v8 = vmax.f32 %v1458_v61, 0.0  ;;  %v3333_v9 = vmax.f32 %v1965_v4, 0.0 }
 0x4a6   :  { %v3931_v63 = vpack.c.bf16 %v3318_v54, %v3317_v31  ;;  %v3932_v2 = vpack.c.bf16 %v3320_v18, %v3319_v38  ;;  %4890 = vmatmul.msk.bf16.gmra.mxu2 %vm341_vm1, %v5273_v62  ;;  %4922 = vmatmul.msk.bf16.gmra.mxu3 %vm341_vm1, %v5273_v62  ;;  %v5275_v38 = vld [vmem:[%s7188_s0 + $0x18] sm:$0xff] }
 0x4a8   :  { %4315 = vst [vmem:[#allocation8 + $0x940] sm:$0xff] %v3931_v63 }
 0x4a9   :  { %4316 = vst [vmem:[#allocation8 + $0x948] sm:$0xff] %v3932_v2  ;;  %v1626_v5 = vpop.f32.mrf.mxu2  ;;  %v1795_v7 = vpop.f32.mrf.mxu3 }
 0x4aa   :  { %v1627_v10 = vadd.f32 %v1626_v5, %v6272_v15  ;;  %v1796_v11 = vadd.f32 %v1795_v7, %v6277_v23  ;;  %v1459_v12 = vpop.f32.mrf.mxu1  ;;  %v1966_v3 = vpop.f32.mrf.mxu0 }
 0x4ab   :  { %v1460_v20 = vadd.f32 %v1459_v12, %v6260_v53  ;;  %v1967_v21 = vadd.f32 %v1966_v3, %v6264_v57 }
 0x4ac   :  { %v3331_v16 = vmax.f32 %v1627_v10, 0.0  ;;  %v3332_v17 = vmax.f32 %v1796_v11, 0.0 }
 0x4ad   :  { %v3343_v42 = vmax.f32 %v1460_v20, 0.0  ;;  %v3346_v29 = vmax.f32 %v1967_v21, 0.0 }
 0x4ae   :  { %v3937_v19 = vpack.c.bf16 %v3331_v16, %v3330_v8  ;;  %v3938_v13 = vpack.c.bf16 %v3333_v9, %v3332_v17 }
 0x4b0   :  { %4321 = vst [vmem:[#allocation8 + $0x970] sm:$0xff] %v3937_v19 }
 0x4b1   :  { %4322 = vst [vmem:[#allocation8 + $0x978] sm:$0xff] %v3938_v13  ;;  %v1628_v24 = vpop.f32.mrf.mxu2  ;;  %v1797_v26 = vpop.f32.mrf.mxu3 }
 0x4b2   :  { %v1629_v25 = vadd.f32 %v1628_v24, %v6272_v15  ;;  %v1798_v28 = vadd.f32 %v1797_v26, %v6277_v23  ;;  %v1462_v34 = vpop.f32.mrf.mxu1  ;;  %v1969_v35 = vpop.f32.mrf.mxu0 }
 0x4b3   :  { %v1463_v14 = vadd.f32 %v1462_v34, %v6260_v53  ;;  %v1970_v37 = vadd.f32 %v1969_v35, %v6264_v57 }
 0x4b4   :  { %v3344_v32 = vmax.f32 %v1629_v25, 0.0  ;;  %v3345_v27 = vmax.f32 %v1798_v28, 0.0 }
 0x4b5   :  { %4859 = vmatmul.msk.bf16.gmra.mxu1 %vm341_vm1, %v5274_v0  ;;  %4955 = vmatmul.msk.bf16.gmra.mxu0 %vm341_vm1, %v5274_v0  ;;  %v3356_v41 = vmax.f32 %v1463_v14, 0.0  ;;  %v3359_v43 = vmax.f32 %v1970_v37, 0.0 }
 0x4b6   :  { %v3943_v33 = vpack.c.bf16 %v3344_v32, %v3343_v42  ;;  %v3944_v36 = vpack.c.bf16 %v3346_v29, %v3345_v27  ;;  %4891 = vmatmul.msk.bf16.gmra.mxu2 %vm341_vm1, %v5274_v0  ;;  %4923 = vmatmul.msk.bf16.gmra.mxu3 %vm341_vm1, %v5274_v0  ;;  %v5276_v27 = vld [vmem:[%s7188_s0 + $0x20] sm:$0xff] }
 0x4b8   :  { %4327 = vst [vmem:[#allocation8 + $0x9a0] sm:$0xff] %v3943_v33 }
 0x4b9   :  { %4328 = vst [vmem:[#allocation8 + $0x9a8] sm:$0xff] %v3944_v36  ;;  %v1631_v39 = vpop.f32.mrf.mxu2  ;;  %v1800_v40 = vpop.f32.mrf.mxu3 }
 0x4ba   :  { %v1632_v44 = vadd.f32 %v1631_v39, %v6272_v15  ;;  %v1801_v45 = vadd.f32 %v1800_v40, %v6277_v23  ;;  %v1464_v46 = vpop.f32.mrf.mxu1  ;;  %v1971_v47 = vpop.f32.mrf.mxu0 }
 0x4bb   :  { %v1465_v52 = vadd.f32 %v1464_v46, %v6260_v53  ;;  %v1972_v55 = vadd.f32 %v1971_v47, %v6264_v57 }
 0x4bc   :  { %v3357_v48 = vmax.f32 %v1632_v44, 0.0  ;;  %v3358_v49 = vmax.f32 %v1801_v45, 0.0 }
 0x4bd   :  { %v3369_v1 = vmax.f32 %v1465_v52, 0.0  ;;  %v3372_v6 = vmax.f32 %v1972_v55, 0.0 }
 0x4be   :  { %v3949_v50 = vpack.c.bf16 %v3357_v48, %v3356_v41  ;;  %v3950_v51 = vpack.c.bf16 %v3359_v43, %v3358_v49 }
 0x4c0   :  { %4333 = vst [vmem:[#allocation8 + $0x9d0] sm:$0xff] %v3949_v50 }
 0x4c1   :  { %4334 = vst [vmem:[#allocation8 + $0x9d8] sm:$0xff] %v3950_v51  ;;  %v1633_v56 = vpop.f32.mrf.mxu2  ;;  %v1802_v22 = vpop.f32.mrf.mxu3 }
 0x4c2   :  { %v1634_v58 = vadd.f32 %v1633_v56, %v6272_v15  ;;  %v1803_v59 = vadd.f32 %v1802_v22, %v6277_v23  ;;  %v1467_v30 = vpop.f32.mrf.mxu1  ;;  %v1974_v60 = vpop.f32.mrf.mxu0 }
 0x4c3   :  { %v1468_v54 = vadd.f32 %v1467_v30, %v6260_v53  ;;  %v1975_v63 = vadd.f32 %v1974_v60, %v6264_v57 }
 0x4c4   :  { %v3370_v31 = vmax.f32 %v1634_v58, 0.0  ;;  %v3371_v18 = vmax.f32 %v1803_v59, 0.0 }
 0x4c5   :  { %4860 = vmatmul.msk.bf16.gmra.mxu1 %vm341_vm1, %v5275_v38  ;;  %4956 = vmatmul.msk.bf16.gmra.mxu0 %vm341_vm1, %v5275_v38  ;;  %v3382_v5 = vmax.f32 %v1468_v54, 0.0  ;;  %v3385_v7 = vmax.f32 %v1975_v63, 0.0 }
 0x4c6   :  { %v3955_v61 = vpack.c.bf16 %v3370_v31, %v3369_v1  ;;  %v3956_v62 = vpack.c.bf16 %v3372_v6, %v3371_v18  ;;  %4892 = vmatmul.msk.bf16.gmra.mxu2 %vm341_vm1, %v5275_v38  ;;  %4924 = vmatmul.msk.bf16.gmra.mxu3 %vm341_vm1, %v5275_v38  ;;  %v5277_v18 = vld [vmem:[%s7188_s0 + $0x28] sm:$0xff] }
 0x4c8   :  { %4339 = vst [vmem:[#allocation8 + $0xa00] sm:$0xff] %v3955_v61 }
 0x4c9   :  { %4340 = vst [vmem:[#allocation8 + $0xa08] sm:$0xff] %v3956_v62  ;;  %v1636_v2 = vpop.f32.mrf.mxu2  ;;  %v1805_v4 = vpop.f32.mrf.mxu3 }
 0x4ca   :  { %v1637_v8 = vadd.f32 %v1636_v2, %v6272_v15  ;;  %v1806_v9 = vadd.f32 %v1805_v4, %v6277_v23  ;;  %v1469_v10 = vpop.f32.mrf.mxu1  ;;  %v1976_v11 = vpop.f32.mrf.mxu0 }
 0x4cb   :  { %v1470_v19 = vadd.f32 %v1469_v10, %v6260_v53  ;;  %v1977_v13 = vadd.f32 %v1976_v11, %v6264_v57 }
 0x4cc   :  { %v3383_v12 = vmax.f32 %v1637_v8, 0.0  ;;  %v3384_v3 = vmax.f32 %v1806_v9, 0.0 }
 0x4cd   :  { %v3395_v34 = vmax.f32 %v1470_v19, 0.0  ;;  %v3398_v35 = vmax.f32 %v1977_v13, 0.0 }
 0x4ce   :  { %v3961_v16 = vpack.c.bf16 %v3383_v12, %v3382_v5  ;;  %v3962_v17 = vpack.c.bf16 %v3385_v7, %v3384_v3 }
 0x4d0   :  { %4345 = vst [vmem:[#allocation8 + $0xa30] sm:$0xff] %v3961_v16 }
 0x4d1   :  { %4346 = vst [vmem:[#allocation8 + $0xa38] sm:$0xff] %v3962_v17  ;;  %v1638_v20 = vpop.f32.mrf.mxu2  ;;  %v1807_v21 = vpop.f32.mrf.mxu3 }
 0x4d2   :  { %v1639_v24 = vadd.f32 %v1638_v20, %v6272_v15  ;;  %v1808_v26 = vadd.f32 %v1807_v21, %v6277_v23  ;;  %v1472_v25 = vpop.f32.mrf.mxu1  ;;  %v1979_v28 = vpop.f32.mrf.mxu0 }
 0x4d3   :  { %v1473_v32 = vadd.f32 %v1472_v25, %v6260_v53  ;;  %v1980_v33 = vadd.f32 %v1979_v28, %v6264_v57 }
 0x4d4   :  { %v3396_v42 = vmax.f32 %v1639_v24, 0.0  ;;  %v3397_v29 = vmax.f32 %v1808_v26, 0.0 }
 0x4d5   :  { %4861 = vmatmul.msk.bf16.gmra.mxu1 %vm341_vm1, %v5276_v27  ;;  %4957 = vmatmul.msk.bf16.gmra.mxu0 %vm341_vm1, %v5276_v27  ;;  %v3408_v39 = vmax.f32 %v1473_v32, 0.0  ;;  %v3411_v40 = vmax.f32 %v1980_v33, 0.0 }
 0x4d6   :  { %v3967_v14 = vpack.c.bf16 %v3396_v42, %v3395_v34  ;;  %v3968_v0 = vpack.c.bf16 %v3398_v35, %v3397_v29  ;;  %4893 = vmatmul.msk.bf16.gmra.mxu2 %vm341_vm1, %v5276_v27  ;;  %4925 = vmatmul.msk.bf16.gmra.mxu3 %vm341_vm1, %v5276_v27  ;;  %v5278_v29 = vld [vmem:[%s7188_s0 + $0x30] sm:$0xff] }
 0x4d8   :  { %4351 = vst [vmem:[#allocation8 + $0xa60] sm:$0xff] %v3967_v14 }
 0x4d9   :  { %4352 = vst [vmem:[#allocation8 + $0xa68] sm:$0xff] %v3968_v0  ;;  %v1641_v36 = vpop.f32.mrf.mxu2  ;;  %v1810_v37 = vpop.f32.mrf.mxu3 }
 0x4da   :  { %v1642_v41 = vadd.f32 %v1641_v36, %v6272_v15  ;;  %v1811_v43 = vadd.f32 %v1810_v37, %v6277_v23  ;;  %v1474_v44 = vpop.f32.mrf.mxu1  ;;  %v1981_v45 = vpop.f32.mrf.mxu0 }
 0x4db   :  { %v1475_v50 = vadd.f32 %v1474_v44, %v6260_v53  ;;  %v1982_v51 = vadd.f32 %v1981_v45, %v6264_v57 }
 0x4dc   :  { %v3409_v46 = vmax.f32 %v1642_v41, 0.0  ;;  %v3410_v47 = vmax.f32 %v1811_v43, 0.0 }
 0x4dd   :  { %v3421_v30 = vmax.f32 %v1475_v50, 0.0  ;;  %v3424_v60 = vmax.f32 %v1982_v51, 0.0 }
 0x4de   :  { %v3973_v48 = vpack.c.bf16 %v3409_v46, %v3408_v39  ;;  %v3974_v49 = vpack.c.bf16 %v3411_v40, %v3410_v47 }
 0x4e0   :  { %4357 = vst [vmem:[#allocation8 + $0xa90] sm:$0xff] %v3973_v48 }
 0x4e1   :  { %4358 = vst [vmem:[#allocation8 + $0xa98] sm:$0xff] %v3974_v49  ;;  %v1643_v52 = vpop.f32.mrf.mxu2  ;;  %v1812_v55 = vpop.f32.mrf.mxu3 }
 0x4e2   :  { %v1644_v56 = vadd.f32 %v1643_v52, %v6272_v15  ;;  %v1813_v22 = vadd.f32 %v1812_v55, %v6277_v23  ;;  %v1477_v58 = vpop.f32.mrf.mxu1  ;;  %v1984_v59 = vpop.f32.mrf.mxu0 }
 0x4e3   :  { %v1478_v31 = vadd.f32 %v1477_v58, %v6260_v53  ;;  %v1985_v61 = vadd.f32 %v1984_v59, %v6264_v57 }
 0x4e4   :  { %v3422_v1 = vmax.f32 %v1644_v56, 0.0  ;;  %v3423_v6 = vmax.f32 %v1813_v22, 0.0 }
 0x4e5   :  { %4862 = vmatmul.msk.bf16.gmra.mxu1 %vm341_vm1, %v5277_v18  ;;  %4958 = vmatmul.msk.bf16.gmra.mxu0 %vm341_vm1, %v5277_v18  ;;  %v3434_v2 = vmax.f32 %v1478_v31, 0.0  ;;  %v3437_v4 = vmax.f32 %v1985_v61, 0.0 }
 0x4e6   :  { %v3979_v54 = vpack.c.bf16 %v3422_v1, %v3421_v30  ;;  %v3980_v38 = vpack.c.bf16 %v3424_v60, %v3423_v6  ;;  %4894 = vmatmul.msk.bf16.gmra.mxu2 %vm341_vm1, %v5277_v18  ;;  %4926 = vmatmul.msk.bf16.gmra.mxu3 %vm341_vm1, %v5277_v18  ;;  %v5279_v6 = vld [vmem:[%s7188_s0 + $0x38] sm:$0xff] }
 0x4e8   :  { %4363 = vst [vmem:[#allocation8 + $0xac0] sm:$0xff] %v3979_v54 }
 0x4e9   :  { %4364 = vst [vmem:[#allocation8 + $0xac8] sm:$0xff] %v3980_v38  ;;  %v1646_v62 = vpop.f32.mrf.mxu2  ;;  %v1815_v63 = vpop.f32.mrf.mxu3 }
 0x4ea   :  { %v1647_v5 = vadd.f32 %v1646_v62, %v6272_v15  ;;  %v1816_v7 = vadd.f32 %v1815_v63, %v6277_v23  ;;  %v1479_v8 = vpop.f32.mrf.mxu1  ;;  %v1986_v9 = vpop.f32.mrf.mxu0 }
 0x4eb   :  { %v1480_v16 = vadd.f32 %v1479_v8, %v6260_v53  ;;  %v1987_v17 = vadd.f32 %v1986_v9, %v6264_v57 }
 0x4ec   :  { %v3435_v10 = vmax.f32 %v1647_v5, 0.0  ;;  %v3436_v11 = vmax.f32 %v1816_v7, 0.0 }
 0x4ed   :  { %v3447_v25 = vmax.f32 %v1480_v16, 0.0  ;;  %v3450_v28 = vmax.f32 %v1987_v17, 0.0 }
 0x4ee   :  { %v3985_v12 = vpack.c.bf16 %v3435_v10, %v3434_v2  ;;  %v3986_v3 = vpack.c.bf16 %v3437_v4, %v3436_v11 }
 0x4f0   :  { %4369 = vst [vmem:[#allocation8 + $0xaf0] sm:$0xff] %v3985_v12 }
 0x4f1   :  { %4370 = vst [vmem:[#allocation8 + $0xaf8] sm:$0xff] %v3986_v3  ;;  %v1648_v19 = vpop.f32.mrf.mxu2  ;;  %v1817_v13 = vpop.f32.mrf.mxu3 }
 0x4f2   :  { %v1649_v20 = vadd.f32 %v1648_v19, %v6272_v15  ;;  %v1818_v21 = vadd.f32 %v1817_v13, %v6277_v23  ;;  %v1482_v24 = vpop.f32.mrf.mxu1  ;;  %v1989_v26 = vpop.f32.mrf.mxu0  ;;  %v5280_v19 = vld [vmem:[#allocation5 + $0x8] sm:$0x1f] }
 0x4f3   :  { %v1483_v42 = vadd.f32 %v1482_v24, %v6260_v53  ;;  %v1990_v14 = vadd.f32 %v1989_v26, %v6264_v57  ;;  %v6748_v13 = vperm.slane %v5280_v19, 1  ;;  %v6752_v26 = vperm.slane %v5280_v19, 4 }
 0x4f4   :  { %v3448_v34 = vmax.f32 %v1649_v20, 0.0  ;;  %v3449_v35 = vmax.f32 %v1818_v21, 0.0 }
 0x4f5   :  { %4863 = vmatmul.msk.bf16.gmra.mxu1 %vm341_vm1, %v5278_v29  ;;  %4959 = vmatmul.msk.bf16.gmra.mxu0 %vm341_vm1, %v5278_v29  ;;  %v3460_v36 = vmax.f32 %v1483_v42, 0.0  ;;  %v3463_v37 = vmax.f32 %v1990_v14, 0.0  ;;  %v5281_v42 = vld [vmem:[%s7188_s0 + $0x40] sm:$0xff] }
 0x4f6   :  { %v3991_v32 = vpack.c.bf16 %v3448_v34, %v3447_v25  ;;  %v3992_v27 = vpack.c.bf16 %v3450_v28, %v3449_v35  ;;  %4895 = vmatmul.msk.bf16.gmra.mxu2 %vm341_vm1, %v5278_v29  ;;  %4927 = vmatmul.msk.bf16.gmra.mxu3 %vm341_vm1, %v5278_v29 }
 0x4f8   :  { %4375 = vst [vmem:[#allocation8 + $0xb20] sm:$0xff] %v3991_v32 }
 0x4f9   :  { %4376 = vst [vmem:[#allocation8 + $0xb28] sm:$0xff] %v3992_v27  ;;  %v1651_v0 = vpop.f32.mrf.mxu2  ;;  %v1820_v33 = vpop.f32.mrf.mxu3  ;;  %v6765_v27 = vperm.slane %v5280_v19, 3 }
 0x4fa   :  { %v1652_v39 = vadd.f32 %v1651_v0, %v6272_v15  ;;  %v1821_v40 = vadd.f32 %v1820_v33, %v6277_v23  ;;  %v1484_v41 = vpop.f32.mrf.mxu1  ;;  %v1991_v43 = vpop.f32.mrf.mxu0 }
 0x4fb   :  { %v1485_v48 = vadd.f32 %v1484_v41, %v6260_v53  ;;  %v1992_v49 = vadd.f32 %v1991_v43, %v6264_v57 }
 0x4fc   :  { %v3461_v44 = vmax.f32 %v1652_v39, 0.0  ;;  %v3462_v45 = vmax.f32 %v1821_v40, 0.0 }
 0x4fd   :  { %v3473_v58 = vmax.f32 %v1485_v48, 0.0  ;;  %v3476_v59 = vmax.f32 %v1992_v49, 0.0 }
 0x4fe   :  { %v3997_v46 = vpack.c.bf16 %v3461_v44, %v3460_v36  ;;  %v3998_v47 = vpack.c.bf16 %v3463_v37, %v3462_v45 }
 0x500   :  { %4381 = vst [vmem:[#allocation8 + $0xb50] sm:$0xff] %v3997_v46 }
 0x501   :  { %4382 = vst [vmem:[#allocation8 + $0xb58] sm:$0xff] %v3998_v47  ;;  %v1653_v50 = vpop.f32.mrf.mxu2  ;;  %v1822_v51 = vpop.f32.mrf.mxu3 }
 0x502   :  { %v1654_v52 = vadd.f32 %v1653_v50, %v6272_v15  ;;  %v1823_v55 = vadd.f32 %v1822_v51, %v6277_v23  ;;  %v1487_v56 = vpop.f32.mrf.mxu1  ;;  %v1994_v22 = vpop.f32.mrf.mxu0 }
 0x503   :  { %v1488_v1 = vadd.f32 %v1487_v56, %v6260_v53  ;;  %v1995_v54 = vadd.f32 %v1994_v22, %v6264_v57 }
 0x504   :  { %v3474_v30 = vmax.f32 %v1654_v52, 0.0  ;;  %v3475_v60 = vmax.f32 %v1823_v55, 0.0 }
 0x505   :  { %4864 = vmatmul.msk.bf16.gmra.mxu1 %vm341_vm1, %v5279_v6  ;;  %4960 = vmatmul.msk.bf16.gmra.mxu0 %vm341_vm1, %v5279_v6  ;;  %v3486_v62 = vmax.f32 %v1488_v1, 0.0  ;;  %v3489_v63 = vmax.f32 %v1995_v54, 0.0  ;;  %v5282_v1 = vld [vmem:[%s7188_s0 + $0x48] sm:$0xff] }
 0x506   :  { %v4003_v31 = vpack.c.bf16 %v3474_v30, %v3473_v58  ;;  %v4004_v18 = vpack.c.bf16 %v3476_v59, %v3475_v60  ;;  %4896 = vmatmul.msk.bf16.gmra.mxu2 %vm341_vm1, %v5279_v6  ;;  %4928 = vmatmul.msk.bf16.gmra.mxu3 %vm341_vm1, %v5279_v6 }
 0x508   :  { %4387 = vst [vmem:[#allocation8 + $0xb80] sm:$0xff] %v4003_v31 }
 0x509   :  { %4388 = vst [vmem:[#allocation8 + $0xb88] sm:$0xff] %v4004_v18  ;;  %v1656_v38 = vpop.f32.mrf.mxu2  ;;  %v1825_v61 = vpop.f32.mrf.mxu3 }
 0x50a   :  { %v1657_v2 = vadd.f32 %v1656_v38, %v6272_v15  ;;  %v1826_v4 = vadd.f32 %v1825_v61, %v6277_v23  ;;  %v1489_v5 = vpop.f32.mrf.mxu1  ;;  %v1996_v7 = vpop.f32.mrf.mxu0 }
 0x50b   :  { %v1490_v12 = vadd.f32 %v1489_v5, %v6260_v53  ;;  %v1997_v3 = vadd.f32 %v1996_v7, %v6264_v57 }
 0x50c   :  { %v3487_v8 = vmax.f32 %v1657_v2, 0.0  ;;  %v3488_v9 = vmax.f32 %v1826_v4, 0.0 }
 0x50d   :  { %v3499_v28 = vmax.f32 %v1490_v12, 0.0  ;;  %v3502_v34 = vmax.f32 %v1997_v3, 0.0 }
 0x50e   :  { %v4009_v10 = vpack.c.bf16 %v3487_v8, %v3486_v62  ;;  %v4010_v11 = vpack.c.bf16 %v3489_v63, %v3488_v9 }
 0x510   :  { %4393 = vst [vmem:[#allocation8 + $0xbb0] sm:$0xff] %v4009_v10 }
 0x511   :  { %4394 = vst [vmem:[#allocation8 + $0xbb8] sm:$0xff] %v4010_v11  ;;  %v1658_v16 = vpop.f32.mrf.mxu2  ;;  %v1827_v17 = vpop.f32.mrf.mxu3 }
 0x512   :  { %v1659_v20 = vadd.f32 %v1658_v16, %v6272_v15  ;;  %v1828_v21 = vadd.f32 %v1827_v17, %v6277_v23  ;;  %v2008_v24 = vpop.f32.mrf.mxu1  ;;  %v2515_v25 = vpop.f32.mrf.mxu0  ;;  %v6760_v15 = vperm.slane %v5280_v19, 2 }
 0x513   :  { %v2009_v57 = vadd.f32 %v2008_v24, %v6748_v13  ;;  %v2516_v32 = vadd.f32 %v2515_v25, %v6752_v26 }
 0x514   :  { %v3500_v35 = vmax.f32 %v1659_v20, 0.0  ;;  %v3501_v53 = vmax.f32 %v1828_v21, 0.0 }
 0x515   :  { %4865 = vmatmul.msk.bf16.gmra.mxu1 %vm341_vm1, %v5281_v42  ;;  %4961 = vmatmul.msk.bf16.gmra.mxu0 %vm341_vm1, %v5281_v42  ;;  %v2684_v33 = vmax.f32 %v2009_v57, 0.0  ;;  %v2687_v36 = vmax.f32 %v2516_v32, 0.0 }
 0x516   :  { %v4015_v23 = vpack.c.bf16 %v3500_v35, %v3499_v28  ;;  %v4016_v29 = vpack.c.bf16 %v3502_v34, %v3501_v53  ;;  %4897 = vmatmul.msk.bf16.gmra.mxu2 %vm341_vm1, %v5281_v42  ;;  %4929 = vmatmul.msk.bf16.gmra.mxu3 %vm341_vm1, %v5281_v42  ;;  %v5283_v53 = vld [vmem:[%s7188_s0 + $0x50] sm:$0xff] }
 0x518   :  { %4399 = vst [vmem:[#allocation8 + $0xbe0] sm:$0xff] %v4015_v23 }
 0x519   :  { %4400 = vst [vmem:[#allocation8 + $0xbe8] sm:$0xff] %v4016_v29  ;;  %v2177_v14 = vpop.f32.mrf.mxu2  ;;  %v2346_v0 = vpop.f32.mrf.mxu3 }
 0x51a   :  { %v2178_v37 = vadd.f32 %v2177_v14, %v6760_v15  ;;  %v2347_v39 = vadd.f32 %v2346_v0, %v6765_v27  ;;  %v2010_v40 = vpop.f32.mrf.mxu1  ;;  %v2517_v41 = vpop.f32.mrf.mxu0 }
 0x51b   :  { %v2011_v47 = vadd.f32 %v2010_v40, %v6748_v13  ;;  %v2518_v48 = vadd.f32 %v2517_v41, %v6752_v26 }
 0x51c   :  { %v2685_v43 = vmax.f32 %v2178_v37, 0.0  ;;  %v2686_v44 = vmax.f32 %v2347_v39, 0.0 }
 0x51d   :  { %v2697_v22 = vmax.f32 %v2011_v47, 0.0  ;;  %v2700_v58 = vmax.f32 %v2518_v48, 0.0 }
 0x51e   :  { %v3639_v45 = vpack.c.bf16 %v2685_v43, %v2684_v33  ;;  %v3640_v46 = vpack.c.bf16 %v2687_v36, %v2686_v44 }
 0x520   :  { %4023 = vst [vmem:[#allocation8 + $0x20] sm:$0xff] %v3639_v45 }
 0x521   :  { %4024 = vst [vmem:[#allocation8 + $0x28] sm:$0xff] %v3640_v46  ;;  %v2179_v49 = vpop.f32.mrf.mxu2  ;;  %v2348_v50 = vpop.f32.mrf.mxu3 }
 0x522   :  { %v2180_v51 = vadd.f32 %v2179_v49, %v6760_v15  ;;  %v2349_v52 = vadd.f32 %v2348_v50, %v6765_v27  ;;  %v2013_v55 = vpop.f32.mrf.mxu1  ;;  %v2520_v56 = vpop.f32.mrf.mxu0 }
 0x523   :  { %v2014_v60 = vadd.f32 %v2013_v55, %v6748_v13  ;;  %v2521_v18 = vadd.f32 %v2520_v56, %v6752_v26 }
 0x524   :  { %v2698_v59 = vmax.f32 %v2180_v51, 0.0  ;;  %v2699_v30 = vmax.f32 %v2349_v52, 0.0 }
 0x525   :  { %4866 = vmatmul.msk.bf16.gmra.mxu1 %vm341_vm1, %v5282_v1  ;;  %4962 = vmatmul.msk.bf16.gmra.mxu0 %vm341_vm1, %v5282_v1  ;;  %v2710_v61 = vmax.f32 %v2014_v60, 0.0  ;;  %v2713_v62 = vmax.f32 %v2521_v18, 0.0 }
 0x526   :  { %v3645_v6 = vpack.c.bf16 %v2698_v59, %v2697_v22  ;;  %v3646_v31 = vpack.c.bf16 %v2700_v58, %v2699_v30  ;;  %4898 = vmatmul.msk.bf16.gmra.mxu2 %vm341_vm1, %v5282_v1  ;;  %4930 = vmatmul.msk.bf16.gmra.mxu3 %vm341_vm1, %v5282_v1  ;;  %v5284_v30 = vld [vmem:[%s7188_s0 + $0x58] sm:$0xff] }
 0x528   :  { %4029 = vst [vmem:[#allocation8 + $0x50] sm:$0xff] %v3645_v6 }
 0x529   :  { %4030 = vst [vmem:[#allocation8 + $0x58] sm:$0xff] %v3646_v31  ;;  %v2182_v54 = vpop.f32.mrf.mxu2  ;;  %v2351_v38 = vpop.f32.mrf.mxu3 }
 0x52a   :  { %v2183_v63 = vadd.f32 %v2182_v54, %v6760_v15  ;;  %v2352_v2 = vadd.f32 %v2351_v38, %v6765_v27  ;;  %v2015_v4 = vpop.f32.mrf.mxu1  ;;  %v2522_v5 = vpop.f32.mrf.mxu0 }
 0x52b   :  { %v2016_v11 = vadd.f32 %v2015_v4, %v6748_v13  ;;  %v2523_v12 = vadd.f32 %v2522_v5, %v6752_v26 }
 0x52c   :  { %v2711_v7 = vmax.f32 %v2183_v63, 0.0  ;;  %v2712_v8 = vmax.f32 %v2352_v2, 0.0 }
 0x52d   :  { %v2723_v24 = vmax.f32 %v2016_v11, 0.0  ;;  %v2726_v25 = vmax.f32 %v2523_v12, 0.0 }
 0x52e   :  { %v3651_v9 = vpack.c.bf16 %v2711_v7, %v2710_v61  ;;  %v3652_v10 = vpack.c.bf16 %v2713_v62, %v2712_v8 }
 0x530   :  { %4035 = vst [vmem:[#allocation8 + $0x80] sm:$0xff] %v3651_v9 }
 0x531   :  { %4036 = vst [vmem:[#allocation8 + $0x88] sm:$0xff] %v3652_v10  ;;  %v2184_v3 = vpop.f32.mrf.mxu2  ;;  %v2353_v16 = vpop.f32.mrf.mxu3 }
 0x532   :  { %v2185_v17 = vadd.f32 %v2184_v3, %v6760_v15  ;;  %v2354_v19 = vadd.f32 %v2353_v16, %v6765_v27  ;;  %v2018_v20 = vpop.f32.mrf.mxu1  ;;  %v2525_v21 = vpop.f32.mrf.mxu0 }
 0x533   :  { %v2019_v35 = vadd.f32 %v2018_v20, %v6748_v13  ;;  %v2526_v23 = vadd.f32 %v2525_v21, %v6752_v26 }
 0x534   :  { %v2724_v28 = vmax.f32 %v2185_v17, 0.0  ;;  %v2725_v34 = vmax.f32 %v2354_v19, 0.0 }
 0x535   :  { %4867 = vmatmul.msk.bf16.gmra.mxu1 %vm341_vm1, %v5283_v53  ;;  %4963 = vmatmul.msk.bf16.gmra.mxu0 %vm341_vm1, %v5283_v53  ;;  %v2736_v14 = vmax.f32 %v2019_v35, 0.0  ;;  %v2739_v0 = vmax.f32 %v2526_v23, 0.0 }
 0x536   :  { %v3657_v57 = vpack.c.bf16 %v2724_v28, %v2723_v24  ;;  %v3658_v42 = vpack.c.bf16 %v2726_v25, %v2725_v34  ;;  %4899 = vmatmul.msk.bf16.gmra.mxu2 %vm341_vm1, %v5283_v53  ;;  %4931 = vmatmul.msk.bf16.gmra.mxu3 %vm341_vm1, %v5283_v53  ;;  %v5285_v34 = vld [vmem:[%s7188_s0 + $0x60] sm:$0xff] }
 0x538   :  { %4041 = vst [vmem:[#allocation8 + $0xb0] sm:$0xff] %v3657_v57 }
 0x539   :  { %4042 = vst [vmem:[#allocation8 + $0xb8] sm:$0xff] %v3658_v42  ;;  %v2187_v29 = vpop.f32.mrf.mxu2  ;;  %v2356_v32 = vpop.f32.mrf.mxu3 }
 0x53a   :  { %v2188_v33 = vadd.f32 %v2187_v29, %v6760_v15  ;;  %v2357_v36 = vadd.f32 %v2356_v32, %v6765_v27  ;;  %v2020_v37 = vpop.f32.mrf.mxu1  ;;  %v2527_v39 = vpop.f32.mrf.mxu0 }
 0x53b   :  { %v2021_v45 = vadd.f32 %v2020_v37, %v6748_v13  ;;  %v2528_v46 = vadd.f32 %v2527_v39, %v6752_v26 }
 0x53c   :  { %v2737_v40 = vmax.f32 %v2188_v33, 0.0  ;;  %v2738_v41 = vmax.f32 %v2357_v36, 0.0 }
 0x53d   :  { %v2749_v55 = vmax.f32 %v2021_v45, 0.0  ;;  %v2752_v56 = vmax.f32 %v2528_v46, 0.0 }
 0x53e   :  { %v3663_v43 = vpack.c.bf16 %v2737_v40, %v2736_v14  ;;  %v3664_v44 = vpack.c.bf16 %v2739_v0, %v2738_v41 }
 0x540   :  { %4047 = vst [vmem:[#allocation8 + $0xe0] sm:$0xff] %v3663_v43 }
 0x541   :  { %4048 = vst [vmem:[#allocation8 + $0xe8] sm:$0xff] %v3664_v44  ;;  %v2189_v47 = vpop.f32.mrf.mxu2  ;;  %v2358_v48 = vpop.f32.mrf.mxu3 }
 0x542   :  { %v2190_v49 = vadd.f32 %v2189_v47, %v6760_v15  ;;  %v2359_v50 = vadd.f32 %v2358_v48, %v6765_v27  ;;  %v2023_v51 = vpop.f32.mrf.mxu1  ;;  %v2530_v52 = vpop.f32.mrf.mxu0 }
 0x543   :  { %v2024_v59 = vadd.f32 %v2023_v51, %v6748_v13  ;;  %v2531_v6 = vadd.f32 %v2530_v52, %v6752_v26 }
 0x544   :  { %v2750_v22 = vmax.f32 %v2190_v49, 0.0  ;;  %v2751_v58 = vmax.f32 %v2359_v50, 0.0 }
 0x545   :  { %4868 = vmatmul.msk.bf16.gmra.mxu1 %vm341_vm1, %v5284_v30  ;;  %4964 = vmatmul.msk.bf16.gmra.mxu0 %vm341_vm1, %v5284_v30  ;;  %v2762_v54 = vmax.f32 %v2024_v59, 0.0  ;;  %v2765_v38 = vmax.f32 %v2531_v6, 0.0 }
 0x546   :  { %v3669_v60 = vpack.c.bf16 %v2750_v22, %v2749_v55  ;;  %v3670_v1 = vpack.c.bf16 %v2752_v56, %v2751_v58  ;;  %4900 = vmatmul.msk.bf16.gmra.mxu2 %vm341_vm1, %v5284_v30  ;;  %4932 = vmatmul.msk.bf16.gmra.mxu3 %vm341_vm1, %v5284_v30  ;;  %v5286_v58 = vld [vmem:[%s7188_s0 + $0x68] sm:$0xff] }
 0x548   :  { %4053 = vst [vmem:[#allocation8 + $0x110] sm:$0xff] %v3669_v60 }
 0x549   :  { %4054 = vst [vmem:[#allocation8 + $0x118] sm:$0xff] %v3670_v1  ;;  %v2192_v31 = vpop.f32.mrf.mxu2  ;;  %v2361_v18 = vpop.f32.mrf.mxu3 }
 0x54a   :  { %v2193_v61 = vadd.f32 %v2192_v31, %v6760_v15  ;;  %v2362_v62 = vadd.f32 %v2361_v18, %v6765_v27  ;;  %v2025_v63 = vpop.f32.mrf.mxu1  ;;  %v2532_v2 = vpop.f32.mrf.mxu0 }
 0x54b   :  { %v2026_v9 = vadd.f32 %v2025_v63, %v6748_v13  ;;  %v2533_v10 = vadd.f32 %v2532_v2, %v6752_v26 }
 0x54c   :  { %v2763_v4 = vmax.f32 %v2193_v61, 0.0  ;;  %v2764_v5 = vmax.f32 %v2362_v62, 0.0 }
 0x54d   :  { %v2775_v20 = vmax.f32 %v2026_v9, 0.0  ;;  %v2778_v21 = vmax.f32 %v2533_v10, 0.0 }
 0x54e   :  { %v3675_v7 = vpack.c.bf16 %v2763_v4, %v2762_v54  ;;  %v3676_v8 = vpack.c.bf16 %v2765_v38, %v2764_v5 }
 0x550   :  { %4059 = vst [vmem:[#allocation8 + $0x140] sm:$0xff] %v3675_v7 }
 0x551   :  { %4060 = vst [vmem:[#allocation8 + $0x148] sm:$0xff] %v3676_v8  ;;  %v2194_v11 = vpop.f32.mrf.mxu2  ;;  %v2363_v12 = vpop.f32.mrf.mxu3 }
 0x552   :  { %v2195_v3 = vadd.f32 %v2194_v11, %v6760_v15  ;;  %v2364_v16 = vadd.f32 %v2363_v12, %v6765_v27  ;;  %v2028_v17 = vpop.f32.mrf.mxu1  ;;  %v2535_v19 = vpop.f32.mrf.mxu0 }
 0x553   :  { %v2029_v28 = vadd.f32 %v2028_v17, %v6748_v13  ;;  %v2536_v57 = vadd.f32 %v2535_v19, %v6752_v26 }
 0x554   :  { %v2776_v24 = vmax.f32 %v2195_v3, 0.0  ;;  %v2777_v25 = vmax.f32 %v2364_v16, 0.0 }
 0x555   :  { %4869 = vmatmul.msk.bf16.gmra.mxu1 %vm341_vm1, %v5285_v34  ;;  %4965 = vmatmul.msk.bf16.gmra.mxu0 %vm341_vm1, %v5285_v34  ;;  %v2788_v29 = vmax.f32 %v2029_v28, 0.0  ;;  %v2791_v32 = vmax.f32 %v2536_v57, 0.0 }
 0x556   :  { %v3681_v35 = vpack.c.bf16 %v2776_v24, %v2775_v20  ;;  %v3682_v53 = vpack.c.bf16 %v2778_v21, %v2777_v25  ;;  %4901 = vmatmul.msk.bf16.gmra.mxu2 %vm341_vm1, %v5285_v34  ;;  %4933 = vmatmul.msk.bf16.gmra.mxu3 %vm341_vm1, %v5285_v34  ;;  %v5287_v25 = vld [vmem:[%s7188_s0 + $0x70] sm:$0xff] }
 0x558   :  { %4065 = vst [vmem:[#allocation8 + $0x170] sm:$0xff] %v3681_v35 }
 0x559   :  { %4066 = vst [vmem:[#allocation8 + $0x178] sm:$0xff] %v3682_v53  ;;  %v2197_v42 = vpop.f32.mrf.mxu2  ;;  %v2366_v23 = vpop.f32.mrf.mxu3 }
 0x55a   :  { %v2198_v14 = vadd.f32 %v2197_v42, %v6760_v15  ;;  %v2367_v0 = vadd.f32 %v2366_v23, %v6765_v27  ;;  %v2030_v33 = vpop.f32.mrf.mxu1  ;;  %v2537_v36 = vpop.f32.mrf.mxu0 }
 0x55b   :  { %v2031_v43 = vadd.f32 %v2030_v33, %v6748_v13  ;;  %v2538_v44 = vadd.f32 %v2537_v36, %v6752_v26 }
 0x55c   :  { %v2789_v37 = vmax.f32 %v2198_v14, 0.0  ;;  %v2790_v39 = vmax.f32 %v2367_v0, 0.0 }
 0x55d   :  { %v2801_v51 = vmax.f32 %v2031_v43, 0.0  ;;  %v2804_v52 = vmax.f32 %v2538_v44, 0.0 }
 0x55e   :  { %v3687_v40 = vpack.c.bf16 %v2789_v37, %v2788_v29  ;;  %v3688_v41 = vpack.c.bf16 %v2791_v32, %v2790_v39 }
 0x560   :  { %4071 = vst [vmem:[#allocation8 + $0x1a0] sm:$0xff] %v3687_v40 }
 0x561   :  { %4072 = vst [vmem:[#allocation8 + $0x1a8] sm:$0xff] %v3688_v41  ;;  %v2199_v45 = vpop.f32.mrf.mxu2  ;;  %v2368_v46 = vpop.f32.mrf.mxu3 }
 0x562   :  { %v2200_v47 = vadd.f32 %v2199_v45, %v6760_v15  ;;  %v2369_v48 = vadd.f32 %v2368_v46, %v6765_v27  ;;  %v2033_v49 = vpop.f32.mrf.mxu1  ;;  %v2540_v50 = vpop.f32.mrf.mxu0 }
 0x563   :  { %v2034_v22 = vadd.f32 %v2033_v49, %v6748_v13  ;;  %v2541_v60 = vadd.f32 %v2540_v50, %v6752_v26 }
 0x564   :  { %v2802_v55 = vmax.f32 %v2200_v47, 0.0  ;;  %v2803_v56 = vmax.f32 %v2369_v48, 0.0 }
 0x565   :  { %4870 = vmatmul.msk.bf16.gmra.mxu1 %vm341_vm1, %v5286_v58  ;;  %4966 = vmatmul.msk.bf16.gmra.mxu0 %vm341_vm1, %v5286_v58  ;;  %v2814_v31 = vmax.f32 %v2034_v22, 0.0  ;;  %v2817_v18 = vmax.f32 %v2541_v60, 0.0 }
 0x566   :  { %v3693_v59 = vpack.c.bf16 %v2802_v55, %v2801_v51  ;;  %v3694_v30 = vpack.c.bf16 %v2804_v52, %v2803_v56  ;;  %4902 = vmatmul.msk.bf16.gmra.mxu2 %vm341_vm1, %v5286_v58  ;;  %4934 = vmatmul.msk.bf16.gmra.mxu3 %vm341_vm1, %v5286_v58  ;;  %v5288_v56 = vld [vmem:[%s7188_s0 + $0x78] sm:$0xff] }
 0x568   :  { %4077 = vst [vmem:[#allocation8 + $0x1d0] sm:$0xff] %v3693_v59 }
 0x569   :  { %4078 = vst [vmem:[#allocation8 + $0x1d8] sm:$0xff] %v3694_v30  ;;  %v2202_v1 = vpop.f32.mrf.mxu2  ;;  %v2371_v6 = vpop.f32.mrf.mxu3 }
 0x56a   :  { %v2203_v54 = vadd.f32 %v2202_v1, %v6760_v15  ;;  %v2372_v38 = vadd.f32 %v2371_v6, %v6765_v27  ;;  %v2035_v61 = vpop.f32.mrf.mxu1  ;;  %v2542_v62 = vpop.f32.mrf.mxu0 }
 0x56b   :  { %v2036_v7 = vadd.f32 %v2035_v61, %v6748_v13  ;;  %v2543_v8 = vadd.f32 %v2542_v62, %v6752_v26 }
 0x56c   :  { %v2815_v63 = vmax.f32 %v2203_v54, 0.0  ;;  %v2816_v2 = vmax.f32 %v2372_v38, 0.0 }
 0x56d   :  { %v2827_v17 = vmax.f32 %v2036_v7, 0.0  ;;  %v2830_v19 = vmax.f32 %v2543_v8, 0.0 }
 0x56e   :  { %v3699_v4 = vpack.c.bf16 %v2815_v63, %v2814_v31  ;;  %v3700_v5 = vpack.c.bf16 %v2817_v18, %v2816_v2 }
 0x570   :  { %4083 = vst [vmem:[#allocation8 + $0x200] sm:$0xff] %v3699_v4 }
 0x571   :  { %4084 = vst [vmem:[#allocation8 + $0x208] sm:$0xff] %v3700_v5  ;;  %v2204_v9 = vpop.f32.mrf.mxu2  ;;  %v2373_v10 = vpop.f32.mrf.mxu3 }
 0x572   :  { %v2205_v11 = vadd.f32 %v2204_v9, %v6760_v15  ;;  %v2374_v12 = vadd.f32 %v2373_v10, %v6765_v27  ;;  %v2038_v3 = vpop.f32.mrf.mxu1  ;;  %v2545_v16 = vpop.f32.mrf.mxu0 }
 0x573   :  { %v2039_v24 = vadd.f32 %v2038_v3, %v6748_v13  ;;  %v2546_v35 = vadd.f32 %v2545_v16, %v6752_v26 }
 0x574   :  { %v2828_v20 = vmax.f32 %v2205_v11, 0.0  ;;  %v2829_v21 = vmax.f32 %v2374_v12, 0.0 }
 0x575   :  { %4871 = vmatmul.msk.bf16.gmra.mxu1 %vm341_vm1, %v5287_v25  ;;  %4967 = vmatmul.msk.bf16.gmra.mxu0 %vm341_vm1, %v5287_v25  ;;  %v2840_v42 = vmax.f32 %v2039_v24, 0.0  ;;  %v2843_v23 = vmax.f32 %v2546_v35, 0.0 }
 0x576   :  { %v3705_v28 = vpack.c.bf16 %v2828_v20, %v2827_v17  ;;  %v3706_v34 = vpack.c.bf16 %v2830_v19, %v2829_v21  ;;  %4903 = vmatmul.msk.bf16.gmra.mxu2 %vm341_vm1, %v5287_v25  ;;  %4935 = vmatmul.msk.bf16.gmra.mxu3 %vm341_vm1, %v5287_v25  ;;  %v5289_v21 = vld [vmem:[%s7188_s0 + $0x80] sm:$0xff] }
 0x578   :  { %4089 = vst [vmem:[#allocation8 + $0x230] sm:$0xff] %v3705_v28 }
 0x579   :  { %4090 = vst [vmem:[#allocation8 + $0x238] sm:$0xff] %v3706_v34  ;;  %v2207_v53 = vpop.f32.mrf.mxu2  ;;  %v2376_v57 = vpop.f32.mrf.mxu3 }
 0x57a   :  { %v2208_v29 = vadd.f32 %v2207_v53, %v6760_v15  ;;  %v2377_v32 = vadd.f32 %v2376_v57, %v6765_v27  ;;  %v2040_v14 = vpop.f32.mrf.mxu1  ;;  %v2547_v0 = vpop.f32.mrf.mxu0 }
 0x57b   :  { %v2041_v40 = vadd.f32 %v2040_v14, %v6748_v13  ;;  %v2548_v41 = vadd.f32 %v2547_v0, %v6752_v26 }
 0x57c   :  { %v2841_v33 = vmax.f32 %v2208_v29, 0.0  ;;  %v2842_v36 = vmax.f32 %v2377_v32, 0.0 }
 0x57d   :  { %v2853_v49 = vmax.f32 %v2041_v40, 0.0  ;;  %v2856_v50 = vmax.f32 %v2548_v41, 0.0 }
 0x57e   :  { %v3711_v37 = vpack.c.bf16 %v2841_v33, %v2840_v42  ;;  %v3712_v39 = vpack.c.bf16 %v2843_v23, %v2842_v36 }
 0x580   :  { %4095 = vst [vmem:[#allocation8 + $0x260] sm:$0xff] %v3711_v37 }
 0x581   :  { %4096 = vst [vmem:[#allocation8 + $0x268] sm:$0xff] %v3712_v39  ;;  %v2209_v43 = vpop.f32.mrf.mxu2  ;;  %v2378_v44 = vpop.f32.mrf.mxu3 }
 0x582   :  { %v2210_v45 = vadd.f32 %v2209_v43, %v6760_v15  ;;  %v2379_v46 = vadd.f32 %v2378_v44, %v6765_v27  ;;  %v2043_v47 = vpop.f32.mrf.mxu1  ;;  %v2550_v48 = vpop.f32.mrf.mxu0 }
 0x583   :  { %v2044_v55 = vadd.f32 %v2043_v47, %v6748_v13  ;;  %v2551_v59 = vadd.f32 %v2550_v48, %v6752_v26 }
 0x584   :  { %v2854_v51 = vmax.f32 %v2210_v45, 0.0  ;;  %v2855_v52 = vmax.f32 %v2379_v46, 0.0 }
 0x585   :  { %4872 = vmatmul.msk.bf16.gmra.mxu1 %vm341_vm1, %v5288_v56  ;;  %4968 = vmatmul.msk.bf16.gmra.mxu0 %vm341_vm1, %v5288_v56  ;;  %v2866_v1 = vmax.f32 %v2044_v55, 0.0  ;;  %v2869_v6 = vmax.f32 %v2551_v59, 0.0 }
 0x586   :  { %v3717_v22 = vpack.c.bf16 %v2854_v51, %v2853_v49  ;;  %v3718_v58 = vpack.c.bf16 %v2856_v50, %v2855_v52  ;;  %4904 = vmatmul.msk.bf16.gmra.mxu2 %vm341_vm1, %v5288_v56  ;;  %4936 = vmatmul.msk.bf16.gmra.mxu3 %vm341_vm1, %v5288_v56  ;;  %v5290_v52 = vld [vmem:[%s7188_s0 + $0x88] sm:$0xff] }
 0x588   :  { %4101 = vst [vmem:[#allocation8 + $0x290] sm:$0xff] %v3717_v22 }
 0x589   :  { %4102 = vst [vmem:[#allocation8 + $0x298] sm:$0xff] %v3718_v58  ;;  %v2212_v30 = vpop.f32.mrf.mxu2  ;;  %v2381_v60 = vpop.f32.mrf.mxu3 }
 0x58a   :  { %v2213_v31 = vadd.f32 %v2212_v30, %v6760_v15  ;;  %v2382_v18 = vadd.f32 %v2381_v60, %v6765_v27  ;;  %v2045_v54 = vpop.f32.mrf.mxu1  ;;  %v2552_v38 = vpop.f32.mrf.mxu0 }
 0x58b   :  { %v2046_v4 = vadd.f32 %v2045_v54, %v6748_v13  ;;  %v2553_v5 = vadd.f32 %v2552_v38, %v6752_v26 }
 0x58c   :  { %v2867_v61 = vmax.f32 %v2213_v31, 0.0  ;;  %v2868_v62 = vmax.f32 %v2382_v18, 0.0 }
 0x58d   :  { %v2879_v3 = vmax.f32 %v2046_v4, 0.0  ;;  %v2882_v16 = vmax.f32 %v2553_v5, 0.0 }
 0x58e   :  { %v3723_v63 = vpack.c.bf16 %v2867_v61, %v2866_v1  ;;  %v3724_v2 = vpack.c.bf16 %v2869_v6, %v2868_v62 }
 0x590   :  { %4107 = vst [vmem:[#allocation8 + $0x2c0] sm:$0xff] %v3723_v63 }
 0x591   :  { %4108 = vst [vmem:[#allocation8 + $0x2c8] sm:$0xff] %v3724_v2  ;;  %v2214_v7 = vpop.f32.mrf.mxu2  ;;  %v2383_v8 = vpop.f32.mrf.mxu3 }
 0x592   :  { %v2215_v9 = vadd.f32 %v2214_v7, %v6760_v15  ;;  %v2384_v10 = vadd.f32 %v2383_v8, %v6765_v27  ;;  %v2048_v11 = vpop.f32.mrf.mxu1  ;;  %v2555_v12 = vpop.f32.mrf.mxu0 }
 0x593   :  { %v2049_v20 = vadd.f32 %v2048_v11, %v6748_v13  ;;  %v2556_v28 = vadd.f32 %v2555_v12, %v6752_v26 }
 0x594   :  { %v2880_v17 = vmax.f32 %v2215_v9, 0.0  ;;  %v2881_v19 = vmax.f32 %v2384_v10, 0.0 }
 0x595   :  { %4873 = vmatmul.msk.bf16.gmra.mxu1 %vm341_vm1, %v5289_v21  ;;  %4969 = vmatmul.msk.bf16.gmra.mxu0 %vm341_vm1, %v5289_v21  ;;  %v2892_v53 = vmax.f32 %v2049_v20, 0.0  ;;  %v2895_v57 = vmax.f32 %v2556_v28, 0.0 }
 0x596   :  { %v3729_v24 = vpack.c.bf16 %v2880_v17, %v2879_v3  ;;  %v3730_v25 = vpack.c.bf16 %v2882_v16, %v2881_v19  ;;  %4905 = vmatmul.msk.bf16.gmra.mxu2 %vm341_vm1, %v5289_v21  ;;  %4937 = vmatmul.msk.bf16.gmra.mxu3 %vm341_vm1, %v5289_v21  ;;  %v5291_v19 = vld [vmem:[%s7188_s0 + $0x90] sm:$0xff] }
 0x598   :  { %4113 = vst [vmem:[#allocation8 + $0x2f0] sm:$0xff] %v3729_v24 }
 0x599   :  { %4114 = vst [vmem:[#allocation8 + $0x2f8] sm:$0xff] %v3730_v25  ;;  %v2217_v34 = vpop.f32.mrf.mxu2  ;;  %v2386_v35 = vpop.f32.mrf.mxu3 }
 0x59a   :  { %v2218_v42 = vadd.f32 %v2217_v34, %v6760_v15  ;;  %v2387_v23 = vadd.f32 %v2386_v35, %v6765_v27  ;;  %v2050_v29 = vpop.f32.mrf.mxu1  ;;  %v2557_v32 = vpop.f32.mrf.mxu0 }
 0x59b   :  { %v2051_v37 = vadd.f32 %v2050_v29, %v6748_v13  ;;  %v2558_v39 = vadd.f32 %v2557_v32, %v6752_v26 }
 0x59c   :  { %v2893_v14 = vmax.f32 %v2218_v42, 0.0  ;;  %v2894_v0 = vmax.f32 %v2387_v23, 0.0 }
 0x59d   :  { %v2905_v47 = vmax.f32 %v2051_v37, 0.0  ;;  %v2908_v48 = vmax.f32 %v2558_v39, 0.0 }
 0x59e   :  { %v3735_v33 = vpack.c.bf16 %v2893_v14, %v2892_v53  ;;  %v3736_v36 = vpack.c.bf16 %v2895_v57, %v2894_v0 }
 0x5a0   :  { %4119 = vst [vmem:[#allocation8 + $0x320] sm:$0xff] %v3735_v33 }
 0x5a1   :  { %4120 = vst [vmem:[#allocation8 + $0x328] sm:$0xff] %v3736_v36  ;;  %v2219_v40 = vpop.f32.mrf.mxu2  ;;  %v2388_v41 = vpop.f32.mrf.mxu3 }
 0x5a2   :  { %v2220_v43 = vadd.f32 %v2219_v40, %v6760_v15  ;;  %v2389_v44 = vadd.f32 %v2388_v41, %v6765_v27  ;;  %v2053_v45 = vpop.f32.mrf.mxu1  ;;  %v2560_v46 = vpop.f32.mrf.mxu0 }
 0x5a3   :  { %v2054_v51 = vadd.f32 %v2053_v45, %v6748_v13  ;;  %v2561_v22 = vadd.f32 %v2560_v46, %v6752_v26 }
 0x5a4   :  { %v2906_v49 = vmax.f32 %v2220_v43, 0.0  ;;  %v2907_v50 = vmax.f32 %v2389_v44, 0.0 }
 0x5a5   :  { %4874 = vmatmul.msk.bf16.gmra.mxu1 %vm341_vm1, %v5290_v52  ;;  %4970 = vmatmul.msk.bf16.gmra.mxu0 %vm341_vm1, %v5290_v52  ;;  %v2918_v30 = vmax.f32 %v2054_v51, 0.0  ;;  %v2921_v60 = vmax.f32 %v2561_v22, 0.0 }
 0x5a6   :  { %v3741_v55 = vpack.c.bf16 %v2906_v49, %v2905_v47  ;;  %v3742_v56 = vpack.c.bf16 %v2908_v48, %v2907_v50  ;;  %4906 = vmatmul.msk.bf16.gmra.mxu2 %vm341_vm1, %v5290_v52  ;;  %4938 = vmatmul.msk.bf16.gmra.mxu3 %vm341_vm1, %v5290_v52  ;;  %v5292_v50 = vld [vmem:[%s7188_s0 + $0x98] sm:$0xff] }
 0x5a8   :  { %4125 = vst [vmem:[#allocation8 + $0x350] sm:$0xff] %v3741_v55 }
 0x5a9   :  { %4126 = vst [vmem:[#allocation8 + $0x358] sm:$0xff] %v3742_v56  ;;  %v2222_v58 = vpop.f32.mrf.mxu2  ;;  %v2391_v59 = vpop.f32.mrf.mxu3 }
 0x5aa   :  { %v2223_v1 = vadd.f32 %v2222_v58, %v6760_v15  ;;  %v2392_v6 = vadd.f32 %v2391_v59, %v6765_v27  ;;  %v2055_v31 = vpop.f32.mrf.mxu1  ;;  %v2562_v18 = vpop.f32.mrf.mxu0 }
 0x5ab   :  { %v2056_v63 = vadd.f32 %v2055_v31, %v6748_v13  ;;  %v2563_v2 = vadd.f32 %v2562_v18, %v6752_v26 }
 0x5ac   :  { %v2919_v54 = vmax.f32 %v2223_v1, 0.0  ;;  %v2920_v38 = vmax.f32 %v2392_v6, 0.0 }
 0x5ad   :  { %v2931_v11 = vmax.f32 %v2056_v63, 0.0  ;;  %v2934_v12 = vmax.f32 %v2563_v2, 0.0 }
 0x5ae   :  { %v3747_v61 = vpack.c.bf16 %v2919_v54, %v2918_v30  ;;  %v3748_v62 = vpack.c.bf16 %v2921_v60, %v2920_v38 }
 0x5b0   :  { %4131 = vst [vmem:[#allocation8 + $0x380] sm:$0xff] %v3747_v61 }
 0x5b1   :  { %4132 = vst [vmem:[#allocation8 + $0x388] sm:$0xff] %v3748_v62  ;;  %v2224_v4 = vpop.f32.mrf.mxu2  ;;  %v2393_v5 = vpop.f32.mrf.mxu3 }
 0x5b2   :  { %v2225_v7 = vadd.f32 %v2224_v4, %v6760_v15  ;;  %v2394_v8 = vadd.f32 %v2393_v5, %v6765_v27  ;;  %v2058_v9 = vpop.f32.mrf.mxu1  ;;  %v2565_v10 = vpop.f32.mrf.mxu0 }
 0x5b3   :  { %v2059_v17 = vadd.f32 %v2058_v9, %v6748_v13  ;;  %v2566_v24 = vadd.f32 %v2565_v10, %v6752_v26 }
 0x5b4   :  { %v2932_v3 = vmax.f32 %v2225_v7, 0.0  ;;  %v2933_v16 = vmax.f32 %v2394_v8, 0.0 }
 0x5b5   :  { %4875 = vmatmul.msk.bf16.gmra.mxu1 %vm341_vm1, %v5291_v19  ;;  %4971 = vmatmul.msk.bf16.gmra.mxu0 %vm341_vm1, %v5291_v19  ;;  %v2944_v34 = vmax.f32 %v2059_v17, 0.0  ;;  %v2947_v35 = vmax.f32 %v2566_v24, 0.0 }
 0x5b6   :  { %v3753_v20 = vpack.c.bf16 %v2932_v3, %v2931_v11  ;;  %v3754_v21 = vpack.c.bf16 %v2934_v12, %v2933_v16  ;;  %4907 = vmatmul.msk.bf16.gmra.mxu2 %vm341_vm1, %v5291_v19  ;;  %4939 = vmatmul.msk.bf16.gmra.mxu3 %vm341_vm1, %v5291_v19  ;;  %v5293_v16 = vld [vmem:[%s7188_s0 + $0xa0] sm:$0xff] }
 0x5b8   :  { %4137 = vst [vmem:[#allocation8 + $0x3b0] sm:$0xff] %v3753_v20 }
 0x5b9   :  { %4138 = vst [vmem:[#allocation8 + $0x3b8] sm:$0xff] %v3754_v21  ;;  %v2227_v25 = vpop.f32.mrf.mxu2  ;;  %v2396_v28 = vpop.f32.mrf.mxu3 }
 0x5ba   :  { %v2228_v53 = vadd.f32 %v2227_v25, %v6760_v15  ;;  %v2397_v57 = vadd.f32 %v2396_v28, %v6765_v27  ;;  %v2060_v42 = vpop.f32.mrf.mxu1  ;;  %v2567_v23 = vpop.f32.mrf.mxu0 }
 0x5bb   :  { %v2061_v33 = vadd.f32 %v2060_v42, %v6748_v13  ;;  %v2568_v36 = vadd.f32 %v2567_v23, %v6752_v26 }
 0x5bc   :  { %v2945_v29 = vmax.f32 %v2228_v53, 0.0  ;;  %v2946_v32 = vmax.f32 %v2397_v57, 0.0 }
 0x5bd   :  { %v2957_v45 = vmax.f32 %v2061_v33, 0.0  ;;  %v2960_v46 = vmax.f32 %v2568_v36, 0.0 }
 0x5be   :  { %v3759_v14 = vpack.c.bf16 %v2945_v29, %v2944_v34  ;;  %v3760_v0 = vpack.c.bf16 %v2947_v35, %v2946_v32 }
 0x5c0   :  { %4143 = vst [vmem:[#allocation8 + $0x3e0] sm:$0xff] %v3759_v14 }
 0x5c1   :  { %4144 = vst [vmem:[#allocation8 + $0x3e8] sm:$0xff] %v3760_v0  ;;  %v2229_v37 = vpop.f32.mrf.mxu2  ;;  %v2398_v39 = vpop.f32.mrf.mxu3 }
 0x5c2   :  { %v2230_v40 = vadd.f32 %v2229_v37, %v6760_v15  ;;  %v2399_v41 = vadd.f32 %v2398_v39, %v6765_v27  ;;  %v2063_v43 = vpop.f32.mrf.mxu1  ;;  %v2570_v44 = vpop.f32.mrf.mxu0 }
 0x5c3   :  { %v2064_v49 = vadd.f32 %v2063_v43, %v6748_v13  ;;  %v2571_v55 = vadd.f32 %v2570_v44, %v6752_v26 }
 0x5c4   :  { %v2958_v47 = vmax.f32 %v2230_v40, 0.0  ;;  %v2959_v48 = vmax.f32 %v2399_v41, 0.0 }
 0x5c5   :  { %4876 = vmatmul.msk.bf16.gmra.mxu1 %vm341_vm1, %v5292_v50  ;;  %4972 = vmatmul.msk.bf16.gmra.mxu0 %vm341_vm1, %v5292_v50  ;;  %v2970_v58 = vmax.f32 %v2064_v49, 0.0  ;;  %v2973_v59 = vmax.f32 %v2571_v55, 0.0 }
 0x5c6   :  { %v3765_v51 = vpack.c.bf16 %v2958_v47, %v2957_v45  ;;  %v3766_v52 = vpack.c.bf16 %v2960_v46, %v2959_v48  ;;  %4908 = vmatmul.msk.bf16.gmra.mxu2 %vm341_vm1, %v5292_v50  ;;  %4940 = vmatmul.msk.bf16.gmra.mxu3 %vm341_vm1, %v5292_v50  ;;  %v5294_v48 = vld [vmem:[%s7188_s0 + $0xa8] sm:$0xff] }
 0x5c8   :  { %4149 = vst [vmem:[#allocation8 + $0x410] sm:$0xff] %v3765_v51 }
 0x5c9   :  { %4150 = vst [vmem:[#allocation8 + $0x418] sm:$0xff] %v3766_v52  ;;  %v2232_v56 = vpop.f32.mrf.mxu2  ;;  %v2401_v22 = vpop.f32.mrf.mxu3 }
 0x5ca   :  { %v2233_v30 = vadd.f32 %v2232_v56, %v6760_v15  ;;  %v2402_v60 = vadd.f32 %v2401_v22, %v6765_v27  ;;  %v2065_v1 = vpop.f32.mrf.mxu1  ;;  %v2572_v6 = vpop.f32.mrf.mxu0 }
 0x5cb   :  { %v2066_v61 = vadd.f32 %v2065_v1, %v6748_v13  ;;  %v2573_v62 = vadd.f32 %v2572_v6, %v6752_v26 }
 0x5cc   :  { %v2971_v31 = vmax.f32 %v2233_v30, 0.0  ;;  %v2972_v18 = vmax.f32 %v2402_v60, 0.0 }
 0x5cd   :  { %v2983_v9 = vmax.f32 %v2066_v61, 0.0  ;;  %v2986_v10 = vmax.f32 %v2573_v62, 0.0 }
 0x5ce   :  { %v3771_v54 = vpack.c.bf16 %v2971_v31, %v2970_v58  ;;  %v3772_v38 = vpack.c.bf16 %v2973_v59, %v2972_v18 }
 0x5d0   :  { %4155 = vst [vmem:[#allocation8 + $0x440] sm:$0xff] %v3771_v54 }
 0x5d1   :  { %4156 = vst [vmem:[#allocation8 + $0x448] sm:$0xff] %v3772_v38  ;;  %v2234_v63 = vpop.f32.mrf.mxu2  ;;  %v2403_v2 = vpop.f32.mrf.mxu3 }
 0x5d2   :  { %v2235_v4 = vadd.f32 %v2234_v63, %v6760_v15  ;;  %v2404_v5 = vadd.f32 %v2403_v2, %v6765_v27  ;;  %v2068_v7 = vpop.f32.mrf.mxu1  ;;  %v2575_v8 = vpop.f32.mrf.mxu0 }
 0x5d3   :  { %v2069_v3 = vadd.f32 %v2068_v7, %v6748_v13  ;;  %v2576_v20 = vadd.f32 %v2575_v8, %v6752_v26 }
 0x5d4   :  { %v2984_v11 = vmax.f32 %v2235_v4, 0.0  ;;  %v2985_v12 = vmax.f32 %v2404_v5, 0.0 }
 0x5d5   :  { %4877 = vmatmul.msk.bf16.gmra.mxu1 %vm341_vm1, %v5293_v16  ;;  %4973 = vmatmul.msk.bf16.gmra.mxu0 %vm341_vm1, %v5293_v16  ;;  %v2996_v25 = vmax.f32 %v2069_v3, 0.0  ;;  %v2999_v28 = vmax.f32 %v2576_v20, 0.0 }
 0x5d6   :  { %v3777_v17 = vpack.c.bf16 %v2984_v11, %v2983_v9  ;;  %v3778_v19 = vpack.c.bf16 %v2986_v10, %v2985_v12  ;;  %4909 = vmatmul.msk.bf16.gmra.mxu2 %vm341_vm1, %v5293_v16  ;;  %4941 = vmatmul.msk.bf16.gmra.mxu3 %vm341_vm1, %v5293_v16  ;;  %v5295_v12 = vld [vmem:[%s7188_s0 + $0xb0] sm:$0xff] }
 0x5d8   :  { %4161 = vst [vmem:[#allocation8 + $0x470] sm:$0xff] %v3777_v17 }
 0x5d9   :  { %4162 = vst [vmem:[#allocation8 + $0x478] sm:$0xff] %v3778_v19  ;;  %v2237_v21 = vpop.f32.mrf.mxu2  ;;  %v2406_v24 = vpop.f32.mrf.mxu3 }
 0x5da   :  { %v2238_v34 = vadd.f32 %v2237_v21, %v6760_v15  ;;  %v2407_v35 = vadd.f32 %v2406_v24, %v6765_v27  ;;  %v2070_v53 = vpop.f32.mrf.mxu1  ;;  %v2577_v57 = vpop.f32.mrf.mxu0 }
 0x5db   :  { %v2071_v14 = vadd.f32 %v2070_v53, %v6748_v13  ;;  %v2578_v0 = vadd.f32 %v2577_v57, %v6752_v26 }
 0x5dc   :  { %v2997_v42 = vmax.f32 %v2238_v34, 0.0  ;;  %v2998_v23 = vmax.f32 %v2407_v35, 0.0 }
 0x5dd   :  { %v3009_v43 = vmax.f32 %v2071_v14, 0.0  ;;  %v3012_v44 = vmax.f32 %v2578_v0, 0.0 }
 0x5de   :  { %v3783_v29 = vpack.c.bf16 %v2997_v42, %v2996_v25  ;;  %v3784_v32 = vpack.c.bf16 %v2999_v28, %v2998_v23 }
 0x5e0   :  { %4167 = vst [vmem:[#allocation8 + $0x4a0] sm:$0xff] %v3783_v29 }
 0x5e1   :  { %4168 = vst [vmem:[#allocation8 + $0x4a8] sm:$0xff] %v3784_v32  ;;  %v2239_v33 = vpop.f32.mrf.mxu2  ;;  %v2408_v36 = vpop.f32.mrf.mxu3 }
 0x5e2   :  { %v2240_v37 = vadd.f32 %v2239_v33, %v6760_v15  ;;  %v2409_v39 = vadd.f32 %v2408_v36, %v6765_v27  ;;  %v2073_v40 = vpop.f32.mrf.mxu1  ;;  %v2580_v41 = vpop.f32.mrf.mxu0 }
 0x5e3   :  { %v2074_v47 = vadd.f32 %v2073_v40, %v6748_v13  ;;  %v2581_v51 = vadd.f32 %v2580_v41, %v6752_v26 }
 0x5e4   :  { %v3010_v45 = vmax.f32 %v2240_v37, 0.0  ;;  %v3011_v46 = vmax.f32 %v2409_v39, 0.0 }
 0x5e5   :  { %4878 = vmatmul.msk.bf16.gmra.mxu1 %vm341_vm1, %v5294_v48  ;;  %4974 = vmatmul.msk.bf16.gmra.mxu0 %vm341_vm1, %v5294_v48  ;;  %v3022_v56 = vmax.f32 %v2074_v47, 0.0  ;;  %v3025_v22 = vmax.f32 %v2581_v51, 0.0 }
 0x5e6   :  { %v3789_v49 = vpack.c.bf16 %v3010_v45, %v3009_v43  ;;  %v3790_v50 = vpack.c.bf16 %v3012_v44, %v3011_v46  ;;  %4910 = vmatmul.msk.bf16.gmra.mxu2 %vm341_vm1, %v5294_v48  ;;  %4942 = vmatmul.msk.bf16.gmra.mxu3 %vm341_vm1, %v5294_v48  ;;  %v5296_v46 = vld [vmem:[%s7188_s0 + $0xb8] sm:$0xff] }
 0x5e8   :  { %4173 = vst [vmem:[#allocation8 + $0x4d0] sm:$0xff] %v3789_v49 }
 0x5e9   :  { %4174 = vst [vmem:[#allocation8 + $0x4d8] sm:$0xff] %v3790_v50  ;;  %v2242_v52 = vpop.f32.mrf.mxu2  ;;  %v2411_v55 = vpop.f32.mrf.mxu3 }
 0x5ea   :  { %v2243_v58 = vadd.f32 %v2242_v52, %v6760_v15  ;;  %v2412_v59 = vadd.f32 %v2411_v55, %v6765_v27  ;;  %v2075_v30 = vpop.f32.mrf.mxu1  ;;  %v2582_v60 = vpop.f32.mrf.mxu0 }
 0x5eb   :  { %v2076_v54 = vadd.f32 %v2075_v30, %v6748_v13  ;;  %v2583_v38 = vadd.f32 %v2582_v60, %v6752_v26 }
 0x5ec   :  { %v3023_v1 = vmax.f32 %v2243_v58, 0.0  ;;  %v3024_v6 = vmax.f32 %v2412_v59, 0.0 }
 0x5ed   :  { %v3035_v7 = vmax.f32 %v2076_v54, 0.0  ;;  %v3038_v8 = vmax.f32 %v2583_v38, 0.0 }
 0x5ee   :  { %v3795_v31 = vpack.c.bf16 %v3023_v1, %v3022_v56  ;;  %v3796_v18 = vpack.c.bf16 %v3025_v22, %v3024_v6 }
 0x5f0   :  { %4179 = vst [vmem:[#allocation8 + $0x500] sm:$0xff] %v3795_v31 }
 0x5f1   :  { %4180 = vst [vmem:[#allocation8 + $0x508] sm:$0xff] %v3796_v18  ;;  %v2244_v61 = vpop.f32.mrf.mxu2  ;;  %v2413_v62 = vpop.f32.mrf.mxu3 }
 0x5f2   :  { %v2245_v63 = vadd.f32 %v2244_v61, %v6760_v15  ;;  %v2414_v2 = vadd.f32 %v2413_v62, %v6765_v27  ;;  %v2078_v4 = vpop.f32.mrf.mxu1  ;;  %v2585_v5 = vpop.f32.mrf.mxu0 }
 0x5f3   :  { %v2079_v11 = vadd.f32 %v2078_v4, %v6748_v13  ;;  %v2586_v17 = vadd.f32 %v2585_v5, %v6752_v26 }
 0x5f4   :  { %v3036_v9 = vmax.f32 %v2245_v63, 0.0  ;;  %v3037_v10 = vmax.f32 %v2414_v2, 0.0 }
 0x5f5   :  { %4879 = vmatmul.msk.bf16.gmra.mxu1 %vm341_vm1, %v5295_v12  ;;  %4975 = vmatmul.msk.bf16.gmra.mxu0 %vm341_vm1, %v5295_v12  ;;  %v3048_v21 = vmax.f32 %v2079_v11, 0.0  ;;  %v3051_v24 = vmax.f32 %v2586_v17, 0.0 }
 0x5f6   :  { %v3801_v3 = vpack.c.bf16 %v3036_v9, %v3035_v7  ;;  %v3802_v16 = vpack.c.bf16 %v3038_v8, %v3037_v10  ;;  %4911 = vmatmul.msk.bf16.gmra.mxu2 %vm341_vm1, %v5295_v12  ;;  %4943 = vmatmul.msk.bf16.gmra.mxu3 %vm341_vm1, %v5295_v12  ;;  %v5297_v10 = vld [vmem:[%s7188_s0 + $0xc0] sm:$0xff] }
 0x5f8   :  { %4185 = vst [vmem:[#allocation8 + $0x530] sm:$0xff] %v3801_v3 }
 0x5f9   :  { %4186 = vst [vmem:[#allocation8 + $0x538] sm:$0xff] %v3802_v16  ;;  %v2247_v19 = vpop.f32.mrf.mxu2  ;;  %v2416_v20 = vpop.f32.mrf.mxu3 }
 0x5fa   :  { %v2248_v25 = vadd.f32 %v2247_v19, %v6760_v15  ;;  %v2417_v28 = vadd.f32 %v2416_v20, %v6765_v27  ;;  %v2080_v34 = vpop.f32.mrf.mxu1  ;;  %v2587_v35 = vpop.f32.mrf.mxu0 }
 0x5fb   :  { %v2081_v29 = vadd.f32 %v2080_v34, %v6748_v13  ;;  %v2588_v32 = vadd.f32 %v2587_v35, %v6752_v26 }
 0x5fc   :  { %v3049_v53 = vmax.f32 %v2248_v25, 0.0  ;;  %v3050_v57 = vmax.f32 %v2417_v28, 0.0 }
 0x5fd   :  { %v3061_v40 = vmax.f32 %v2081_v29, 0.0  ;;  %v3064_v41 = vmax.f32 %v2588_v32, 0.0 }
 0x5fe   :  { %v3807_v42 = vpack.c.bf16 %v3049_v53, %v3048_v21  ;;  %v3808_v23 = vpack.c.bf16 %v3051_v24, %v3050_v57 }
 0x600   :  { %4191 = vst [vmem:[#allocation8 + $0x560] sm:$0xff] %v3807_v42 }
 0x601   :  { %4192 = vst [vmem:[#allocation8 + $0x568] sm:$0xff] %v3808_v23  ;;  %v2249_v14 = vpop.f32.mrf.mxu2  ;;  %v2418_v0 = vpop.f32.mrf.mxu3 }
 0x602   :  { %v2250_v33 = vadd.f32 %v2249_v14, %v6760_v15  ;;  %v2419_v36 = vadd.f32 %v2418_v0, %v6765_v27  ;;  %v2083_v37 = vpop.f32.mrf.mxu1  ;;  %v2590_v39 = vpop.f32.mrf.mxu0 }
 0x603   :  { %v2084_v45 = vadd.f32 %v2083_v37, %v6748_v13  ;;  %v2591_v49 = vadd.f32 %v2590_v39, %v6752_v26 }
 0x604   :  { %v3062_v43 = vmax.f32 %v2250_v33, 0.0  ;;  %v3063_v44 = vmax.f32 %v2419_v36, 0.0 }
 0x605   :  { %4880 = vmatmul.msk.bf16.gmra.mxu1 %vm341_vm1, %v5296_v46  ;;  %4976 = vmatmul.msk.bf16.gmra.mxu0 %vm341_vm1, %v5296_v46  ;;  %v3074_v52 = vmax.f32 %v2084_v45, 0.0  ;;  %v3077_v55 = vmax.f32 %v2591_v49, 0.0 }
 0x606   :  { %v3813_v47 = vpack.c.bf16 %v3062_v43, %v3061_v40  ;;  %v3814_v48 = vpack.c.bf16 %v3064_v41, %v3063_v44  ;;  %4912 = vmatmul.msk.bf16.gmra.mxu2 %vm341_vm1, %v5296_v46  ;;  %4944 = vmatmul.msk.bf16.gmra.mxu3 %vm341_vm1, %v5296_v46  ;;  %v5298_v44 = vld [vmem:[%s7188_s0 + $0xc8] sm:$0xff] }
 0x608   :  { %4197 = vst [vmem:[#allocation8 + $0x590] sm:$0xff] %v3813_v47 }
 0x609   :  { %4198 = vst [vmem:[#allocation8 + $0x598] sm:$0xff] %v3814_v48  ;;  %v2252_v50 = vpop.f32.mrf.mxu2  ;;  %v2421_v51 = vpop.f32.mrf.mxu3 }
 0x60a   :  { %v2253_v56 = vadd.f32 %v2252_v50, %v6760_v15  ;;  %v2422_v22 = vadd.f32 %v2421_v51, %v6765_v27  ;;  %v2085_v58 = vpop.f32.mrf.mxu1  ;;  %v2592_v59 = vpop.f32.mrf.mxu0 }
 0x60b   :  { %v2086_v31 = vadd.f32 %v2085_v58, %v6748_v13  ;;  %v2593_v18 = vadd.f32 %v2592_v59, %v6752_v26 }
 0x60c   :  { %v3075_v30 = vmax.f32 %v2253_v56, 0.0  ;;  %v3076_v60 = vmax.f32 %v2422_v22, 0.0 }
 0x60d   :  { %v3087_v4 = vmax.f32 %v2086_v31, 0.0  ;;  %v3090_v5 = vmax.f32 %v2593_v18, 0.0 }
 0x60e   :  { %v3819_v1 = vpack.c.bf16 %v3075_v30, %v3074_v52  ;;  %v3820_v6 = vpack.c.bf16 %v3077_v55, %v3076_v60 }
 0x610   :  { %4203 = vst [vmem:[#allocation8 + $0x5c0] sm:$0xff] %v3819_v1 }
 0x611   :  { %4204 = vst [vmem:[#allocation8 + $0x5c8] sm:$0xff] %v3820_v6  ;;  %v2254_v54 = vpop.f32.mrf.mxu2  ;;  %v2423_v38 = vpop.f32.mrf.mxu3 }
 0x612   :  { %v2255_v61 = vadd.f32 %v2254_v54, %v6760_v15  ;;  %v2424_v62 = vadd.f32 %v2423_v38, %v6765_v27  ;;  %v2088_v63 = vpop.f32.mrf.mxu1  ;;  %v2595_v2 = vpop.f32.mrf.mxu0 }
 0x613   :  { %v2089_v9 = vadd.f32 %v2088_v63, %v6748_v13  ;;  %v2596_v3 = vadd.f32 %v2595_v2, %v6752_v26 }
 0x614   :  { %v3088_v7 = vmax.f32 %v2255_v61, 0.0  ;;  %v3089_v8 = vmax.f32 %v2424_v62, 0.0 }
 0x615   :  { %4881 = vmatmul.msk.bf16.gmra.mxu1 %vm341_vm1, %v5297_v10  ;;  %4977 = vmatmul.msk.bf16.gmra.mxu0 %vm341_vm1, %v5297_v10  ;;  %v3100_v19 = vmax.f32 %v2089_v9, 0.0  ;;  %v3103_v20 = vmax.f32 %v2596_v3, 0.0 }
 0x616   :  { %v3825_v11 = vpack.c.bf16 %v3088_v7, %v3087_v4  ;;  %v3826_v12 = vpack.c.bf16 %v3090_v5, %v3089_v8  ;;  %4913 = vmatmul.msk.bf16.gmra.mxu2 %vm341_vm1, %v5297_v10  ;;  %4945 = vmatmul.msk.bf16.gmra.mxu3 %vm341_vm1, %v5297_v10  ;;  %v5299_v8 = vld [vmem:[%s7188_s0 + $0xd0] sm:$0xff] }
 0x618   :  { %4209 = vst [vmem:[#allocation8 + $0x5f0] sm:$0xff] %v3825_v11 }
 0x619   :  { %4210 = vst [vmem:[#allocation8 + $0x5f8] sm:$0xff] %v3826_v12  ;;  %v2257_v16 = vpop.f32.mrf.mxu2  ;;  %v2426_v17 = vpop.f32.mrf.mxu3 }
 0x61a   :  { %v2258_v21 = vadd.f32 %v2257_v16, %v6760_v15  ;;  %v2427_v24 = vadd.f32 %v2426_v17, %v6765_v27  ;;  %v2090_v25 = vpop.f32.mrf.mxu1  ;;  %v2597_v28 = vpop.f32.mrf.mxu0 }
 0x61b   :  { %v2091_v42 = vadd.f32 %v2090_v25, %v6748_v13  ;;  %v2598_v23 = vadd.f32 %v2597_v28, %v6752_v26 }
 0x61c   :  { %v3101_v34 = vmax.f32 %v2258_v21, 0.0  ;;  %v3102_v35 = vmax.f32 %v2427_v24, 0.0 }
 0x61d   :  { %v3113_v37 = vmax.f32 %v2091_v42, 0.0  ;;  %v3116_v39 = vmax.f32 %v2598_v23, 0.0 }
 0x61e   :  { %v3831_v53 = vpack.c.bf16 %v3101_v34, %v3100_v19  ;;  %v3832_v57 = vpack.c.bf16 %v3103_v20, %v3102_v35 }
 0x620   :  { %4215 = vst [vmem:[#allocation8 + $0x620] sm:$0xff] %v3831_v53 }
 0x621   :  { %4216 = vst [vmem:[#allocation8 + $0x628] sm:$0xff] %v3832_v57  ;;  %v2259_v29 = vpop.f32.mrf.mxu2  ;;  %v2428_v32 = vpop.f32.mrf.mxu3 }
 0x622   :  { %v2260_v14 = vadd.f32 %v2259_v29, %v6760_v15  ;;  %v2429_v0 = vadd.f32 %v2428_v32, %v6765_v27  ;;  %v2093_v33 = vpop.f32.mrf.mxu1  ;;  %v2600_v36 = vpop.f32.mrf.mxu0 }
 0x623   :  { %v2094_v43 = vadd.f32 %v2093_v33, %v6748_v13  ;;  %v2601_v47 = vadd.f32 %v2600_v36, %v6752_v26 }
 0x624   :  { %v3114_v40 = vmax.f32 %v2260_v14, 0.0  ;;  %v3115_v41 = vmax.f32 %v2429_v0, 0.0 }
 0x625   :  { %4882 = vmatmul.msk.bf16.gmra.mxu1 %vm341_vm1, %v5298_v44  ;;  %4978 = vmatmul.msk.bf16.gmra.mxu0 %vm341_vm1, %v5298_v44  ;;  %v3126_v50 = vmax.f32 %v2094_v43, 0.0  ;;  %v3129_v51 = vmax.f32 %v2601_v47, 0.0 }
 0x626   :  { %v3837_v45 = vpack.c.bf16 %v3114_v40, %v3113_v37  ;;  %v3838_v46 = vpack.c.bf16 %v3116_v39, %v3115_v41  ;;  %4914 = vmatmul.msk.bf16.gmra.mxu2 %vm341_vm1, %v5298_v44  ;;  %4946 = vmatmul.msk.bf16.gmra.mxu3 %vm341_vm1, %v5298_v44  ;;  %v5300_v41 = vld [vmem:[%s7188_s0 + $0xd8] sm:$0xff] }
 0x628   :  { %4221 = vst [vmem:[#allocation8 + $0x650] sm:$0xff] %v3837_v45 }
 0x629   :  { %4222 = vst [vmem:[#allocation8 + $0x658] sm:$0xff] %v3838_v46  ;;  %v2262_v48 = vpop.f32.mrf.mxu2  ;;  %v2431_v49 = vpop.f32.mrf.mxu3 }
 0x62a   :  { %v2263_v52 = vadd.f32 %v2262_v48, %v6760_v15  ;;  %v2432_v55 = vadd.f32 %v2431_v49, %v6765_v27  ;;  %v2095_v56 = vpop.f32.mrf.mxu1  ;;  %v2602_v22 = vpop.f32.mrf.mxu0 }
 0x62b   :  { %v2096_v1 = vadd.f32 %v2095_v56, %v6748_v13  ;;  %v2603_v6 = vadd.f32 %v2602_v22, %v6752_v26 }
 0x62c   :  { %v3127_v58 = vmax.f32 %v2263_v52, 0.0  ;;  %v3128_v59 = vmax.f32 %v2432_v55, 0.0 }
 0x62d   :  { %v3139_v63 = vmax.f32 %v2096_v1, 0.0  ;;  %v3142_v2 = vmax.f32 %v2603_v6, 0.0 }
 0x62e   :  { %v3843_v30 = vpack.c.bf16 %v3127_v58, %v3126_v50  ;;  %v3844_v60 = vpack.c.bf16 %v3129_v51, %v3128_v59 }
 0x630   :  { %4227 = vst [vmem:[#allocation8 + $0x680] sm:$0xff] %v3843_v30 }
 0x631   :  { %4228 = vst [vmem:[#allocation8 + $0x688] sm:$0xff] %v3844_v60  ;;  %v2264_v31 = vpop.f32.mrf.mxu2  ;;  %v2433_v18 = vpop.f32.mrf.mxu3 }
 0x632   :  { %v2265_v54 = vadd.f32 %v2264_v31, %v6760_v15  ;;  %v2434_v38 = vadd.f32 %v2433_v18, %v6765_v27  ;;  %v2098_v61 = vpop.f32.mrf.mxu1  ;;  %v2605_v62 = vpop.f32.mrf.mxu0 }
 0x633   :  { %v2099_v7 = vadd.f32 %v2098_v61, %v6748_v13  ;;  %v2606_v11 = vadd.f32 %v2605_v62, %v6752_v26 }
 0x634   :  { %v3140_v4 = vmax.f32 %v2265_v54, 0.0  ;;  %v3141_v5 = vmax.f32 %v2434_v38, 0.0 }
 0x635   :  { %4883 = vmatmul.msk.bf16.gmra.mxu1 %vm341_vm1, %v5299_v8  ;;  %4979 = vmatmul.msk.bf16.gmra.mxu0 %vm341_vm1, %v5299_v8  ;;  %v3152_v16 = vmax.f32 %v2099_v7, 0.0  ;;  %v3155_v17 = vmax.f32 %v2606_v11, 0.0 }
 0x636   :  { %v3849_v9 = vpack.c.bf16 %v3140_v4, %v3139_v63  ;;  %v3850_v10 = vpack.c.bf16 %v3142_v2, %v3141_v5  ;;  %4915 = vmatmul.msk.bf16.gmra.mxu2 %vm341_vm1, %v5299_v8  ;;  %4947 = vmatmul.msk.bf16.gmra.mxu3 %vm341_vm1, %v5299_v8  ;;  %v5301_v5 = vld [vmem:[%s7188_s0 + $0xe0] sm:$0xff] }
 0x638   :  { %4233 = vst [vmem:[#allocation8 + $0x6b0] sm:$0xff] %v3849_v9 }
 0x639   :  { %4234 = vst [vmem:[#allocation8 + $0x6b8] sm:$0xff] %v3850_v10  ;;  %v2267_v12 = vpop.f32.mrf.mxu2  ;;  %v2436_v3 = vpop.f32.mrf.mxu3 }
 0x63a   :  { %v2268_v19 = vadd.f32 %v2267_v12, %v6760_v15  ;;  %v2437_v20 = vadd.f32 %v2436_v3, %v6765_v27  ;;  %v2100_v21 = vpop.f32.mrf.mxu1  ;;  %v2607_v24 = vpop.f32.mrf.mxu0 }
 0x63b   :  { %v2101_v53 = vadd.f32 %v2100_v21, %v6748_v13  ;;  %v2608_v57 = vadd.f32 %v2607_v24, %v6752_v26 }
 0x63c   :  { %v3153_v25 = vmax.f32 %v2268_v19, 0.0  ;;  %v3154_v28 = vmax.f32 %v2437_v20, 0.0 }
 0x63d   :  { %v3165_v33 = vmax.f32 %v2101_v53, 0.0  ;;  %v3168_v36 = vmax.f32 %v2608_v57, 0.0 }
 0x63e   :  { %v3855_v34 = vpack.c.bf16 %v3153_v25, %v3152_v16  ;;  %v3856_v35 = vpack.c.bf16 %v3155_v17, %v3154_v28 }
 0x640   :  { %4239 = vst [vmem:[#allocation8 + $0x6e0] sm:$0xff] %v3855_v34 }
 0x641   :  { %4240 = vst [vmem:[#allocation8 + $0x6e8] sm:$0xff] %v3856_v35  ;;  %v2269_v42 = vpop.f32.mrf.mxu2  ;;  %v2438_v23 = vpop.f32.mrf.mxu3 }
 0x642   :  { %v2270_v29 = vadd.f32 %v2269_v42, %v6760_v15  ;;  %v2439_v32 = vadd.f32 %v2438_v23, %v6765_v27  ;;  %v2103_v14 = vpop.f32.mrf.mxu1  ;;  %v2610_v0 = vpop.f32.mrf.mxu0 }
 0x643   :  { %v2104_v40 = vadd.f32 %v2103_v14, %v6748_v13  ;;  %v2611_v45 = vadd.f32 %v2610_v0, %v6752_v26 }
 0x644   :  { %v3166_v37 = vmax.f32 %v2270_v29, 0.0  ;;  %v3167_v39 = vmax.f32 %v2439_v32, 0.0 }
 0x645   :  { %4884 = vmatmul.msk.bf16.gmra.mxu1 %vm341_vm1, %v5300_v41  ;;  %4980 = vmatmul.msk.bf16.gmra.mxu0 %vm341_vm1, %v5300_v41  ;;  %v3178_v48 = vmax.f32 %v2104_v40, 0.0  ;;  %v3181_v49 = vmax.f32 %v2611_v45, 0.0 }
 0x646   :  { %v3861_v43 = vpack.c.bf16 %v3166_v37, %v3165_v33  ;;  %v3862_v44 = vpack.c.bf16 %v3168_v36, %v3167_v39  ;;  %4916 = vmatmul.msk.bf16.gmra.mxu2 %vm341_vm1, %v5300_v41  ;;  %4948 = vmatmul.msk.bf16.gmra.mxu3 %vm341_vm1, %v5300_v41  ;;  %v5302_v39 = vld [vmem:[%s7188_s0 + $0xe8] sm:$0xff] }
 0x648   :  { %4245 = vst [vmem:[#allocation8 + $0x710] sm:$0xff] %v3861_v43 }
 0x649   :  { %4246 = vst [vmem:[#allocation8 + $0x718] sm:$0xff] %v3862_v44  ;;  %v2272_v46 = vpop.f32.mrf.mxu2  ;;  %v2441_v47 = vpop.f32.mrf.mxu3 }
 0x64a   :  { %v2273_v50 = vadd.f32 %v2272_v46, %v6760_v15  ;;  %v2442_v51 = vadd.f32 %v2441_v47, %v6765_v27  ;;  %v2105_v52 = vpop.f32.mrf.mxu1  ;;  %v2612_v55 = vpop.f32.mrf.mxu0 }
 0x64b   :  { %v2106_v30 = vadd.f32 %v2105_v52, %v6748_v13  ;;  %v2613_v60 = vadd.f32 %v2612_v55, %v6752_v26 }
 0x64c   :  { %v3179_v56 = vmax.f32 %v2273_v50, 0.0  ;;  %v3180_v22 = vmax.f32 %v2442_v51, 0.0 }
 0x64d   :  { %v3191_v61 = vmax.f32 %v2106_v30, 0.0  ;;  %v3194_v62 = vmax.f32 %v2613_v60, 0.0 }
 0x64e   :  { %v3867_v58 = vpack.c.bf16 %v3179_v56, %v3178_v48  ;;  %v3868_v59 = vpack.c.bf16 %v3181_v49, %v3180_v22 }
 0x650   :  { %4251 = vst [vmem:[#allocation8 + $0x740] sm:$0xff] %v3867_v58 }
 0x651   :  { %4252 = vst [vmem:[#allocation8 + $0x748] sm:$0xff] %v3868_v59  ;;  %v2274_v1 = vpop.f32.mrf.mxu2  ;;  %v2443_v6 = vpop.f32.mrf.mxu3 }
 0x652   :  { %v2275_v31 = vadd.f32 %v2274_v1, %v6760_v15  ;;  %v2444_v18 = vadd.f32 %v2443_v6, %v6765_v27  ;;  %v2108_v54 = vpop.f32.mrf.mxu1  ;;  %v2615_v38 = vpop.f32.mrf.mxu0 }
 0x653   :  { %v2109_v4 = vadd.f32 %v2108_v54, %v6748_v13  ;;  %v2616_v9 = vadd.f32 %v2615_v38, %v6752_v26 }
 0x654   :  { %v3192_v63 = vmax.f32 %v2275_v31, 0.0  ;;  %v3193_v2 = vmax.f32 %v2444_v18, 0.0 }
 0x655   :  { %4885 = vmatmul.msk.bf16.gmra.mxu1 %vm341_vm1, %v5301_v5  ;;  %4981 = vmatmul.msk.bf16.gmra.mxu0 %vm341_vm1, %v5301_v5  ;;  %v3204_v12 = vmax.f32 %v2109_v4, 0.0  ;;  %v3207_v3 = vmax.f32 %v2616_v9, 0.0 }
 0x656   :  { %v3873_v7 = vpack.c.bf16 %v3192_v63, %v3191_v61  ;;  %v3874_v8 = vpack.c.bf16 %v3194_v62, %v3193_v2  ;;  %4917 = vmatmul.msk.bf16.gmra.mxu2 %vm341_vm1, %v5301_v5  ;;  %4949 = vmatmul.msk.bf16.gmra.mxu3 %vm341_vm1, %v5301_v5  ;;  %v5303_v2 = vld [vmem:[%s7188_s0 + $0xf0] sm:$0xff] }
 0x658   :  { %4257 = vst [vmem:[#allocation8 + $0x770] sm:$0xff] %v3873_v7 }
 0x659   :  { %4258 = vst [vmem:[#allocation8 + $0x778] sm:$0xff] %v3874_v8  ;;  %v2277_v10 = vpop.f32.mrf.mxu2  ;;  %v2446_v11 = vpop.f32.mrf.mxu3 }
 0x65a   :  { %v2278_v16 = vadd.f32 %v2277_v10, %v6760_v15  ;;  %v2447_v17 = vadd.f32 %v2446_v11, %v6765_v27  ;;  %v2110_v19 = vpop.f32.mrf.mxu1  ;;  %v2617_v20 = vpop.f32.mrf.mxu0 }
 0x65b   :  { %v2111_v34 = vadd.f32 %v2110_v19, %v6748_v13  ;;  %v2618_v35 = vadd.f32 %v2617_v20, %v6752_v26 }
 0x65c   :  { %v3205_v21 = vmax.f32 %v2278_v16, 0.0  ;;  %v3206_v24 = vmax.f32 %v2447_v17, 0.0 }
 0x65d   :  { %v3217_v14 = vmax.f32 %v2111_v34, 0.0  ;;  %v3220_v0 = vmax.f32 %v2618_v35, 0.0 }
 0x65e   :  { %v3879_v25 = vpack.c.bf16 %v3205_v21, %v3204_v12  ;;  %v3880_v28 = vpack.c.bf16 %v3207_v3, %v3206_v24 }
 0x660   :  { %4263 = vst [vmem:[#allocation8 + $0x7a0] sm:$0xff] %v3879_v25 }
 0x661   :  { %4264 = vst [vmem:[#allocation8 + $0x7a8] sm:$0xff] %v3880_v28  ;;  %v2279_v53 = vpop.f32.mrf.mxu2  ;;  %v2448_v57 = vpop.f32.mrf.mxu3 }
 0x662   :  { %v2280_v42 = vadd.f32 %v2279_v53, %v6760_v15  ;;  %v2449_v23 = vadd.f32 %v2448_v57, %v6765_v27  ;;  %v2113_v29 = vpop.f32.mrf.mxu1  ;;  %v2620_v32 = vpop.f32.mrf.mxu0 }
 0x663   :  { %v2114_v37 = vadd.f32 %v2113_v29, %v6748_v13  ;;  %v2621_v43 = vadd.f32 %v2620_v32, %v6752_v26 }
 0x664   :  { %v3218_v33 = vmax.f32 %v2280_v42, 0.0  ;;  %v3219_v36 = vmax.f32 %v2449_v23, 0.0 }
 0x665   :  { %4886 = vmatmul.msk.bf16.gmra.mxu1 %vm341_vm1, %v5302_v39  ;;  %4982 = vmatmul.msk.bf16.gmra.mxu0 %vm341_vm1, %v5302_v39  ;;  %v3230_v46 = vmax.f32 %v2114_v37, 0.0  ;;  %v3233_v47 = vmax.f32 %v2621_v43, 0.0 }
 0x666   :  { %v3885_v40 = vpack.c.bf16 %v3218_v33, %v3217_v14  ;;  %v3886_v41 = vpack.c.bf16 %v3220_v0, %v3219_v36  ;;  %4918 = vmatmul.msk.bf16.gmra.mxu2 %vm341_vm1, %v5302_v39  ;;  %4950 = vmatmul.msk.bf16.gmra.mxu3 %vm341_vm1, %v5302_v39  ;;  %v5304_v36 = vld [vmem:[%s7188_s0 + $0xf8] sm:$0xff]  ;;  %s5411_s0 = smov [#allocation7]  }
 0x667   :  { %s4407_s29 = sshll.u32 %s5411_s0, 4  ;;  %s4408_s29 = int_to_ptr.vmem [resolvable:$true] %s4407_s29 }
 0x668   :  { %4269 = vst [vmem:[#allocation8 + $0x7d0] sm:$0xff] %v3885_v40  ;;  %4415 = dma.vmem_to_hbm [thread:$0]  %s4408_s29, 4096, %s4410_s6, [#allocation4], %s5412_s7, %s5412_s7, %s5413_s8  }
 0x669   :  { %4270 = vst [vmem:[#allocation8 + $0x7d8] sm:$0xff] %v3886_v41  ;;  %v2282_v44 = vpop.f32.mrf.mxu2  ;;  %v2451_v45 = vpop.f32.mrf.mxu3 }
 0x66a   :  { %v2283_v48 = vadd.f32 %v2282_v44, %v6760_v15  ;;  %v2452_v49 = vadd.f32 %v2451_v45, %v6765_v27  ;;  %v2115_v50 = vpop.f32.mrf.mxu1  ;;  %v2622_v51 = vpop.f32.mrf.mxu0 }
 0x66b   :  { %v2116_v58 = vadd.f32 %v2115_v50, %v6748_v13  ;;  %v2623_v59 = vadd.f32 %v2622_v51, %v6752_v26 }
 0x66c   :  { %v3231_v52 = vmax.f32 %v2283_v48, 0.0  ;;  %v3232_v55 = vmax.f32 %v2452_v49, 0.0 }
 0x66d   :  { %v3243_v54 = vmax.f32 %v2116_v58, 0.0  ;;  %v3246_v38 = vmax.f32 %v2623_v59, 0.0 }
 0x66e   :  { %v3891_v56 = vpack.c.bf16 %v3231_v52, %v3230_v46  ;;  %v3892_v22 = vpack.c.bf16 %v3233_v47, %v3232_v55 }
 0x670   :  { %4275 = vst [vmem:[#allocation8 + $0x800] sm:$0xff] %v3891_v56 }
 0x671   :  { %4276 = vst [vmem:[#allocation8 + $0x808] sm:$0xff] %v3892_v22  ;;  %v2284_v30 = vpop.f32.mrf.mxu2  ;;  %v2453_v60 = vpop.f32.mrf.mxu3 }
 0x672   :  { %v2285_v1 = vadd.f32 %v2284_v30, %v6760_v15  ;;  %v2454_v6 = vadd.f32 %v2453_v60, %v6765_v27  ;;  %v2118_v31 = vpop.f32.mrf.mxu1  ;;  %v2625_v18 = vpop.f32.mrf.mxu0 }
 0x673   :  { %v2119_v63 = vadd.f32 %v2118_v31, %v6748_v13  ;;  %v2626_v7 = vadd.f32 %v2625_v18, %v6752_v26 }
 0x674   :  { %v3244_v61 = vmax.f32 %v2285_v1, 0.0  ;;  %v3245_v62 = vmax.f32 %v2454_v6, 0.0 }
 0x675   :  { %4887 = vmatmul.msk.bf16.gmra.mxu1 %vm341_vm1, %v5303_v2  ;;  %4983 = vmatmul.msk.bf16.gmra.mxu0 %vm341_vm1, %v5303_v2  ;;  %v3256_v10 = vmax.f32 %v2119_v63, 0.0  ;;  %v3259_v11 = vmax.f32 %v2626_v7, 0.0 }
 0x676   :  { %v3897_v4 = vpack.c.bf16 %v3244_v61, %v3243_v54  ;;  %v3898_v5 = vpack.c.bf16 %v3246_v38, %v3245_v62  ;;  %4919 = vmatmul.msk.bf16.gmra.mxu2 %vm341_vm1, %v5303_v2  ;;  %4951 = vmatmul.msk.bf16.gmra.mxu3 %vm341_vm1, %v5303_v2 }
 0x678   :  { %4281 = vst [vmem:[#allocation8 + $0x830] sm:$0xff] %v3897_v4 }
 0x679   :  { %4282 = vst [vmem:[#allocation8 + $0x838] sm:$0xff] %v3898_v5  ;;  %v2287_v8 = vpop.f32.mrf.mxu2  ;;  %v2456_v9 = vpop.f32.mrf.mxu3 }
 0x67a   :  { %v2288_v12 = vadd.f32 %v2287_v8, %v6760_v15  ;;  %v2457_v3 = vadd.f32 %v2456_v9, %v6765_v27  ;;  %v2120_v16 = vpop.f32.mrf.mxu1  ;;  %v2627_v17 = vpop.f32.mrf.mxu0 }
 0x67b   :  { %v2121_v25 = vadd.f32 %v2120_v16, %v6748_v13  ;;  %v2628_v28 = vadd.f32 %v2627_v17, %v6752_v26 }
 0x67c   :  { %v3257_v19 = vmax.f32 %v2288_v12, 0.0  ;;  %v3258_v20 = vmax.f32 %v2457_v3, 0.0 }
 0x67d   :  { %v3269_v29 = vmax.f32 %v2121_v25, 0.0  ;;  %v3272_v32 = vmax.f32 %v2628_v28, 0.0 }
 0x67e   :  { %v3903_v21 = vpack.c.bf16 %v3257_v19, %v3256_v10  ;;  %v3904_v24 = vpack.c.bf16 %v3259_v11, %v3258_v20 }
 0x680   :  { %4287 = vst [vmem:[#allocation8 + $0x860] sm:$0xff] %v3903_v21 }
 0x681   :  { %4288 = vst [vmem:[#allocation8 + $0x868] sm:$0xff] %v3904_v24  ;;  %v2289_v34 = vpop.f32.mrf.mxu2  ;;  %v2458_v35 = vpop.f32.mrf.mxu3 }
 0x682   :  { %v2290_v53 = vadd.f32 %v2289_v34, %v6760_v15  ;;  %v2459_v57 = vadd.f32 %v2458_v35, %v6765_v27  ;;  %v2123_v42 = vpop.f32.mrf.mxu1  ;;  %v2630_v23 = vpop.f32.mrf.mxu0 }
 0x683   :  { %v2124_v33 = vadd.f32 %v2123_v42, %v6748_v13  ;;  %v2631_v40 = vadd.f32 %v2630_v23, %v6752_v26 }
 0x684   :  { %v3270_v14 = vmax.f32 %v2290_v53, 0.0  ;;  %v3271_v0 = vmax.f32 %v2459_v57, 0.0 }
 0x685   :  { %4888 = vmatmul.msk.bf16.gmra.mxu1 %vm341_vm1, %v5304_v36  ;;  %4984 = vmatmul.msk.bf16.gmra.mxu0 %vm341_vm1, %v5304_v36  ;;  %v3282_v44 = vmax.f32 %v2124_v33, 0.0  ;;  %v3285_v45 = vmax.f32 %v2631_v40, 0.0 }
 0x686   :  { %v3909_v37 = vpack.c.bf16 %v3270_v14, %v3269_v29  ;;  %v3910_v39 = vpack.c.bf16 %v3272_v32, %v3271_v0  ;;  %4920 = vmatmul.msk.bf16.gmra.mxu2 %vm341_vm1, %v5304_v36  ;;  %4952 = vmatmul.msk.bf16.gmra.mxu3 %vm341_vm1, %v5304_v36 }
 0x688   :  { %4293 = vst [vmem:[#allocation8 + $0x890] sm:$0xff] %v3909_v37 }
 0x689   :  { %4294 = vst [vmem:[#allocation8 + $0x898] sm:$0xff] %v3910_v39  ;;  %v2292_v41 = vpop.f32.mrf.mxu2  ;;  %v2461_v43 = vpop.f32.mrf.mxu3 }
 0x68a   :  { %v2293_v46 = vadd.f32 %v2292_v41, %v6760_v15  ;;  %v2462_v47 = vadd.f32 %v2461_v43, %v6765_v27  ;;  %v2125_v48 = vpop.f32.mrf.mxu1  ;;  %v2632_v49 = vpop.f32.mrf.mxu0 }
 0x68b   :  { %v2126_v56 = vadd.f32 %v2125_v48, %v6748_v13  ;;  %v2633_v22 = vadd.f32 %v2632_v49, %v6752_v26 }
 0x68c   :  { %v3283_v50 = vmax.f32 %v2293_v46, 0.0  ;;  %v3284_v51 = vmax.f32 %v2462_v47, 0.0 }
 0x68d   :  { %v3295_v31 = vmax.f32 %v2126_v56, 0.0  ;;  %v3298_v18 = vmax.f32 %v2633_v22, 0.0 }
 0x68e   :  { %v3915_v52 = vpack.c.bf16 %v3283_v50, %v3282_v44  ;;  %v3916_v55 = vpack.c.bf16 %v3285_v45, %v3284_v51 }
 0x690   :  { %4299 = vst [vmem:[#allocation8 + $0x8c0] sm:$0xff] %v3915_v52 }
 0x691   :  { %4300 = vst [vmem:[#allocation8 + $0x8c8] sm:$0xff] %v3916_v55  ;;  %v2294_v58 = vpop.f32.mrf.mxu2  ;;  %v2463_v59 = vpop.f32.mrf.mxu3 }
 0x692   :  { %v2295_v30 = vadd.f32 %v2294_v58, %v6760_v15  ;;  %v2464_v60 = vadd.f32 %v2463_v59, %v6765_v27  ;;  %v2128_v1 = vpop.f32.mrf.mxu1  ;;  %v2635_v6 = vpop.f32.mrf.mxu0 }
 0x693   :  { %v2129_v63 = vadd.f32 %v2128_v1, %v6748_v13  ;;  %v2636_v2 = vadd.f32 %v2635_v6, %v6752_v26 }
 0x694   :  { %v3296_v54 = vmax.f32 %v2295_v30, 0.0  ;;  %v3297_v38 = vmax.f32 %v2464_v60, 0.0 }
 0x695   :  { %v3308_v7 = vmax.f32 %v2129_v63, 0.0  ;;  %v3311_v8 = vmax.f32 %v2636_v2, 0.0 }
 0x696   :  { %v3921_v61 = vpack.c.bf16 %v3296_v54, %v3295_v31  ;;  %v3922_v62 = vpack.c.bf16 %v3298_v18, %v3297_v38 }
 0x698   :  { %4305 = vst [vmem:[#allocation8 + $0x8f0] sm:$0xff] %v3921_v61 }
 0x699   :  { %4306 = vst [vmem:[#allocation8 + $0x8f8] sm:$0xff] %v3922_v62  ;;  %v2297_v4 = vpop.f32.mrf.mxu2  ;;  %v2466_v5 = vpop.f32.mrf.mxu3 }
 0x69a   :  { %v2298_v9 = vadd.f32 %v2297_v4, %v6760_v15  ;;  %v2467_v10 = vadd.f32 %v2466_v5, %v6765_v27  ;;  %v2130_v11 = vpop.f32.mrf.mxu1  ;;  %v2637_v12 = vpop.f32.mrf.mxu0 }
 0x69b   :  { %v2131_v20 = vadd.f32 %v2130_v11, %v6748_v13  ;;  %v2638_v21 = vadd.f32 %v2637_v12, %v6752_v26 }
 0x69c   :  { %v3309_v3 = vmax.f32 %v2298_v9, 0.0  ;;  %v3310_v16 = vmax.f32 %v2467_v10, 0.0 }
 0x69d   :  { %v3321_v57 = vmax.f32 %v2131_v20, 0.0  ;;  %v3324_v42 = vmax.f32 %v2638_v21, 0.0 }
 0x69e   :  { %v3927_v17 = vpack.c.bf16 %v3309_v3, %v3308_v7  ;;  %v3928_v19 = vpack.c.bf16 %v3311_v8, %v3310_v16 }
 0x6a0   :  { %4311 = vst [vmem:[#allocation8 + $0x920] sm:$0xff] %v3927_v17 }
 0x6a1   :  { %4312 = vst [vmem:[#allocation8 + $0x928] sm:$0xff] %v3928_v19  ;;  %v2299_v24 = vpop.f32.mrf.mxu2  ;;  %v2468_v25 = vpop.f32.mrf.mxu3 }
 0x6a2   :  { %v2300_v28 = vadd.f32 %v2299_v24, %v6760_v15  ;;  %v2469_v34 = vadd.f32 %v2468_v25, %v6765_v27  ;;  %v2133_v35 = vpop.f32.mrf.mxu1  ;;  %v2640_v53 = vpop.f32.mrf.mxu0 }
 0x6a3   :  { %v2134_v0 = vadd.f32 %v2133_v35, %v6748_v13  ;;  %v2641_v33 = vadd.f32 %v2640_v53, %v6752_v26 }
 0x6a4   :  { %v3322_v23 = vmax.f32 %v2300_v28, 0.0  ;;  %v3323_v29 = vmax.f32 %v2469_v34, 0.0 }
 0x6a5   :  { %v3334_v39 = vmax.f32 %v2134_v0, 0.0  ;;  %v3337_v40 = vmax.f32 %v2641_v33, 0.0 }
 0x6a6   :  { %v3933_v32 = vpack.c.bf16 %v3322_v23, %v3321_v57  ;;  %v3934_v14 = vpack.c.bf16 %v3324_v42, %v3323_v29 }
 0x6a8   :  { %4317 = vst [vmem:[#allocation8 + $0x950] sm:$0xff] %v3933_v32 }
 0x6a9   :  { %4318 = vst [vmem:[#allocation8 + $0x958] sm:$0xff] %v3934_v14  ;;  %v2302_v36 = vpop.f32.mrf.mxu2  ;;  %v2471_v37 = vpop.f32.mrf.mxu3 }
 0x6aa   :  { %v2303_v41 = vadd.f32 %v2302_v36, %v6760_v15  ;;  %v2472_v43 = vadd.f32 %v2471_v37, %v6765_v27  ;;  %v2135_v44 = vpop.f32.mrf.mxu1  ;;  %v2642_v45 = vpop.f32.mrf.mxu0 }
 0x6ab   :  { %v2136_v50 = vadd.f32 %v2135_v44, %v6748_v13  ;;  %v2643_v51 = vadd.f32 %v2642_v45, %v6752_v26 }
 0x6ac   :  { %v3335_v46 = vmax.f32 %v2303_v41, 0.0  ;;  %v3336_v47 = vmax.f32 %v2472_v43, 0.0 }
 0x6ad   :  { %v3347_v30 = vmax.f32 %v2136_v50, 0.0  ;;  %v3350_v60 = vmax.f32 %v2643_v51, 0.0 }
 0x6ae   :  { %v3939_v48 = vpack.c.bf16 %v3335_v46, %v3334_v39  ;;  %v3940_v49 = vpack.c.bf16 %v3337_v40, %v3336_v47 }
 0x6b0   :  { %4323 = vst [vmem:[#allocation8 + $0x980] sm:$0xff] %v3939_v48 }
 0x6b1   :  { %4324 = vst [vmem:[#allocation8 + $0x988] sm:$0xff] %v3940_v49  ;;  %v2304_v52 = vpop.f32.mrf.mxu2  ;;  %v2473_v55 = vpop.f32.mrf.mxu3 }
 0x6b2   :  { %v2305_v56 = vadd.f32 %v2304_v52, %v6760_v15  ;;  %v2474_v22 = vadd.f32 %v2473_v55, %v6765_v27  ;;  %v2138_v58 = vpop.f32.mrf.mxu1  ;;  %v2645_v59 = vpop.f32.mrf.mxu0 }
 0x6b3   :  { %v2139_v54 = vadd.f32 %v2138_v58, %v6748_v13  ;;  %v2646_v38 = vadd.f32 %v2645_v59, %v6752_v26 }
 0x6b4   :  { %v3348_v1 = vmax.f32 %v2305_v56, 0.0  ;;  %v3349_v6 = vmax.f32 %v2474_v22, 0.0 }
 0x6b5   :  { %v3360_v63 = vmax.f32 %v2139_v54, 0.0  ;;  %v3363_v2 = vmax.f32 %v2646_v38, 0.0 }
 0x6b6   :  { %v3945_v31 = vpack.c.bf16 %v3348_v1, %v3347_v30  ;;  %v3946_v18 = vpack.c.bf16 %v3350_v60, %v3349_v6 }
 0x6b8   :  { %4329 = vst [vmem:[#allocation8 + $0x9b0] sm:$0xff] %v3945_v31 }
 0x6b9   :  { %4330 = vst [vmem:[#allocation8 + $0x9b8] sm:$0xff] %v3946_v18  ;;  %v2307_v61 = vpop.f32.mrf.mxu2  ;;  %v2476_v62 = vpop.f32.mrf.mxu3 }
 0x6ba   :  { %v2308_v4 = vadd.f32 %v2307_v61, %v6760_v15  ;;  %v2477_v5 = vadd.f32 %v2476_v62, %v6765_v27  ;;  %v2140_v7 = vpop.f32.mrf.mxu1  ;;  %v2647_v8 = vpop.f32.mrf.mxu0 }
 0x6bb   :  { %v2141_v3 = vadd.f32 %v2140_v7, %v6748_v13  ;;  %v2648_v16 = vadd.f32 %v2647_v8, %v6752_v26 }
 0x6bc   :  { %v3361_v9 = vmax.f32 %v2308_v4, 0.0  ;;  %v3362_v10 = vmax.f32 %v2477_v5, 0.0 }
 0x6bd   :  { %v3373_v28 = vmax.f32 %v2141_v3, 0.0  ;;  %v3376_v34 = vmax.f32 %v2648_v16, 0.0 }
 0x6be   :  { %v3951_v11 = vpack.c.bf16 %v3361_v9, %v3360_v63  ;;  %v3952_v12 = vpack.c.bf16 %v3363_v2, %v3362_v10 }
 0x6c0   :  { %4335 = vst [vmem:[#allocation8 + $0x9e0] sm:$0xff] %v3951_v11 }
 0x6c1   :  { %4336 = vst [vmem:[#allocation8 + $0x9e8] sm:$0xff] %v3952_v12  ;;  %v2309_v17 = vpop.f32.mrf.mxu2  ;;  %v2478_v19 = vpop.f32.mrf.mxu3 }
 0x6c2   :  { %v2310_v20 = vadd.f32 %v2309_v17, %v6760_v15  ;;  %v2479_v21 = vadd.f32 %v2478_v19, %v6765_v27  ;;  %v2143_v24 = vpop.f32.mrf.mxu1  ;;  %v2650_v25 = vpop.f32.mrf.mxu0 }
 0x6c3   :  { %v2144_v23 = vadd.f32 %v2143_v24, %v6748_v13  ;;  %v2651_v29 = vadd.f32 %v2650_v25, %v6752_v26 }
 0x6c4   :  { %v3374_v35 = vmax.f32 %v2310_v20, 0.0  ;;  %v3375_v53 = vmax.f32 %v2479_v21, 0.0 }
 0x6c5   :  { %v3386_v0 = vmax.f32 %v2144_v23, 0.0  ;;  %v3389_v33 = vmax.f32 %v2651_v29, 0.0 }
 0x6c6   :  { %v3957_v57 = vpack.c.bf16 %v3374_v35, %v3373_v28  ;;  %v3958_v42 = vpack.c.bf16 %v3376_v34, %v3375_v53 }
 0x6c8   :  { %4341 = vst [vmem:[#allocation8 + $0xa10] sm:$0xff] %v3957_v57 }
 0x6c9   :  { %4342 = vst [vmem:[#allocation8 + $0xa18] sm:$0xff] %v3958_v42  ;;  %v2312_v32 = vpop.f32.mrf.mxu2  ;;  %v2481_v14 = vpop.f32.mrf.mxu3 }
 0x6ca   :  { %v2313_v36 = vadd.f32 %v2312_v32, %v6760_v15  ;;  %v2482_v37 = vadd.f32 %v2481_v14, %v6765_v27  ;;  %v2145_v39 = vpop.f32.mrf.mxu1  ;;  %v2652_v40 = vpop.f32.mrf.mxu0 }
 0x6cb   :  { %v2146_v46 = vadd.f32 %v2145_v39, %v6748_v13  ;;  %v2653_v47 = vadd.f32 %v2652_v40, %v6752_v26 }
 0x6cc   :  { %v3387_v41 = vmax.f32 %v2313_v36, 0.0  ;;  %v3388_v43 = vmax.f32 %v2482_v37, 0.0 }
 0x6cd   :  { %v3399_v56 = vmax.f32 %v2146_v46, 0.0  ;;  %v3402_v22 = vmax.f32 %v2653_v47, 0.0 }
 0x6ce   :  { %v3963_v44 = vpack.c.bf16 %v3387_v41, %v3386_v0  ;;  %v3964_v45 = vpack.c.bf16 %v3389_v33, %v3388_v43 }
 0x6d0   :  { %4347 = vst [vmem:[#allocation8 + $0xa40] sm:$0xff] %v3963_v44 }
 0x6d1   :  { %4348 = vst [vmem:[#allocation8 + $0xa48] sm:$0xff] %v3964_v45  ;;  %v2314_v48 = vpop.f32.mrf.mxu2  ;;  %v2483_v49 = vpop.f32.mrf.mxu3 }
 0x6d2   :  { %v2315_v50 = vadd.f32 %v2314_v48, %v6760_v15  ;;  %v2484_v51 = vadd.f32 %v2483_v49, %v6765_v27  ;;  %v2148_v52 = vpop.f32.mrf.mxu1  ;;  %v2655_v55 = vpop.f32.mrf.mxu0 }
 0x6d3   :  { %v2149_v1 = vadd.f32 %v2148_v52, %v6748_v13  ;;  %v2656_v6 = vadd.f32 %v2655_v55, %v6752_v26 }
 0x6d4   :  { %v3400_v58 = vmax.f32 %v2315_v50, 0.0  ;;  %v3401_v59 = vmax.f32 %v2484_v51, 0.0 }
 0x6d5   :  { %v3412_v54 = vmax.f32 %v2149_v1, 0.0  ;;  %v3415_v38 = vmax.f32 %v2656_v6, 0.0 }
 0x6d6   :  { %v3969_v30 = vpack.c.bf16 %v3400_v58, %v3399_v56  ;;  %v3970_v60 = vpack.c.bf16 %v3402_v22, %v3401_v59 }
 0x6d8   :  { %4353 = vst [vmem:[#allocation8 + $0xa70] sm:$0xff] %v3969_v30 }
 0x6d9   :  { %4354 = vst [vmem:[#allocation8 + $0xa78] sm:$0xff] %v3970_v60  ;;  %v2317_v31 = vpop.f32.mrf.mxu2  ;;  %v2486_v18 = vpop.f32.mrf.mxu3 }
 0x6da   :  { %v2318_v61 = vadd.f32 %v2317_v31, %v6760_v15  ;;  %v2487_v62 = vadd.f32 %v2486_v18, %v6765_v27  ;;  %v2150_v63 = vpop.f32.mrf.mxu1  ;;  %v2657_v2 = vpop.f32.mrf.mxu0 }
 0x6db   :  { %v2151_v9 = vadd.f32 %v2150_v63, %v6748_v13  ;;  %v2658_v10 = vadd.f32 %v2657_v2, %v6752_v26 }
 0x6dc   :  { %v3413_v4 = vmax.f32 %v2318_v61, 0.0  ;;  %v3414_v5 = vmax.f32 %v2487_v62, 0.0 }
 0x6dd   :  { %v3425_v20 = vmax.f32 %v2151_v9, 0.0  ;;  %v3428_v21 = vmax.f32 %v2658_v10, 0.0 }
 0x6de   :  { %v3975_v7 = vpack.c.bf16 %v3413_v4, %v3412_v54  ;;  %v3976_v8 = vpack.c.bf16 %v3415_v38, %v3414_v5 }
 0x6e0   :  { %4359 = vst [vmem:[#allocation8 + $0xaa0] sm:$0xff] %v3975_v7 }
 0x6e1   :  { %4360 = vst [vmem:[#allocation8 + $0xaa8] sm:$0xff] %v3976_v8  ;;  %v2319_v11 = vpop.f32.mrf.mxu2  ;;  %v2488_v12 = vpop.f32.mrf.mxu3 }
 0x6e2   :  { %v2320_v3 = vadd.f32 %v2319_v11, %v6760_v15  ;;  %v2489_v16 = vadd.f32 %v2488_v12, %v6765_v27  ;;  %v2153_v17 = vpop.f32.mrf.mxu1  ;;  %v2660_v19 = vpop.f32.mrf.mxu0 }
 0x6e3   :  { %v2154_v35 = vadd.f32 %v2153_v17, %v6748_v13  ;;  %v2661_v53 = vadd.f32 %v2660_v19, %v6752_v26 }
 0x6e4   :  { %v3426_v24 = vmax.f32 %v2320_v3, 0.0  ;;  %v3427_v25 = vmax.f32 %v2489_v16, 0.0 }
 0x6e5   :  { %v3438_v23 = vmax.f32 %v2154_v35, 0.0  ;;  %v3441_v29 = vmax.f32 %v2661_v53, 0.0 }
 0x6e6   :  { %v3981_v28 = vpack.c.bf16 %v3426_v24, %v3425_v20  ;;  %v3982_v34 = vpack.c.bf16 %v3428_v21, %v3427_v25 }
 0x6e8   :  { %4365 = vst [vmem:[#allocation8 + $0xad0] sm:$0xff] %v3981_v28 }
 0x6e9   :  { %4366 = vst [vmem:[#allocation8 + $0xad8] sm:$0xff] %v3982_v34  ;;  %v2322_v57 = vpop.f32.mrf.mxu2  ;;  %v2491_v42 = vpop.f32.mrf.mxu3 }
 0x6ea   :  { %v2323_v32 = vadd.f32 %v2322_v57, %v6760_v15  ;;  %v2492_v14 = vadd.f32 %v2491_v42, %v6765_v27  ;;  %v2155_v0 = vpop.f32.mrf.mxu1  ;;  %v2662_v33 = vpop.f32.mrf.mxu0 }
 0x6eb   :  { %v2156_v41 = vadd.f32 %v2155_v0, %v6748_v13  ;;  %v2663_v43 = vadd.f32 %v2662_v33, %v6752_v26 }
 0x6ec   :  { %v3439_v36 = vmax.f32 %v2323_v32, 0.0  ;;  %v3440_v37 = vmax.f32 %v2492_v14, 0.0 }
 0x6ed   :  { %v3451_v50 = vmax.f32 %v2156_v41, 0.0  ;;  %v3454_v51 = vmax.f32 %v2663_v43, 0.0 }
 0x6ee   :  { %v3987_v39 = vpack.c.bf16 %v3439_v36, %v3438_v23  ;;  %v3988_v40 = vpack.c.bf16 %v3441_v29, %v3440_v37 }
 0x6f0   :  { %4371 = vst [vmem:[#allocation8 + $0xb00] sm:$0xff] %v3987_v39 }
 0x6f1   :  { %4372 = vst [vmem:[#allocation8 + $0xb08] sm:$0xff] %v3988_v40  ;;  %v2324_v44 = vpop.f32.mrf.mxu2  ;;  %v2493_v45 = vpop.f32.mrf.mxu3 }
 0x6f2   :  { %v2325_v46 = vadd.f32 %v2324_v44, %v6760_v15  ;;  %v2494_v47 = vadd.f32 %v2493_v45, %v6765_v27  ;;  %v2158_v48 = vpop.f32.mrf.mxu1  ;;  %v2665_v49 = vpop.f32.mrf.mxu0 }
 0x6f3   :  { %v2159_v58 = vadd.f32 %v2158_v48, %v6748_v13  ;;  %v2666_v59 = vadd.f32 %v2665_v49, %v6752_v26 }
 0x6f4   :  { %v3452_v52 = vmax.f32 %v2325_v46, 0.0  ;;  %v3453_v55 = vmax.f32 %v2494_v47, 0.0 }
 0x6f5   :  { %v3464_v1 = vmax.f32 %v2159_v58, 0.0  ;;  %v3467_v6 = vmax.f32 %v2666_v59, 0.0 }
 0x6f6   :  { %v3993_v56 = vpack.c.bf16 %v3452_v52, %v3451_v50  ;;  %v3994_v22 = vpack.c.bf16 %v3454_v51, %v3453_v55 }
 0x6f8   :  { %4377 = vst [vmem:[#allocation8 + $0xb30] sm:$0xff] %v3993_v56 }
 0x6f9   :  { %4378 = vst [vmem:[#allocation8 + $0xb38] sm:$0xff] %v3994_v22  ;;  %v2327_v30 = vpop.f32.mrf.mxu2  ;;  %v2496_v60 = vpop.f32.mrf.mxu3 }
 0x6fa   :  { %v2328_v31 = vadd.f32 %v2327_v30, %v6760_v15  ;;  %v2497_v18 = vadd.f32 %v2496_v60, %v6765_v27  ;;  %v2160_v54 = vpop.f32.mrf.mxu1  ;;  %v2667_v38 = vpop.f32.mrf.mxu0 }
 0x6fb   :  { %v2161_v4 = vadd.f32 %v2160_v54, %v6748_v13  ;;  %v2668_v5 = vadd.f32 %v2667_v38, %v6752_v26 }
 0x6fc   :  { %v3465_v61 = vmax.f32 %v2328_v31, 0.0  ;;  %v3466_v62 = vmax.f32 %v2497_v18, 0.0 }
 0x6fd   :  { %v3477_v3 = vmax.f32 %v2161_v4, 0.0  ;;  %v3480_v16 = vmax.f32 %v2668_v5, 0.0 }
 0x6fe   :  { %v3999_v63 = vpack.c.bf16 %v3465_v61, %v3464_v1  ;;  %v4000_v2 = vpack.c.bf16 %v3467_v6, %v3466_v62 }
 0x700   :  { %4383 = vst [vmem:[#allocation8 + $0xb60] sm:$0xff] %v3999_v63 }
 0x701   :  { %4384 = vst [vmem:[#allocation8 + $0xb68] sm:$0xff] %v4000_v2  ;;  %v2329_v7 = vpop.f32.mrf.mxu2  ;;  %v2498_v8 = vpop.f32.mrf.mxu3 }
 0x702   :  { %v2330_v9 = vadd.f32 %v2329_v7, %v6760_v15  ;;  %v2499_v10 = vadd.f32 %v2498_v8, %v6765_v27  ;;  %v2163_v11 = vpop.f32.mrf.mxu1  ;;  %v2670_v12 = vpop.f32.mrf.mxu0 }
 0x703   :  { %v2164_v24 = vadd.f32 %v2163_v11, %v6748_v13  ;;  %v2671_v25 = vadd.f32 %v2670_v12, %v6752_v26 }
 0x704   :  { %v3478_v17 = vmax.f32 %v2330_v9, 0.0  ;;  %v3479_v19 = vmax.f32 %v2499_v10, 0.0 }
 0x705   :  { %v3490_v35 = vmax.f32 %v2164_v24, 0.0  ;;  %v3493_v53 = vmax.f32 %v2671_v25, 0.0 }
 0x706   :  { %v4005_v20 = vpack.c.bf16 %v3478_v17, %v3477_v3  ;;  %v4006_v21 = vpack.c.bf16 %v3480_v16, %v3479_v19 }
 0x708   :  { %4389 = vst [vmem:[#allocation8 + $0xb90] sm:$0xff] %v4005_v20 }
 0x709   :  { %4390 = vst [vmem:[#allocation8 + $0xb98] sm:$0xff] %v4006_v21  ;;  %v2332_v28 = vpop.f32.mrf.mxu2  ;;  %v2501_v34 = vpop.f32.mrf.mxu3 }
 0x70a   :  { %v2333_v57 = vadd.f32 %v2332_v28, %v6760_v15  ;;  %v2502_v42 = vadd.f32 %v2501_v34, %v6765_v27  ;;  %v2165_v32 = vpop.f32.mrf.mxu1  ;;  %v2672_v14 = vpop.f32.mrf.mxu0 }
 0x70b   :  { %v2166_v36 = vadd.f32 %v2165_v32, %v6748_v13  ;;  %v2673_v37 = vadd.f32 %v2672_v14, %v6752_v26 }
 0x70c   :  { %v3491_v23 = vmax.f32 %v2333_v57, 0.0  ;;  %v3492_v29 = vmax.f32 %v2502_v42, 0.0 }
 0x70d   :  { %v3503_v44 = vmax.f32 %v2166_v36, 0.0  ;;  %v3506_v45 = vmax.f32 %v2673_v37, 0.0 }
 0x70e   :  { %v4011_v0 = vpack.c.bf16 %v3491_v23, %v3490_v35  ;;  %v4012_v33 = vpack.c.bf16 %v3493_v53, %v3492_v29 }
 0x710   :  { %4395 = vst [vmem:[#allocation8 + $0xbc0] sm:$0xff] %v4011_v0 }
 0x711   :  { %4396 = vst [vmem:[#allocation8 + $0xbc8] sm:$0xff] %v4012_v33  ;;  %v2334_v39 = vpop.f32.mrf.mxu2  ;;  %v2503_v40 = vpop.f32.mrf.mxu3 }
 0x712   :  { %v2335_v41 = vadd.f32 %v2334_v39, %v6760_v15  ;;  %v2504_v43 = vadd.f32 %v2503_v40, %v6765_v27 }
 0x714   :  { %v3504_v46 = vmax.f32 %v2335_v41, 0.0  ;;  %v3505_v47 = vmax.f32 %v2504_v43, 0.0 }
 0x716   :  { %v4017_v13 = vpack.c.bf16 %v3504_v46, %v3503_v44  ;;  %v4018_v48 = vpack.c.bf16 %v3506_v45, %v3505_v47 }
 0x718   :  { %4401 = vst [vmem:[#allocation8 + $0xbf0] sm:$0xff] %v4017_v13 }
 0x719   :  { %4402 = vst [vmem:[#allocation8 + $0xbf8] sm:$0xff] %v4018_v48 }
 0x71a   :  { %4428 = dma.vmem_to_hbm [thread:$0]  %s4421_s9, 49152, %s4423_s12, [#allocation9], %s5415_s13, %s5415_s13, %s5416_s14  }
 0x71b   :  { %5405 = dma.done.wait [#allocation4], 4096  }
 0x71c   :  { %5406 = vsyncadd [#allocation4], 4294963200 }
 0x71d   :  { %5407 = dma.done.wait [#allocation9], 49152  }
 0x71e   :  { %5408 = vsyncadd [#allocation9], 4294918144 }
 0x71f   :  { %4437 = vsyncpa [#allocation3], 1 }
 0x720   :  { %4438 = vsyncpa [#allocation6], 1 }
 0x721   :  { %4439 = vsyncpa [#allocation4], 1 }
 0x722   :  { %4440 = vsyncpa [#allocation9], 1 }

</bundles_post_ra>
